<compile_context>
chip_gen: v7x
topology: tpu7x:2x2x1
jax: 0.10.0
libtpu: 0.0.40
codegen_flags: <defaults>
</compile_context>

<pallas_src>
import jax
import jax.numpy as jnp
from jax.experimental import pallas as pl
from jax.experimental.pallas import tpu as pltpu

LATENT_DIM = 100
LATENT_PAD = 128            # 100 -> 128 (lane aligned)
H1, H2, H3 = 256, 512, 1024
OUT_DIM = 28 * 28           # 784
OUT_PAD = 896               # 784 -> 7 * 128 (lane aligned)


def generator_kernel(z_ref,
                     w1_ref, b1_ref,
                     w2_ref, b2_ref,
                     w3_ref, b3_ref,
                     w4_ref, b4_ref,
                     out_ref):
    """Fused 4-layer MLP on one (TB, *) batch tile.

    Weights / activations feed the MXU in bf16; accumulation, bias add, ReLU
    and tanh are done in f32. Output is stored as bf16 (lane-dense slab).
    """
    h = z_ref[...]                                               # (TB, 128) bf16

    h = jnp.dot(h, w1_ref[...], preferred_element_type=jnp.float32) + b1_ref[...]
    h = jnp.maximum(h, 0.0).astype(jnp.bfloat16)                 # (TB, 256)

    h = jnp.dot(h, w2_ref[...], preferred_element_type=jnp.float32) + b2_ref[...]
    h = jnp.maximum(h, 0.0).astype(jnp.bfloat16)                 # (TB, 512)

    h = jnp.dot(h, w3_ref[...], preferred_element_type=jnp.float32) + b3_ref[...]
    h = jnp.maximum(h, 0.0).astype(jnp.bfloat16)                 # (TB, 1024)

    h = jnp.dot(h, w4_ref[...], preferred_element_type=jnp.float32) + b4_ref[...]
    out_ref[...] = jnp.tanh(h).astype(jnp.bfloat16)              # (TB, 896) bf16


def _round_up(x, m):
    return (x + m - 1) // m * m


def prepare_params(params):
    """One-time weight prep: zero-pad to lane-aligned shapes + cast to bf16.

    Call once (outside any per-step loop / jit) and reuse the result for every
    forward call. Biases stay f32 (tiny; added onto the f32 accumulator)."""
    (w1, b1), (w2, b2), (w3, b3), (w4, b4) = params

    w1p = jnp.zeros((LATENT_PAD, H1), jnp.float32).at[:LATENT_DIM, :].set(w1)
    w4p = jnp.zeros((H3, OUT_PAD), jnp.float32).at[:, :OUT_DIM].set(w4)
    b4p = jnp.zeros((1, OUT_PAD), jnp.float32).at[:, :OUT_DIM].set(b4)

    return (w1p.astype(jnp.bfloat16), b1.astype(jnp.float32),
            w2.astype(jnp.bfloat16),  b2.astype(jnp.float32),
            w3.astype(jnp.bfloat16),  b3.astype(jnp.float32),
            w4p.astype(jnp.bfloat16), b4p)


def _choose_tile(B, batch_tile):
    """Pick batch tile: 16-row aligned (bf16 sublane packing), one tile for
    small batches, and >= 2 grid steps for batches >= 32 so v7x's two
    TensorCores can both be used via dimension_semantics=('parallel',)."""
    tb = min(batch_tile, _round_up(B, 16))
    if B >= 32 and _round_up(B, tb) // tb < 2:
        tb = max(16, _round_up(pl.cdiv(B, 2), 16))
    Bp = _round_up(B, tb)
    return tb, Bp


def generator_forward_padded(z, prepared, *, batch_tile=256):
    """z: (B, 100) f32 -> padded lane-dense (Bp, 896) bf16 slab (no un-pad copy).

    batch_tile: sweep 256/512 (v6e can use 512+ with a higher vmem limit;
    keep 256-512 on v7x under the 32 MiB scoped cap)."""
    w1b, b1, w2b, b2, w3b, b3, w4b, b4p = prepared
    B = z.shape[0]
    tb, Bp = _choose_tile(B, batch_tile)

    zp = jnp.zeros((Bp, LATENT_PAD), jnp.bfloat16)
    zp = zp.at[:B, :LATENT_DIM].set(z.astype(jnp.bfloat16))

    grid = (Bp // tb,)

    def const_spec(shape):
        # Same block every grid step -> VMEM resident; single-buffered to
        # avoid doubling the ~3.1 MiB weight footprint.
        return pl.BlockSpec(shape, lambda i: (0, 0), pipeline_mode=pl.Buffered(1))

    # Weights are DMA'd once (constant block index), activations once per row.
    weight_bytes = sum(int(a.size) * a.dtype.itemsize
                       for a in (w1b, b1, w2b, b2, w3b, b3, w4b, b4p))
    io_bytes = int(zp.size) * 2 + Bp * OUT_PAD * 2
    flops = 2 * Bp * (LATENT_PAD * H1 + H1 * H2 + H2 * H3 + H3 * OUT_PAD)

    flat = pl.pallas_call(
        generator_kernel,
        out_shape=jax.ShapeDtypeStruct((Bp, OUT_PAD), jnp.bfloat16),
        grid_spec=pltpu.PrefetchScalarGridSpec(
            num_scalar_prefetch=0,
            grid=grid,
            in_specs=[
                pl.BlockSpec((tb, LATENT_PAD), lambda i: (i, 0)),   # z tile
                const_spec((LATENT_PAD, H1)), const_spec((1, H1)),
                const_spec((H1, H2)),         const_spec((1, H2)),
                const_spec((H2, H3)),         const_spec((1, H3)),
                const_spec((H3, OUT_PAD)),    const_spec((1, OUT_PAD)),
            ],
            out_specs=pl.BlockSpec((tb, OUT_PAD), lambda i: (i, 0)),
        ),
        compiler_params=pltpu.CompilerParams(
            dimension_semantics=("parallel",),
            vmem_limit_bytes=32 * 1024 * 1024,   # safe for v7x; plenty for tb<=512
        ),
        cost_estimate=pl.CostEstimate(
            flops=flops,
            transcendentals=Bp * OUT_PAD,
            bytes_accessed=weight_bytes + io_bytes,
        ),
    )(zp, w1b, b1, w2b, b2, w3b, b3, w4b, b4p)

    return flat


def generator_forward(z, prepared, *, batch_tile=256):
    """PyTorch-equivalent forward: (B, 100) f32 -> (B, 1, 28, 28) f32.

    Note: the 896->784 lane slice + f32 upcast here is a real output copy in
    XLA; latency-critical consumers should take generator_forward_padded()
    directly and fuse the un-pad/reshape."""
    B = z.shape[0]
    flat = generator_forward_padded(z, prepared, batch_tile=batch_tile)
    return flat[:B, :OUT_DIM].astype(jnp.float32).reshape(-1, 1, 28, 28)


def init_params(key):
    """Deterministic synthetic parameters (nn.Linear-style init), stored as
    (in, out) so the kernel can do x @ W directly; biases kept 2D (1, out)."""
    dims = [(LATENT_DIM, H1), (H1, H2), (H2, H3), (H3, OUT_DIM)]
    params = []
    for (din, dout) in dims:
        key, kw, kb = jax.random.split(key, 3)
        bound = 1.0 / jnp.sqrt(jnp.float32(din))
        w = jax.random.uniform(kw, (din, dout), jnp.float32, -bound, bound)
        b = jax.random.uniform(kb, (1, dout), jnp.float32, -bound, bound)
        params.append((w, b))
    return params


def _reference(z, params, quantize_weights):
    """Plain-JAX reference. Optionally uses the same bf16-quantized weights."""
    def q(w):
        return w.astype(jnp.bfloat16).astype(jnp.float32) if quantize_weights else w
    (w1, b1), (w2, b2), (w3, b3), (w4, b4) = params
    h = jnp.maximum(z @ q(w1) + b1, 0.0)
    h = jnp.maximum(h @ q(w2) + b2, 0.0)
    h = jnp.maximum(h @ q(w3) + b3, 0.0)
    return jnp.tanh(h @ q(w4) + b4).reshape(-1, 1, 28, 28)


if __name__ == "__main__":
    key = jax.random.PRNGKey(0)
    kz, kp = jax.random.split(key)

    params = init_params(kp)
    prepared = prepare_params(params)          # one-time pad + bf16 cast
    prepared = jax.block_until_ready(prepared)

    # --- small batch ---------------------------------------------------------
    B = 8
    z = jax.random.normal(kz, (B, LATENT_DIM), dtype=jnp.float32)

    img = generator_forward(z, prepared)
    jax.block_until_ready(img)

    assert img.shape == (B, 1, 28, 28), img.shape
    assert img.dtype == jnp.float32
    assert bool(jnp.all(jnp.abs(img) <= 1.0))          # tanh range

    # kernel vs. reference using the *same* bf16 weights (isolates kernel math)
    ref_q = _reference(z, params, quantize_weights=True)
    assert bool(jnp.allclose(img, ref_q, atol=2e-2, rtol=2e-2))
    # kernel vs. full-f32 PyTorch-equivalent reference (quantization tolerance)
    ref_f32 = _reference(z, params, quantize_weights=False)
    assert bool(jnp.allclose(img, ref_f32, atol=6e-2, rtol=6e-2))

    # --- multi-step grid (3 tiles of 16 rows) + batch padding ----------------
    B2 = 40
    z2 = jax.random.normal(jax.random.PRNGKey(1), (B2, LATENT_DIM), jnp.float32)
    img2 = generator_forward(z2, prepared, batch_tile=16)   # grid = (3,), 8 pad rows
    jax.block_until_ready(img2)
    assert img2.shape == (B2, 1, 28, 28)
    ref2 = _reference(z2, params, quantize_weights=True)
    assert bool(jnp.allclose(img2, ref2, atol=2e-2, rtol=2e-2))

    # --- medium batch: auto-split into >=2 tiles (v7x megacore path) ---------
    B3 = 64
    z3 = jax.random.normal(jax.random.PRNGKey(2), (B3, LATENT_DIM), jnp.float32)
    img3 = generator_forward(z3, prepared)                   # grid = (2,), tb = 32
    jax.block_until_ready(img3)
    assert img3.shape == (B3, 1, 28, 28)
    ref3 = _reference(z3, params, quantize_weights=True)
    assert bool(jnp.allclose(img3, ref3, atol=2e-2, rtol=2e-2))

    print("KERNEL_OK")
</pallas_src>

<mosaic_0001>
module attributes {stable_mosaic.version = 11 : i64} {
  func.func @generator_kernel(%arg0: i32, %arg1: memref<16x128xbf16, #tpu.memory_space<vmem>>, %arg2: memref<128x256xbf16, #tpu.memory_space<vmem>>, %arg3: memref<1x256xf32, #tpu.memory_space<vmem>>, %arg4: memref<256x512xbf16, #tpu.memory_space<vmem>>, %arg5: memref<1x512xf32, #tpu.memory_space<vmem>>, %arg6: memref<512x1024xbf16, #tpu.memory_space<vmem>>, %arg7: memref<1x1024xf32, #tpu.memory_space<vmem>>, %arg8: memref<1024x896xbf16, #tpu.memory_space<vmem>>, %arg9: memref<1x896xf32, #tpu.memory_space<vmem>>, %arg10: memref<16x896xbf16, #tpu.memory_space<vmem>>) attributes {dimension_semantics = [#tpu.dimension_semantics<parallel>], iteration_bounds = array<i64: 1>, scalar_prefetch = 0 : i64, scratch_operands = 0 : i64, tpu.core_type = #tpu.core_type<tc>, window_params = [{transform_indices = @transform_0, window_bounds = array<i64: 16, 128>}, {pipeline_mode = #tpu.pipeline_mode<synchronous>, transform_indices = @transform_1, window_bounds = array<i64: 128, 256>}, {pipeline_mode = #tpu.pipeline_mode<synchronous>, transform_indices = @transform_2, window_bounds = array<i64: 1, 256>}, {pipeline_mode = #tpu.pipeline_mode<synchronous>, transform_indices = @transform_3, window_bounds = array<i64: 256, 512>}, {pipeline_mode = #tpu.pipeline_mode<synchronous>, transform_indices = @transform_4, window_bounds = array<i64: 1, 512>}, {pipeline_mode = #tpu.pipeline_mode<synchronous>, transform_indices = @transform_5, window_bounds = array<i64: 512, 1024>}, {pipeline_mode = #tpu.pipeline_mode<synchronous>, transform_indices = @transform_6, window_bounds = array<i64: 1, 1024>}, {pipeline_mode = #tpu.pipeline_mode<synchronous>, transform_indices = @transform_7, window_bounds = array<i64: 1024, 896>}, {pipeline_mode = #tpu.pipeline_mode<synchronous>, transform_indices = @transform_8, window_bounds = array<i64: 1, 896>}, {transform_indices = @transform_9, window_bounds = array<i64: 16, 896>}]} {
    %c0 = arith.constant 0 : index
    %c0_0 = arith.constant 0 : index
    %0 = vector.load %arg1[%c0, %c0_0] : memref<16x128xbf16, #tpu.memory_space<vmem>>, vector<16x128xbf16>
    %c0_1 = arith.constant 0 : index
    %c0_2 = arith.constant 0 : index
    %1 = vector.load %arg2[%c0_1, %c0_2] : memref<128x256xbf16, #tpu.memory_space<vmem>>, vector<128x256xbf16>
    %cst = arith.constant dense<0.000000e+00> : vector<16x256xf32>
    %2 = tpu.matmul %0, %1, %cst {dimension_numbers = #tpu.dot_dimension_numbers<[1], [0], [0], [1], [0, 0, 1, 1], [], []>} : vector<16x128xbf16>, vector<128x256xbf16>, vector<16x256xf32> -> vector<16x256xf32>
    %c0_3 = arith.constant 0 : index
    %c0_4 = arith.constant 0 : index
    %3 = vector.load %arg3[%c0_3, %c0_4] : memref<1x256xf32, #tpu.memory_space<vmem>>, vector<1x256xf32>
    %4 = vector.broadcast %3 : vector<1x256xf32> to vector<16x256xf32>
    %5 = arith.addf %2, %4 : vector<16x256xf32>
    %cst_5 = arith.constant 0.000000e+00 : f32
    %6 = vector.broadcast %cst_5 : f32 to vector<16x256xf32>
    %7 = arith.maximumf %5, %6 : vector<16x256xf32>
    %8 = arith.truncf %7 : vector<16x256xf32> to vector<16x256xbf16>
    %c0_6 = arith.constant 0 : index
    %c0_7 = arith.constant 0 : index
    %9 = vector.load %arg4[%c0_6, %c0_7] : memref<256x512xbf16, #tpu.memory_space<vmem>>, vector<256x512xbf16>
    %cst_8 = arith.constant dense<0.000000e+00> : vector<16x512xf32>
    %10 = tpu.matmul %8, %9, %cst_8 {dimension_numbers = #tpu.dot_dimension_numbers<[1], [0], [0], [1], [0, 0, 1, 1], [], []>} : vector<16x256xbf16>, vector<256x512xbf16>, vector<16x512xf32> -> vector<16x512xf32>
    %c0_9 = arith.constant 0 : index
    %c0_10 = arith.constant 0 : index
    %11 = vector.load %arg5[%c0_9, %c0_10] : memref<1x512xf32, #tpu.memory_space<vmem>>, vector<1x512xf32>
    %12 = vector.broadcast %11 : vector<1x512xf32> to vector<16x512xf32>
    %13 = arith.addf %10, %12 : vector<16x512xf32>
    %cst_11 = arith.constant 0.000000e+00 : f32
    %14 = vector.broadcast %cst_11 : f32 to vector<16x512xf32>
    %15 = arith.maximumf %13, %14 : vector<16x512xf32>
    %16 = arith.truncf %15 : vector<16x512xf32> to vector<16x512xbf16>
    %c0_12 = arith.constant 0 : index
    %c0_13 = arith.constant 0 : index
    %17 = vector.load %arg6[%c0_12, %c0_13] : memref<512x1024xbf16, #tpu.memory_space<vmem>>, vector<512x1024xbf16>
    %cst_14 = arith.constant dense<0.000000e+00> : vector<16x1024xf32>
    %18 = tpu.matmul %16, %17, %cst_14 {dimension_numbers = #tpu.dot_dimension_numbers<[1], [0], [0], [1], [0, 0, 1, 1], [], []>} : vector<16x512xbf16>, vector<512x1024xbf16>, vector<16x1024xf32> -> vector<16x1024xf32>
    %c0_15 = arith.constant 0 : index
    %c0_16 = arith.constant 0 : index
    %19 = vector.load %arg7[%c0_15, %c0_16] : memref<1x1024xf32, #tpu.memory_space<vmem>>, vector<1x1024xf32>
    %20 = vector.broadcast %19 : vector<1x1024xf32> to vector<16x1024xf32>
    %21 = arith.addf %18, %20 : vector<16x1024xf32>
    %cst_17 = arith.constant 0.000000e+00 : f32
    %22 = vector.broadcast %cst_17 : f32 to vector<16x1024xf32>
    %23 = arith.maximumf %21, %22 : vector<16x1024xf32>
    %24 = arith.truncf %23 : vector<16x1024xf32> to vector<16x1024xbf16>
    %c0_18 = arith.constant 0 : index
    %c0_19 = arith.constant 0 : index
    %25 = vector.load %arg8[%c0_18, %c0_19] : memref<1024x896xbf16, #tpu.memory_space<vmem>>, vector<1024x896xbf16>
    %cst_20 = arith.constant dense<0.000000e+00> : vector<16x896xf32>
    %26 = tpu.matmul %24, %25, %cst_20 {dimension_numbers = #tpu.dot_dimension_numbers<[1], [0], [0], [1], [0, 0, 1, 1], [], []>} : vector<16x1024xbf16>, vector<1024x896xbf16>, vector<16x896xf32> -> vector<16x896xf32>
    %c0_21 = arith.constant 0 : index
    %c0_22 = arith.constant 0 : index
    %27 = vector.load %arg9[%c0_21, %c0_22] : memref<1x896xf32, #tpu.memory_space<vmem>>, vector<1x896xf32>
    %28 = vector.broadcast %27 : vector<1x896xf32> to vector<16x896xf32>
    %29 = arith.addf %26, %28 : vector<16x896xf32>
    %30 = math.tanh %29 : vector<16x896xf32>
    %31 = arith.truncf %30 : vector<16x896xf32> to vector<16x896xbf16>
    %c0_23 = arith.constant 0 : index
    %c0_24 = arith.constant 0 : index
    %32 = vector.load %arg10[%c0_23, %c0_24] : memref<16x896xbf16, #tpu.memory_space<vmem>>, vector<16x896xbf16>
    tpu.vector_store %arg10[%c0_23, %c0_24], %31 {strides = array<i32>} : memref<16x896xbf16, #tpu.memory_space<vmem>>, vector<16x896xbf16>,
    return
  }
  func.func @transform_0(%arg0: i32) -> (i32, i32) {
    %c0_i32 = arith.constant 0 : i32
    %c0_i32_0 = arith.constant 0 : i32
    return %arg0, %c0_i32 : i32, i32
  }
  func.func @transform_1(%arg0: i32) -> (i32, i32) {
    %c0_i32 = arith.constant 0 : i32
    %c0_i32_0 = arith.constant 0 : i32
    %c0_i32_1 = arith.constant 0 : i32
    return %c0_i32, %c0_i32_0 : i32, i32
  }
  func.func @transform_2(%arg0: i32) -> (i32, i32) {
    %c0_i32 = arith.constant 0 : i32
    %c0_i32_0 = arith.constant 0 : i32
    %c0_i32_1 = arith.constant 0 : i32
    return %c0_i32, %c0_i32_0 : i32, i32
  }
  func.func @transform_3(%arg0: i32) -> (i32, i32) {
    %c0_i32 = arith.constant 0 : i32
    %c0_i32_0 = arith.constant 0 : i32
    %c0_i32_1 = arith.constant 0 : i32
    return %c0_i32, %c0_i32_0 : i32, i32
  }
  func.func @transform_4(%arg0: i32) -> (i32, i32) {
    %c0_i32 = arith.constant 0 : i32
    %c0_i32_0 = arith.constant 0 : i32
    %c0_i32_1 = arith.constant 0 : i32
    return %c0_i32, %c0_i32_0 : i32, i32
  }
  func.func @transform_5(%arg0: i32) -> (i32, i32) {
    %c0_i32 = arith.constant 0 : i32
    %c0_i32_0 = arith.constant 0 : i32
    %c0_i32_1 = arith.constant 0 : i32
    return %c0_i32, %c0_i32_0 : i32, i32
  }
  func.func @transform_6(%arg0: i32) -> (i32, i32) {
    %c0_i32 = arith.constant 0 : i32
    %c0_i32_0 = arith.constant 0 : i32
    %c0_i32_1 = arith.constant 0 : i32
    return %c0_i32, %c0_i32_0 : i32, i32
  }
  func.func @transform_7(%arg0: i32) -> (i32, i32) {
    %c0_i32 = arith.constant 0 : i32
    %c0_i32_0 = arith.constant 0 : i32
    %c0_i32_1 = arith.constant 0 : i32
    return %c0_i32, %c0_i32_0 : i32, i32
  }
  func.func @transform_8(%arg0: i32) -> (i32, i32) {
    %c0_i32 = arith.constant 0 : i32
    %c0_i32_0 = arith.constant 0 : i32
    %c0_i32_1 = arith.constant 0 : i32
    return %c0_i32, %c0_i32_0 : i32, i32
  }
  func.func @transform_9(%arg0: i32) -> (i32, i32) {
    %c0_i32 = arith.constant 0 : i32
    %c0_i32_0 = arith.constant 0 : i32
    return %arg0, %c0_i32 : i32, i32
  }
}

</mosaic_0001>

<bundles_post_ra>
// kernel: tpu_custom_call.1
= control target key start
LH: loop header
LB: loop body
LE: loop exit
PB: predicated region body
PF: predicated region fallthrough
CT: control target
= control target key end

     0   :  { %14 = vsyncpa [#allocation3], 0  ;;  %s8758_s0 = inlined_call_operand.hbm [shape: bf16[16,128], index: 0, kind: input, shape index: {}]   ;;  %s8759_s1 = inlined_call_operand.hbm [shape: bf16[128,256], index: 1, kind: input, shape index: {}]   ;;  %s8760_s2 = inlined_call_operand.hbm [shape: f32[1,256], index: 2, kind: input, shape index: {}]   ;;  %s8761_s3 = inlined_call_operand.hbm [shape: bf16[256,512], index: 3, kind: input, shape index: {}]   ;;  %s8762_s4 = inlined_call_operand.hbm [shape: f32[1,512], index: 4, kind: input, shape index: {}]   ;;  %s8763_s5 = inlined_call_operand.hbm [shape: bf16[512,1024], index: 5, kind: input, shape index: {}]   ;;  %s8764_s6 = inlined_call_operand.hbm [shape: f32[1,1024], index: 6, kind: input, shape index: {}]   ;;  %s8765_s7 = inlined_call_operand.hbm [shape: bf16[1024,896], index: 7, kind: input, shape index: {}]   ;;  %s8766_s8 = inlined_call_operand.hbm [shape: f32[1,896], index: 8, kind: input, shape index: {}]   ;;  %s8767_s9 = inlined_call_operand.hbm [shape: bf16[16,896], index: 9, kind: output, shape index: {}]  }
   0x1   :  { %15 = vsyncpa [#allocation6], 0 }
   0x2   :  { %16 = vsyncpa [#allocation9], 0 }
   0x3   :  { %17 = vsyncpa [#allocation12], 0 }
   0x4   :  { %18 = vsyncpa [#allocation15], 0 }
   0x5   :  { %19 = vsyncpa [#allocation4], 0  ;;  %s8394_s30 = smov [#allocation5]   ;;  %s8162_s13 = scalar_lea.hbm %s8759_s1, 2048 }
   0x6   :  { %s37_s10 = sshll.u32 %s8394_s30, 4  ;;  %p8163_p0 = scmp.ne.s32.totalorder %s8759_s1, %s8162_s13  ;;  %s38_s10 = int_to_ptr.vmem [resolvable:$true] %s37_s10 }
   0x7   :  { %p8166_p1 = scmp.lt.u32.totalorder %s8162_s13, %s8759_s1 }
   0x9   :  { %p8168_p2 = pnand %p8166_p1, %p8163_p0 }
   0xb   :  { %8171 = shalt.err (!%p8168_p2)
}
   0xc   :  { %s8172_s18 = scalar_lea.vmem %s38_s10, 2048  ;;  %p8177_p4 = scmp.lt.s32.totalorder %s38_s10, %s38_s10 }
   0xd   :  { %p8173_p3 = scmp.ne.s32.totalorder %s38_s10, %s8172_s18  ;;  %p8178_p5 = scmp.lt.s32.totalorder %s8172_s18, %s8172_s18 }
   0xf   :  { %p8179_p6 = por %p8178_p5, %p8177_p4 }
  0x11   :  { %p8180_p7 = pnand %p8179_p6, %p8173_p3 }
  0x13   :  { %8183 = shalt.err (!%p8180_p7)
}
  0x14   :  { %s8395_s19 = smov 128   ;;  %s8396_s20 = smov 8  }
  0x15   :  { %43 = dma.hbm_to_vmem [thread:$0]  %s8759_s1, 2048, %s38_s10, [#allocation6], %s8395_s19, %s8395_s19, %s8396_s20  }
  0x16   :  { %s8397_s23 = smov [#allocation8]   ;;  %s8184_s27 = scalar_lea.hbm %s8761_s3, 8192 }
  0x17   :  { %s59_s24 = sshll.u32 %s8397_s23, 4  ;;  %p8185_p8 = scmp.ne.s32.totalorder %s8761_s3, %s8184_s27  ;;  %s60_s24 = int_to_ptr.vmem [resolvable:$true] %s59_s24 }
  0x18   :  { %p8188_p9 = scmp.lt.u32.totalorder %s8184_s27, %s8761_s3 }
  0x1a   :  { %p8190_p10 = pnand %p8188_p9, %p8185_p8 }
  0x1c   :  { %8193 = shalt.err (!%p8190_p10)
}
  0x1d   :  { %s8194_s12 = scalar_lea.vmem %s60_s24, 8192  ;;  %p8199_p12 = scmp.lt.s32.totalorder %s60_s24, %s60_s24 }
  0x1e   :  { %p8195_p11 = scmp.ne.s32.totalorder %s60_s24, %s8194_s12  ;;  %p8200_p13 = scmp.lt.s32.totalorder %s8194_s12, %s8194_s12 }
  0x20   :  { %p8201_p0 = por %p8200_p13, %p8199_p12 }
  0x22   :  { %p8202_p1 = pnand %p8201_p0, %p8195_p11 }
  0x24   :  { %8205 = shalt.err (!%p8202_p1)
}
  0x25   :  { %s8398_s1 = smov 256   ;;  %s8399_s10 = smov 16  }
  0x26   :  { %65 = dma.hbm_to_vmem [thread:$0]  %s8761_s3, 8192, %s60_s24, [#allocation9], %s8398_s1, %s8398_s1, %s8399_s10  }
  0x27   :  { %s8400_s15 = smov [#allocation11]   ;;  %s8206_s19 = scalar_lea.hbm %s8763_s5, 32768 }
  0x28   :  { %s81_s16 = sshll.u32 %s8400_s15, 4  ;;  %p8207_p2 = scmp.ne.s32.totalorder %s8763_s5, %s8206_s19  ;;  %s82_s16 = int_to_ptr.vmem [resolvable:$true] %s81_s16 }
  0x29   :  { %p8210_p3 = scmp.lt.u32.totalorder %s8206_s19, %s8763_s5 }
  0x2b   :  { %p8212_p4 = pnand %p8210_p3, %p8207_p2 }
  0x2d   :  { %8215 = shalt.err (!%p8212_p4)
}
  0x2e   :  { %s8216_s25 = scalar_lea.vmem %s82_s16, 32768  ;;  %p8221_p6 = scmp.lt.s32.totalorder %s82_s16, %s82_s16 }
  0x2f   :  { %p8217_p5 = scmp.ne.s32.totalorder %s82_s16, %s8216_s25  ;;  %p8222_p7 = scmp.lt.s32.totalorder %s8216_s25, %s8216_s25 }
  0x31   :  { %p8223_p8 = por %p8222_p7, %p8221_p6 }
  0x33   :  { %p8224_p9 = pnand %p8223_p8, %p8217_p5 }
  0x35   :  { %8227 = shalt.err (!%p8224_p9)
}
  0x36   :  { %s8401_s3 = smov 512   ;;  %s8402_s24 = smov 32  }
  0x37   :  { %87 = dma.hbm_to_vmem [thread:$0]  %s8763_s5, 32768, %s82_s16, [#allocation12], %s8401_s3, %s8401_s3, %s8402_s24  }
  0x38   :  { %s8403_s28 = smov [#allocation14]   ;;  %s8228_s12 = scalar_lea.hbm %s8765_s7, 57344 }
  0x39   :  { %s103_s29 = sshll.u32 %s8403_s28, 4  ;;  %p8229_p10 = scmp.ne.s32.totalorder %s8765_s7, %s8228_s12  ;;  %s104_s29 = int_to_ptr.vmem [resolvable:$true] %s103_s29 }
  0x3a   :  { %p8232_p11 = scmp.lt.u32.totalorder %s8228_s12, %s8765_s7 }
  0x3c   :  { %p8234_p12 = pnand %p8232_p11, %p8229_p10 }
  0x3e   :  { %8237 = shalt.err (!%p8234_p12)
}
  0x3f   :  { %s8238_s15 = scalar_lea.vmem %s104_s29, 57344  ;;  %p8243_p0 = scmp.lt.s32.totalorder %s104_s29, %s104_s29 }
  0x40   :  { %p8239_p13 = scmp.ne.s32.totalorder %s104_s29, %s8238_s15  ;;  %p8244_p1 = scmp.lt.s32.totalorder %s8238_s15, %s8238_s15 }
  0x42   :  { %p8245_p2 = por %p8244_p1, %p8243_p0 }
  0x44   :  { %p8246_p3 = pnand %p8245_p2, %p8239_p13 }
  0x46   :  { %8249 = shalt.err (!%p8246_p3)
}
  0x47   :  { %s8404_s5 = smov 448   ;;  %s8405_s16 = smov 28  }
  0x48   :  { %109 = dma.hbm_to_vmem [thread:$0]  %s8765_s7, 57344, %s104_s29, [#allocation15], %s8404_s5, %s8404_s5, %s8405_s16  }
  0x49   :  { %s8406_s19 = smov [#allocation2]   ;;  %s8250_s23 = scalar_lea.hbm %s8758_s0, 128 }
  0x4a   :  { %s25_s20 = sshll.u32 %s8406_s19, 4  ;;  %p8251_p4 = scmp.ne.s32.totalorder %s8758_s0, %s8250_s23  ;;  %s26_s20 = int_to_ptr.vmem [resolvable:$true] %s25_s20 }
  0x4b   :  { %p8254_p5 = scmp.lt.u32.totalorder %s8250_s23, %s8758_s0 }
  0x4d   :  { %p8256_p6 = pnand %p8254_p5, %p8251_p4 }
  0x4f   :  { %8259 = shalt.err (!%p8256_p6)
}
  0x50   :  { %s8260_s27 = scalar_lea.vmem %s26_s20, 128  ;;  %p8265_p8 = scmp.lt.s32.totalorder %s26_s20, %s26_s20 }
  0x51   :  { %p8261_p7 = scmp.ne.s32.totalorder %s26_s20, %s8260_s27  ;;  %p8266_p9 = scmp.lt.s32.totalorder %s8260_s27, %s8260_s27 }
  0x53   :  { %p8267_p10 = por %p8266_p9, %p8265_p8 }
  0x55   :  { %p8268_p11 = pnand %p8267_p10, %p8261_p7 }
  0x57   :  { %8271 = shalt.err (!%p8268_p11)
}
  0x58   :  { %s8407_s7 = smov 64   ;;  %s8408_s28 = smov 4  }
  0x59   :  { %31 = dma.hbm_to_vmem [thread:$0]  %s8758_s0, 128, %s26_s20, [#allocation3], %s8407_s7, %s8407_s7, %s8408_s28  }
  0x5a   :  { %s8409_s11 = smov [#allocation7]   ;;  %s8410_s1 = smov [#allocation10]  }
  0x5b   :  { %s50_s12 = sshll.u32 %s8409_s11, 4  ;;  %s72_s10 = sshll.u32 %s8410_s1, 4  ;;  %s51_s12 = int_to_ptr.vmem [resolvable:$true] %s50_s12  ;;  %s73_s10 = int_to_ptr.vmem [resolvable:$true] %s72_s10 }
  0x5c   :  { %s8272_s15 = scalar_lea.hbm %s8760_s2, 32 }
  0x5d   :  { %p8273_p12 = scmp.ne.s32.totalorder %s8760_s2, %s8272_s15  ;;  %p8276_p13 = scmp.lt.u32.totalorder %s8272_s15, %s8760_s2 }
  0x5f   :  { %p8278_p0 = pnand %p8276_p13, %p8273_p12 }
  0x61   :  { %8281 = shalt.err (!%p8278_p0)
}
  0x62   :  { %s8282_s0 = scalar_lea.vmem %s51_s12, 32  ;;  %p8287_p2 = scmp.lt.s32.totalorder %s51_s12, %s51_s12 }
  0x63   :  { %p8283_p1 = scmp.ne.s32.totalorder %s51_s12, %s8282_s0  ;;  %p8288_p3 = scmp.lt.s32.totalorder %s8282_s0, %s8282_s0 }
  0x65   :  { %p8289_p4 = por %p8288_p3, %p8287_p2 }
  0x67   :  { %p8290_p5 = pnand %p8289_p4, %p8283_p1 }
  0x69   :  { %8293 = shalt.err (!%p8290_p5)
}
  0x6a   :  { %53 = dma.hbm_to_vmem [thread:$0]  %s8760_s2, 32, %s51_s12, [#allocation6]  }
  0x6b   :  { %s8294_s3 = scalar_lea.hbm %s8762_s4, 64 }
  0x6c   :  { %p8295_p6 = scmp.ne.s32.totalorder %s8762_s4, %s8294_s3  ;;  %p8298_p7 = scmp.lt.u32.totalorder %s8294_s3, %s8762_s4 }
  0x6e   :  { %p8300_p8 = pnand %p8298_p7, %p8295_p6 }
  0x70   :  { %8303 = shalt.err (!%p8300_p8)
}
  0x71   :  { %s8304_s28 = scalar_lea.vmem %s73_s10, 64  ;;  %p8309_p10 = scmp.lt.s32.totalorder %s73_s10, %s73_s10 }
  0x72   :  { %p8305_p9 = scmp.ne.s32.totalorder %s73_s10, %s8304_s28  ;;  %p8310_p11 = scmp.lt.s32.totalorder %s8304_s28, %s8304_s28 }
  0x74   :  { %p8311_p12 = por %p8310_p11, %p8309_p10 }
  0x76   :  { %p8312_p13 = pnand %p8311_p12, %p8305_p9 }
  0x78   :  { %8315 = shalt.err (!%p8312_p13)
}
  0x79   :  { %75 = dma.hbm_to_vmem [thread:$0]  %s8762_s4, 64, %s73_s10, [#allocation9]  }
  0x7a   :  { %s8411_s30 = smov [#allocation13]   ;;  %s8412_s12 = smov [#allocation16]  }
  0x7b   :  { %s94_s11 = sshll.u32 %s8411_s30, 4  ;;  %s116_s1 = sshll.u32 %s8412_s12, 4  ;;  %s95_s11 = int_to_ptr.vmem [resolvable:$true] %s94_s11  ;;  %s117_s1 = int_to_ptr.vmem [resolvable:$true] %s116_s1 }
  0x7c   :  { %s8316_s15 = scalar_lea.hbm %s8764_s6, 128 }
  0x7d   :  { %p8317_p0 = scmp.ne.s32.totalorder %s8764_s6, %s8316_s15  ;;  %p8320_p1 = scmp.lt.u32.totalorder %s8316_s15, %s8764_s6 }
  0x7f   :  { %p8322_p2 = pnand %p8320_p1, %p8317_p0 }
  0x81   :  { %8325 = shalt.err (!%p8322_p2)
}
  0x82   :  { %s8326_s4 = scalar_lea.vmem %s95_s11, 128  ;;  %p8331_p4 = scmp.lt.s32.totalorder %s95_s11, %s95_s11 }
  0x83   :  { %p8327_p3 = scmp.ne.s32.totalorder %s95_s11, %s8326_s4  ;;  %p8332_p5 = scmp.lt.s32.totalorder %s8326_s4, %s8326_s4 }
  0x85   :  { %p8333_p6 = por %p8332_p5, %p8331_p4 }
  0x87   :  { %p8334_p7 = pnand %p8333_p6, %p8327_p3 }
  0x89   :  { %8337 = shalt.err (!%p8334_p7)
}
  0x8a   :  { %97 = dma.hbm_to_vmem [thread:$0]  %s8764_s6, 128, %s95_s11, [#allocation12]  }
  0x8b   :  { %s8338_s23 = scalar_lea.hbm %s8766_s8, 112 }
  0x8c   :  { %p8339_p8 = scmp.ne.s32.totalorder %s8766_s8, %s8338_s23  ;;  %p8342_p9 = scmp.lt.u32.totalorder %s8338_s23, %s8766_s8 }
  0x8e   :  { %p8344_p10 = pnand %p8342_p9, %p8339_p8 }
  0x90   :  { %8347 = shalt.err (!%p8344_p10)
}
  0x91   :  { %s8348_s27 = scalar_lea.vmem %s117_s1, 112  ;;  %s8352_s7 = scalar_lea.vmem %s117_s1, 128 }
  0x92   :  { %p8349_p11 = scmp.ne.s32.totalorder %s117_s1, %s8348_s27  ;;  %p8353_p12 = scmp.lt.s32.totalorder %s117_s1, %s117_s1 }
  0x93   :  { %p8354_p13 = scmp.lt.s32.totalorder %s8352_s7, %s8348_s27 }
  0x95   :  { %p8355_p0 = por %p8354_p13, %p8353_p12 }
  0x97   :  { %p8356_p1 = pnand %p8355_p0, %p8349_p11 }
  0x99   :  { %8359 = shalt.err (!%p8356_p1)
}
  0x9a   :  { %119 = dma.hbm_to_vmem [thread:$0]  %s8766_s8, 112, %s117_s1, [#allocation15]  }
  0x9b   :  { %8382 = dma.done.wait [#allocation3], 128  }
  0x9c   :  { %8383 = vsyncadd [#allocation3], 4294967168 }
  0x9d   :  { %8384 = dma.done.wait [#allocation6], 2080  }
  0x9e   :  { %8385 = vsyncadd [#allocation6], 4294965216 }
  0x9f   :  { %8386 = dma.done.wait [#allocation9], 8256  }
  0xa0   :  { %8387 = vsyncadd [#allocation9], 4294959040 }
  0xa1   :  { %8388 = dma.done.wait [#allocation12], 32896  }
  0xa2   :  { %8389 = vsyncadd [#allocation12], 4294934400 }
  0xa3   :  { %8390 = dma.done.wait [#allocation15], 57456  }
  0xa4   :  { %8391 = vsyncadd [#allocation15], 4294909840  ;;  %v8413_v0 = vmov 0   ;;  %v7373_v1 = vld [vmem:[#allocation5 + $0x4] ss:$8 sps:$4 sm:$0xff]   ;;  %v7397_v18 = vld [vmem:[#allocation2] sm:$0xff]  }
  0xa5   :  { %296 = vmatprep.mubr.bf16.mxu0 %v8413_v0  ;;  %v7375_v2 = vld [vmem:[#allocation5] ss:$8 sps:$4 sm:$0xff]   ;;  %264 = vmatprep.subr.bf16.mxu0 %v7373_v1  ;;  %v7376_v3 = vld [vmem:[#allocation5 + $0x14] ss:$8 sps:$4 sm:$0xff]   ;;  %v7378_v4 = vld [vmem:[#allocation5 + $0x10] ss:$8 sps:$4 sm:$0xff]  }
  0xa6   :  { %265 = vmatpush1.bf16.msra.mxu0 %v7375_v2  ;;  %v7379_v5 = vld [vmem:[#allocation5 + $0x24] ss:$8 sps:$4 sm:$0xff]   ;;  %v7381_v6 = vld [vmem:[#allocation5 + $0x20] ss:$8 sps:$4 sm:$0xff]   ;;  %v7382_v7 = vld [vmem:[#allocation5 + $0x34] ss:$8 sps:$4 sm:$0xff]  }
  0xa7   :  { %266 = vmatprep.subr.bf16.mxu0 %v7376_v3  ;;  %v7384_v8 = vld [vmem:[#allocation5 + $0x30] ss:$8 sps:$4 sm:$0xff]   ;;  %v7385_v9 = vld [vmem:[#allocation5 + $0x44] ss:$8 sps:$4 sm:$0xff]   ;;  %v7387_v10 = vld [vmem:[#allocation5 + $0x40] ss:$8 sps:$4 sm:$0xff]  }
  0xa8   :  { %v7388_v11 = vld [vmem:[#allocation5 + $0x54] ss:$8 sps:$4 sm:$0xff]   ;;  %v7390_v12 = vld [vmem:[#allocation5 + $0x50] ss:$8 sps:$4 sm:$0xff]   ;;  %v7391_v13 = vld [vmem:[#allocation5 + $0x64] ss:$8 sps:$4 sm:$0xff]  }
  0xa9   :  { %v7393_v14 = vld [vmem:[#allocation5 + $0x60] ss:$8 sps:$4 sm:$0xff]   ;;  %v7394_v15 = vld [vmem:[#allocation5 + $0x74] ss:$8 sps:$4 sm:$0xff]   ;;  %v7396_v16 = vld [vmem:[#allocation5 + $0x70] ss:$8 sps:$4 sm:$0xff]  }
  0xaa   :  { %267 = vmatpush1.bf16.msra.mxu0 %v7378_v4  ;;  %v7400_v17 = vld [vmem:[#allocation8 + $0x4] ss:$16 sps:$4 sm:$0xff]   ;;  %v7398_v19 = vld [vmem:[#allocation8] ss:$16 sps:$4 sm:$0xff]   ;;  %v7448_v50 = vld [vmem:[#allocation8 + $0xc] ss:$16 sps:$4 sm:$0xff]  }
  0xab   :  { %268 = vmatprep.subr.bf16.mxu0 %v7379_v5  ;;  %v7403_v20 = vld [vmem:[#allocation8 + $0x24] ss:$16 sps:$4 sm:$0xff]   ;;  %v7401_v21 = vld [vmem:[#allocation8 + $0x20] ss:$16 sps:$4 sm:$0xff]   ;;  %s8414_s8 = smov [#allocation17]  }
  0xac   :  { %v7406_v22 = vld [vmem:[#allocation8 + $0x44] ss:$16 sps:$4 sm:$0xff]   ;;  %v7404_v23 = vld [vmem:[#allocation8 + $0x40] ss:$16 sps:$4 sm:$0xff]   ;;  %s6367_s2 = sshll.u32 %s8414_s8, 4  ;;  %s6368_s2 = int_to_ptr.vmem [resolvable:$true] %s6367_s2 }
  0xad   :  { %v7409_v24 = vld [vmem:[#allocation8 + $0x64] ss:$16 sps:$4 sm:$0xff]   ;;  %v7407_v25 = vld [vmem:[#allocation8 + $0x60] ss:$16 sps:$4 sm:$0xff]   ;;  %s8360_s29 = scalar_lea.vmem %s6368_s2, 896  ;;  %p8365_p3 = scmp.lt.s32.totalorder %s6368_s2, %s6368_s2 }
  0xae   :  { %269 = vmatpush1.bf16.msra.mxu0 %v7381_v6  ;;  %v7412_v26 = vld [vmem:[#allocation8 + $0x84] ss:$16 sps:$4 sm:$0xff]   ;;  %v7410_v27 = vld [vmem:[#allocation8 + $0x80] ss:$16 sps:$4 sm:$0xff]   ;;  %p8361_p2 = scmp.ne.s32.totalorder %s6368_s2, %s8360_s29  ;;  %p8366_p4 = scmp.lt.s32.totalorder %s8360_s29, %s8360_s29 }
  0xaf   :  { %270 = vmatprep.subr.bf16.mxu0 %v7382_v7  ;;  %v7415_v28 = vld [vmem:[#allocation8 + $0xa4] ss:$16 sps:$4 sm:$0xff]   ;;  %v7413_v29 = vld [vmem:[#allocation8 + $0xa0] ss:$16 sps:$4 sm:$0xff]  }
  0xb0   :  { %v7418_v30 = vld [vmem:[#allocation8 + $0xc4] ss:$16 sps:$4 sm:$0xff]   ;;  %v7416_v31 = vld [vmem:[#allocation8 + $0xc0] ss:$16 sps:$4 sm:$0xff]   ;;  %p8367_p5 = por %p8366_p4, %p8365_p3 }
  0xb1   :  { %v7421_v32 = vld [vmem:[#allocation8 + $0xe4] ss:$16 sps:$4 sm:$0xff]   ;;  %v7419_v33 = vld [vmem:[#allocation8 + $0xe0] ss:$16 sps:$4 sm:$0xff]  }
  0xb2   :  { %271 = vmatpush1.bf16.msra.mxu0 %v7384_v8  ;;  %v7424_v34 = vld [vmem:[#allocation8 + $0x104] ss:$16 sps:$4 sm:$0xff]   ;;  %v7422_v35 = vld [vmem:[#allocation8 + $0x100] ss:$16 sps:$4 sm:$0xff]   ;;  %p8368_p6 = pnand %p8367_p5, %p8361_p2 }
  0xb3   :  { %272 = vmatprep.subr.bf16.mxu0 %v7385_v9  ;;  %v7427_v36 = vld [vmem:[#allocation8 + $0x124] ss:$16 sps:$4 sm:$0xff]   ;;  %v7425_v37 = vld [vmem:[#allocation8 + $0x120] ss:$16 sps:$4 sm:$0xff]  }
  0xb4   :  { %v7430_v38 = vld [vmem:[#allocation8 + $0x144] ss:$16 sps:$4 sm:$0xff]   ;;  %v7428_v39 = vld [vmem:[#allocation8 + $0x140] ss:$16 sps:$4 sm:$0xff]  }
  0xb5   :  { %v7433_v40 = vld [vmem:[#allocation8 + $0x164] ss:$16 sps:$4 sm:$0xff]   ;;  %v7431_v41 = vld [vmem:[#allocation8 + $0x160] ss:$16 sps:$4 sm:$0xff]  }
  0xb6   :  { %273 = vmatpush1.bf16.msra.mxu0 %v7387_v10  ;;  %v7436_v42 = vld [vmem:[#allocation8 + $0x184] ss:$16 sps:$4 sm:$0xff]   ;;  %v7434_v43 = vld [vmem:[#allocation8 + $0x180] ss:$16 sps:$4 sm:$0xff]  }
  0xb7   :  { %274 = vmatprep.subr.bf16.mxu0 %v7388_v11  ;;  %v7439_v44 = vld [vmem:[#allocation8 + $0x1a4] ss:$16 sps:$4 sm:$0xff]   ;;  %v7437_v45 = vld [vmem:[#allocation8 + $0x1a0] ss:$16 sps:$4 sm:$0xff]  }
  0xb8   :  { %v7442_v46 = vld [vmem:[#allocation8 + $0x1c4] ss:$16 sps:$4 sm:$0xff]   ;;  %v7440_v47 = vld [vmem:[#allocation8 + $0x1c0] ss:$16 sps:$4 sm:$0xff]  }
  0xb9   :  { %v7445_v48 = vld [vmem:[#allocation8 + $0x1e4] ss:$16 sps:$4 sm:$0xff]   ;;  %v7443_v49 = vld [vmem:[#allocation8 + $0x1e0] ss:$16 sps:$4 sm:$0xff]  }
  0xba   :  { %275 = vmatpush1.bf16.msra.mxu0 %v7390_v12  ;;  %v817_v51 = vld [vmem:[#allocation11] sm:$0xff] }
  0xbb   :  { %276 = vmatprep.subr.bf16.mxu0 %v7391_v13  ;;  %v821_v52 = vld [vmem:[#allocation11 + $0x20] sm:$0xff] }
  0xbc   :  { %v6465_v53 = vcombine.high %v817_v51, %v821_v52  ;;  %v6464_v54 = vcombine.low %v817_v51, %v821_v52  ;;  %v825_v55 = vld [vmem:[#allocation11 + $0x40] sm:$0xff] }
  0xbd   :  { %v829_v56 = vld [vmem:[#allocation11 + $0x60] sm:$0xff] }
  0xbe   :  { %277 = vmatpush1.bf16.msra.mxu0 %v7393_v14  ;;  %v6473_v57 = vcombine.high %v825_v55, %v829_v56  ;;  %2395 = vmatprep.subr.bf16.mxu1 %v6465_v53  ;;  %v6472_v58 = vcombine.low %v825_v55, %v829_v56  ;;  %v833_v59 = vld [vmem:[#allocation11 + $0x80] sm:$0xff] }
  0xbf   :  { %278 = vmatprep.subr.bf16.mxu0 %v7394_v15  ;;  %2396 = vmatpush1.bf16.msra.mxu1 %v6464_v54  ;;  %v837_v60 = vld [vmem:[#allocation11 + $0xa0] sm:$0xff] }
  0xc0   :  { %2397 = vmatprep.subr.bf16.mxu1 %v6473_v57  ;;  %v6481_v61 = vcombine.high %v833_v59, %v837_v60  ;;  %v6480_v62 = vcombine.low %v833_v59, %v837_v60  ;;  %v841_v63 = vld [vmem:[#allocation11 + $0xc0] sm:$0xff] }
  0xc1   :  { %v845_v0 = vld [vmem:[#allocation11 + $0xe0] sm:$0xff] }
  0xc2   :  { %279 = vmatpush1.bf16.msra.mxu0 %v7396_v16  ;;  %v6489_v1 = vcombine.high %v841_v63, %v845_v0  ;;  %v6488_v2 = vcombine.low %v841_v63, %v845_v0  ;;  %v849_v3 = vld [vmem:[#allocation11 + $0x100] sm:$0xff] }
  0xc3   :  { %719 = vmatprep.subr.bf16.mxu0 %v7400_v17  ;;  %2398 = vmatpush1.bf16.msra.mxu1 %v6472_v58  ;;  %v853_v4 = vld [vmem:[#allocation11 + $0x120] sm:$0xff] }
  0xc4   :  { %2399 = vmatprep.subr.bf16.mxu1 %v6481_v61  ;;  %v6497_v5 = vcombine.high %v849_v3, %v853_v4  ;;  %v6496_v6 = vcombine.low %v849_v3, %v853_v4  ;;  %v857_v7 = vld [vmem:[#allocation11 + $0x140] sm:$0xff]  ;;  %v7454_v3 = vld [vmem:[#allocation8 + $0x4c] ss:$16 sps:$4 sm:$0xff]  }
  0xc5   :  { %297 = vmatmul.mubr.bf16.vlgmr.msra.gmra.mrb[0].mxu0 %v7397_v18  ;;  %v861_v8 = vld [vmem:[#allocation11 + $0x160] sm:$0xff] }
  0xc6   :  { %720 = vmatpush1.bf16.msra.mxu0 %v7398_v19  ;;  %v6505_v9 = vcombine.high %v857_v7, %v861_v8  ;;  %v6504_v10 = vcombine.low %v857_v7, %v861_v8  ;;  %v865_v11 = vld [vmem:[#allocation11 + $0x180] sm:$0xff]  ;;  %v7460_v7 = vld [vmem:[#allocation8 + $0x8c] ss:$16 sps:$4 sm:$0xff]  }
  0xc7   :  { %721 = vmatprep.subr.bf16.mxu0 %v7403_v20  ;;  %2400 = vmatpush1.bf16.msra.mxu1 %v6480_v62  ;;  %v869_v12 = vld [vmem:[#allocation11 + $0x1a0] sm:$0xff] }
  0xc8   :  { %2401 = vmatprep.subr.bf16.mxu1 %v6489_v1  ;;  %v6513_v13 = vcombine.high %v865_v11, %v869_v12  ;;  %v6512_v14 = vcombine.low %v865_v11, %v869_v12  ;;  %v873_v15 = vld [vmem:[#allocation11 + $0x1c0] sm:$0xff]  ;;  %v7451_v1 = vld [vmem:[#allocation8 + $0x2c] ss:$16 sps:$4 sm:$0xff]  }
  0xc9   :  { %v877_v16 = vld [vmem:[#allocation11 + $0x1e0] sm:$0xff]  ;;  %v7466_v11 = vld [vmem:[#allocation8 + $0xcc] ss:$16 sps:$4 sm:$0xff]  }
  0xca   :  { %722 = vmatpush1.bf16.msra.mxu0 %v7401_v21  ;;  %v6521_v17 = vcombine.high %v873_v15, %v877_v16  ;;  %v6520_v18 = vcombine.low %v873_v15, %v877_v16  ;;  %v881_v19 = vld [vmem:[#allocation11 + $0x200] sm:$0xff]  ;;  %v7472_v15 = vld [vmem:[#allocation8 + $0x10c] ss:$16 sps:$4 sm:$0xff]  }
  0xcb   :  { %723 = vmatprep.subr.bf16.mxu0 %v7406_v22  ;;  %2402 = vmatpush1.bf16.msra.mxu1 %v6488_v2  ;;  %v885_v20 = vld [vmem:[#allocation11 + $0x220] sm:$0xff] }
  0xcc   :  { %2403 = vmatprep.subr.bf16.mxu1 %v6497_v5  ;;  %v6529_v21 = vcombine.high %v881_v19, %v885_v20  ;;  %v6528_v22 = vcombine.low %v881_v19, %v885_v20  ;;  %v7446_v0 = vld [vmem:[#allocation8 + $0x8] ss:$16 sps:$4 sm:$0xff]   ;;  %v7457_v5 = vld [vmem:[#allocation8 + $0x6c] ss:$16 sps:$4 sm:$0xff]  }
  0xcd   :  { %v7449_v2 = vld [vmem:[#allocation8 + $0x28] ss:$16 sps:$4 sm:$0xff]   ;;  %v7478_v19 = vld [vmem:[#allocation8 + $0x14c] ss:$16 sps:$4 sm:$0xff]  }
  0xce   :  { %724 = vmatpush1.bf16.msra.mxu0 %v7404_v23  ;;  %v889_v23 = vld [vmem:[#allocation11 + $0x240] sm:$0xff] }
  0xcf   :  { %725 = vmatprep.subr.bf16.mxu0 %v7409_v24  ;;  %2404 = vmatpush1.bf16.msra.mxu1 %v6496_v6  ;;  %v893_v24 = vld [vmem:[#allocation11 + $0x260] sm:$0xff] }
  0xd0   :  { %2405 = vmatprep.subr.bf16.mxu1 %v6505_v9  ;;  %v7452_v4 = vld [vmem:[#allocation8 + $0x48] ss:$16 sps:$4 sm:$0xff]   ;;  %v7463_v9 = vld [vmem:[#allocation8 + $0xac] ss:$16 sps:$4 sm:$0xff]  }
  0xd1   :  { %v7455_v6 = vld [vmem:[#allocation8 + $0x68] ss:$16 sps:$4 sm:$0xff]  }
  0xd2   :  { %726 = vmatpush1.bf16.msra.mxu0 %v7407_v25  ;;  %v6537_v25 = vcombine.high %v889_v23, %v893_v24  ;;  %v7458_v8 = vld [vmem:[#allocation8 + $0x88] ss:$16 sps:$4 sm:$0xff]  }
  0xd3   :  { %727 = vmatprep.subr.bf16.mxu0 %v7412_v26  ;;  %2406 = vmatpush1.bf16.msra.mxu1 %v6504_v10  ;;  %v6536_v26 = vcombine.low %v889_v23, %v893_v24  ;;  %v7461_v10 = vld [vmem:[#allocation8 + $0xa8] ss:$16 sps:$4 sm:$0xff]   ;;  %v7484_v23 = vld [vmem:[#allocation8 + $0x18c] ss:$16 sps:$4 sm:$0xff]  }
  0xd4   :  { %2407 = vmatprep.subr.bf16.mxu1 %v6513_v13  ;;  %v7464_v12 = vld [vmem:[#allocation8 + $0xc8] ss:$16 sps:$4 sm:$0xff]   ;;  %v7469_v13 = vld [vmem:[#allocation8 + $0xec] ss:$16 sps:$4 sm:$0xff]  }
  0xd5   :  { %v7470_v16 = vld [vmem:[#allocation8 + $0x108] ss:$16 sps:$4 sm:$0xff]  }
  0xd6   :  { %728 = vmatpush1.bf16.msra.mxu0 %v7410_v27  ;;  %v897_v27 = vld [vmem:[#allocation11 + $0x280] sm:$0xff] }
  0xd7   :  { %729 = vmatprep.subr.bf16.mxu0 %v7415_v28  ;;  %2408 = vmatpush1.bf16.msra.mxu1 %v6512_v14  ;;  %v901_v28 = vld [vmem:[#allocation11 + $0x2a0] sm:$0xff] }
  0xd8   :  { %2409 = vmatprep.subr.bf16.mxu1 %v6521_v17  ;;  %v7467_v14 = vld [vmem:[#allocation8 + $0xe8] ss:$16 sps:$4 sm:$0xff]   ;;  %v7475_v17 = vld [vmem:[#allocation8 + $0x12c] ss:$16 sps:$4 sm:$0xff]  }
  0xd9   :  { %v7476_v20 = vld [vmem:[#allocation8 + $0x148] ss:$16 sps:$4 sm:$0xff]  }
  0xda   :  { %730 = vmatpush1.bf16.msra.mxu0 %v7413_v29  ;;  %v168_v29 = vlaneseq  ;;  %v7482_v24 = vld [vmem:[#allocation8 + $0x188] ss:$16 sps:$4 sm:$0xff]  }
  0xdb   :  { %731 = vmatprep.subr.bf16.mxu0 %v7418_v30  ;;  %2410 = vmatpush1.bf16.msra.mxu1 %v6520_v18  ;;  %v6545_v30 = vcombine.high %v897_v27, %v901_v28  ;;  %v7473_v18 = vld [vmem:[#allocation8 + $0x128] ss:$16 sps:$4 sm:$0xff]  }
  0xdc   :  { %2411 = vmatprep.subr.bf16.mxu1 %v6529_v21  ;;  %v7481_v21 = vld [vmem:[#allocation8 + $0x16c] ss:$16 sps:$4 sm:$0xff]  }
  0xde   :  { %732 = vmatpush1.bf16.msra.mxu0 %v7416_v31  ;;  %v6544_v31 = vcombine.low %v897_v27, %v901_v28  ;;  %v7490_v27 = vld [vmem:[#allocation8 + $0x1cc] ss:$16 sps:$4 sm:$0xff]   ;;  %v7488_v28 = vld [vmem:[#allocation8 + $0x1c8] ss:$16 sps:$4 sm:$0xff]  }
  0xdf   :  { %733 = vmatprep.subr.bf16.mxu0 %v7421_v32  ;;  %2412 = vmatpush1.bf16.msra.mxu1 %v6528_v22  ;;  %v905_v32 = vld [vmem:[#allocation11 + $0x2c0] sm:$0xff] }
  0xe0   :  { %2413 = vmatprep.subr.bf16.mxu1 %v6537_v25  ;;  %v7479_v22 = vld [vmem:[#allocation8 + $0x168] ss:$16 sps:$4 sm:$0xff]   ;;  %v7487_v25 = vld [vmem:[#allocation8 + $0x1ac] ss:$16 sps:$4 sm:$0xff]  }
  0xe2   :  { %734 = vmatpush1.bf16.msra.mxu0 %v7419_v33  ;;  %v909_v33 = vld [vmem:[#allocation11 + $0x2e0] sm:$0xff] }
  0xe3   :  { %735 = vmatprep.subr.bf16.mxu0 %v7424_v34  ;;  %2414 = vmatpush1.bf16.msra.mxu1 %v6536_v26  ;;  %v8576_v34 = vshrl.u32 %v168_v29, 7  ;;  %v7485_v26 = vld [vmem:[#allocation8 + $0x1a8] ss:$16 sps:$4 sm:$0xff]   ;;  %v7493_v29 = vld [vmem:[#allocation8 + $0x1ec] ss:$16 sps:$4 sm:$0xff]  }
  0xe4   :  { %2415 = vmatprep.subr.bf16.mxu1 %v6545_v30  ;;  %v818_v30 = vld [vmem:[#allocation11 + $0x8] sm:$0xff] }
  0xe6   :  { %736 = vmatpush1.bf16.msra.mxu0 %v7422_v35  ;;  %v6553_v35 = vcombine.high %v905_v32, %v909_v33 }
  0xe7   :  { %737 = vmatprep.subr.bf16.mxu0 %v7427_v36  ;;  %2416 = vmatpush1.bf16.msra.mxu1 %v6544_v31  ;;  %v6552_v36 = vcombine.low %v905_v32, %v909_v33  ;;  %v822_v31 = vld [vmem:[#allocation11 + $0x28] sm:$0xff]  ;;  %v7491_v32 = vld [vmem:[#allocation8 + $0x1e8] ss:$16 sps:$4 sm:$0xff]  }
  0xe8   :  { %2417 = vmatprep.subr.bf16.mxu1 %v6553_v35  ;;  %v6467_v33 = vcombine.high %v818_v30, %v822_v31  ;;  %v826_v35 = vld [vmem:[#allocation11 + $0x48] sm:$0xff] }
  0xea   :  { %738 = vmatpush1.bf16.msra.mxu0 %v7425_v37  ;;  %v913_v37 = vld [vmem:[#allocation11 + $0x300] sm:$0xff] }
  0xeb   :  { %739 = vmatprep.subr.bf16.mxu0 %v7430_v38  ;;  %v917_v38 = vld [vmem:[#allocation11 + $0x320] sm:$0xff]  ;;  %2418 = vmatpush1.bf16.msra.mxu1 %v6552_v36  ;;  %v830_v36 = vld [vmem:[#allocation11 + $0x68] sm:$0xff] }
  0xee   :  { %740 = vmatpush1.bf16.msra.mxu0 %v7428_v39  ;;  %v166_v39 = vld [vmem:[#allocation7] sm:$0x3] }
  0xef   :  { %741 = vmatprep.subr.bf16.mxu0 %v7433_v40  ;;  %v8579_v40 = vsub.s32 0, %v8576_v34 }
  0xf2   :  { %742 = vmatpush1.bf16.msra.mxu0 %v7431_v41  ;;  %v6561_v41 = vcombine.high %v913_v37, %v917_v38 }
  0xf3   :  { %743 = vmatprep.subr.bf16.mxu0 %v7436_v42  ;;  %v8582_v42 = vsub.s32 1, %v8576_v34 }
  0xf4   :  { %2419 = vmatprep.subr.bf16.mxu1 %v6561_v41  ;;  %v838_v41 = vld [vmem:[#allocation11 + $0xa8] sm:$0xff] }
  0xf6   :  { %744 = vmatpush1.bf16.msra.mxu0 %v7434_v43  ;;  %v6560_v43 = vcombine.low %v913_v37, %v917_v38  ;;  %v6466_v37 = vcombine.low %v818_v30, %v822_v31  ;;  %v6475_v38 = vcombine.high %v826_v35, %v830_v36 }
  0xf7   :  { %745 = vmatprep.subr.bf16.mxu0 %v7439_v44  ;;  %v921_v44 = vld [vmem:[#allocation11 + $0x340] sm:$0xff] }
  0xf8   :  { %2420 = vmatpush1.bf16.msra.mxu1 %v6560_v43  ;;  %v6474_v43 = vcombine.low %v826_v35, %v830_v36 }
  0xfa   :  { %746 = vmatpush1.bf16.msra.mxu0 %v7437_v45  ;;  %v925_v45 = vld [vmem:[#allocation11 + $0x360] sm:$0xff] }
  0xfb   :  { %747 = vmatprep.subr.bf16.mxu0 %v7442_v46  ;;  %v171_v46 = vrot.slane %v166_v39, %v8579_v40 }
  0xfe   :  { %748 = vmatpush1.bf16.msra.mxu0 %v7440_v47  ;;  %v6569_v47 = vcombine.high %v921_v44, %v925_v45 }
  0xff   :  { %749 = vmatprep.subr.bf16.mxu0 %v7445_v48  ;;  %v175_v48 = vrot.slane %v166_v39, %v8582_v42  ;;  %v834_v39 = vld [vmem:[#allocation11 + $0x88] sm:$0xff] }
 0x100   :  { %2421 = vmatprep.subr.bf16.mxu1 %v6569_v47  ;;  %v6482_v47 = vcombine.low %v834_v39, %v838_v41 }
 0x102   :  { %750 = vmatpush1.bf16.msra.mxu0 %v7443_v49  ;;  %v6568_v49 = vcombine.low %v921_v44, %v925_v45  ;;  %v6483_v44 = vcombine.high %v834_v39, %v838_v41  ;;  %v842_v45 = vld [vmem:[#allocation11 + $0xc8] sm:$0xff] }
 0x103   :  { %762 = vmatprep.subr.bf16.mxu0 %v7448_v50 }
 0x104   :  { %2422 = vmatpush1.bf16.msra.mxu1 %v6568_v49  ;;  %v850_v49 = vld [vmem:[#allocation11 + $0x108] sm:$0xff] }
 0x198   :  { %v298_v50 = vpop.f32.mrb[0].mxu0 }
 0x199   :  { %v299_v51 = vadd.f32 %v298_v50, %v171_v46  ;;  %v300_v52 = vpop.f32.mrb[1].mxu0  ;;  %v854_v50 = vld [vmem:[#allocation11 + $0x128] sm:$0xff] }
 0x19a   :  { %v301_v53 = vadd.f32 %v300_v52, %v175_v48  ;;  %v302_v54 = vpop.f32.mrb[2].mxu0  ;;  %v6499_v52 = vcombine.high %v850_v49, %v854_v50 }
 0x19b   :  { %v303_v55 = vadd.f32 %v302_v54, %v171_v46  ;;  %v304_v56 = vpop.f32.mrb[3].mxu0  ;;  %v307_v58 = vmax.f32 %v299_v51, 0.0  ;;  %v846_v46 = vld [vmem:[#allocation11 + $0xe8] sm:$0xff] }
 0x19c   :  { %v305_v57 = vadd.f32 %v304_v56, %v175_v48  ;;  %v308_v60 = vmax.f32 %v301_v53, 0.0  ;;  %v6491_v48 = vcombine.high %v842_v45, %v846_v46  ;;  %v6490_v51 = vcombine.low %v842_v45, %v846_v46  ;;  %v858_v53 = vld [vmem:[#allocation11 + $0x148] sm:$0xff] }
 0x19d   :  { %v309_v59 = vmax.f32 %v303_v55, 0.0  ;;  %v862_v54 = vld [vmem:[#allocation11 + $0x168] sm:$0xff]  ;;  %v6498_v55 = vcombine.low %v850_v49, %v854_v50 }
 0x19e   :  { %v310_v61 = vmax.f32 %v305_v57, 0.0  ;;  %v6507_v56 = vcombine.high %v858_v53, %v862_v54  ;;  %v866_v57 = vld [vmem:[#allocation11 + $0x188] sm:$0xff] }
 0x19f   :  { %v8586_v62 = vpack.c.bf16 %v309_v59, %v307_v58  ;;  %v870_v58 = vld [vmem:[#allocation11 + $0x1a8] sm:$0xff]  ;;  %v6506_v59 = vcombine.low %v858_v53, %v862_v54  ;;  %v8606_v53 = vld [vmem:[#allocation10] sm:$0xf] }
 0x1a0   :  { %v312_v63 = vpack.c.bf16 %v310_v61, %v308_v60  ;;  %v6515_v60 = vcombine.high %v866_v57, %v870_v58  ;;  %v874_v61 = vld [vmem:[#allocation11 + $0x1c8] sm:$0xff]  ;;  %v382_v54 = vrot.slane %v8606_v53, %v8579_v40 }
 0x1a2   :  { %751 = vmatprep.mubr.bf16.mxu0 %v312_v63 }
 0x1a3   :  { %752 = vmatmul.mubr.bf16.vlgmr.msra.gmra.mrb[4].mxu0 %v8586_v62 }
 0x1a4   :  { %763 = vmatpush1.bf16.msra.mxu0 %v7446_v0  ;;  %794 = vmatprep.mubr.bf16.mxu0 %v312_v63  ;;  %v929_v63 = vld [vmem:[#allocation11 + $0x380] sm:$0xff] }
 0x1a5   :  { %764 = vmatprep.subr.bf16.mxu0 %v7451_v1  ;;  %v933_v0 = vld [vmem:[#allocation11 + $0x3a0] sm:$0xff] }
 0x1a6   :  { %v6577_v1 = vcombine.high %v929_v63, %v933_v0 }
 0x1a8   :  { %765 = vmatpush1.bf16.msra.mxu0 %v7449_v2  ;;  %v6514_v2 = vcombine.low %v866_v57, %v870_v58  ;;  %2423 = vmatprep.subr.bf16.mxu1 %v6577_v1 }
 0x1a9   :  { %766 = vmatprep.subr.bf16.mxu0 %v7454_v3  ;;  %v6576_v3 = vcombine.low %v929_v63, %v933_v0 }
 0x1ab   :  { %2424 = vmatpush1.bf16.msra.mxu1 %v6576_v3 }
 0x1ac   :  { %767 = vmatpush1.bf16.msra.mxu0 %v7452_v4 }
 0x1ad   :  { %768 = vmatprep.subr.bf16.mxu0 %v7457_v5  ;;  %v882_v5 = vld [vmem:[#allocation11 + $0x208] sm:$0xff] }
 0x1b0   :  { %769 = vmatpush1.bf16.msra.mxu0 %v7455_v6  ;;  %v886_v6 = vld [vmem:[#allocation11 + $0x228] sm:$0xff] }
 0x1b1   :  { %770 = vmatprep.subr.bf16.mxu0 %v7460_v7  ;;  %v937_v7 = vld [vmem:[#allocation11 + $0x3c0] sm:$0xff] }
 0x1b4   :  { %771 = vmatpush1.bf16.msra.mxu0 %v7458_v8  ;;  %v941_v8 = vld [vmem:[#allocation11 + $0x3e0] sm:$0xff] }
 0x1b5   :  { %772 = vmatprep.subr.bf16.mxu0 %v7463_v9  ;;  %v6585_v9 = vcombine.high %v937_v7, %v941_v8 }
 0x1b7   :  { %2425 = vmatprep.subr.bf16.mxu1 %v6585_v9 }
 0x1b8   :  { %773 = vmatpush1.bf16.msra.mxu0 %v7461_v10 }
 0x1b9   :  { %774 = vmatprep.subr.bf16.mxu0 %v7466_v11  ;;  %v6584_v11 = vcombine.low %v937_v7, %v941_v8  ;;  %v958_v7 = vld [vmem:[#allocation11 + $0x468] sm:$0xff] }
 0x1bb   :  { %2426 = vmatpush1.bf16.msra.mxu1 %v6584_v11 }
 0x1bc   :  { %775 = vmatpush1.bf16.msra.mxu0 %v7464_v12  ;;  %v6531_v12 = vcombine.high %v882_v5, %v886_v6 }
 0x1bd   :  { %776 = vmatprep.subr.bf16.mxu0 %v7469_v13  ;;  %v890_v13 = vld [vmem:[#allocation11 + $0x248] sm:$0xff] }
 0x1c0   :  { %777 = vmatpush1.bf16.msra.mxu0 %v7467_v14  ;;  %v894_v14 = vld [vmem:[#allocation11 + $0x268] sm:$0xff] }
 0x1c1   :  { %778 = vmatprep.subr.bf16.mxu0 %v7472_v15  ;;  %v8590_v15 = vld [vmem:[#allocation11 + $0x400] sm:$0xff] }
 0x1c4   :  { %779 = vmatpush1.bf16.msra.mxu0 %v7470_v16  ;;  %v8592_v16 = vld [vmem:[#allocation11 + $0x420] sm:$0xff] }
 0x1c5   :  { %780 = vmatprep.subr.bf16.mxu0 %v7475_v17  ;;  %v8594_v17 = vld [vmem:[#allocation11 + $0x408] sm:$0xff] }
 0x1c8   :  { %781 = vmatpush1.bf16.msra.mxu0 %v7473_v18  ;;  %v6593_v18 = vcombine.high %v8590_v15, %v8592_v16 }
 0x1c9   :  { %782 = vmatprep.subr.bf16.mxu0 %v7478_v19  ;;  %v8598_v19 = vld [vmem:[#allocation11 + $0x428] sm:$0xff] }
 0x1ca   :  { %2438 = vmatprep.subr.bf16.mxu1 %v6593_v18  ;;  %v966_v18 = vld [vmem:[#allocation11 + $0x4a8] sm:$0xff] }
 0x1cc   :  { %783 = vmatpush1.bf16.msra.mxu0 %v7476_v20  ;;  %v6530_v20 = vcombine.low %v882_v5, %v886_v6  ;;  %v957_v5 = vld [vmem:[#allocation11 + $0x460] sm:$0xff]  ;;  %v954_v6 = vld [vmem:[#allocation11 + $0x448] sm:$0xff] }
 0x1cd   :  { %784 = vmatprep.subr.bf16.mxu0 %v7481_v21  ;;  %v6592_v21 = vcombine.low %v8590_v15, %v8592_v16  ;;  %v6603_v11 = vcombine.high %v954_v6, %v958_v7 }
 0x1d0   :  { %785 = vmatpush1.bf16.msra.mxu0 %v7479_v22  ;;  %v6594_v22 = vcombine.low %v8594_v17, %v8598_v19 }
 0x1d1   :  { %786 = vmatprep.subr.bf16.mxu0 %v7484_v23  ;;  %v6539_v23 = vcombine.high %v890_v13, %v894_v14 }
 0x1d4   :  { %787 = vmatpush1.bf16.msra.mxu0 %v7482_v24  ;;  %v898_v24 = vld [vmem:[#allocation11 + $0x288] sm:$0xff] }
 0x1d5   :  { %788 = vmatprep.subr.bf16.mxu0 %v7487_v25  ;;  %v902_v25 = vld [vmem:[#allocation11 + $0x2a8] sm:$0xff] }
 0x1d6   :  { %v6546_v30 = vcombine.low %v898_v24, %v902_v25 }
 0x1d8   :  { %789 = vmatpush1.bf16.msra.mxu0 %v7485_v26  ;;  %v6538_v26 = vcombine.low %v890_v13, %v894_v14  ;;  %v965_v13 = vld [vmem:[#allocation11 + $0x4a0] sm:$0xff]  ;;  %v962_v14 = vld [vmem:[#allocation11 + $0x488] sm:$0xff] }
 0x1d9   :  { %790 = vmatprep.subr.bf16.mxu0 %v7490_v27  ;;  %v6547_v27 = vcombine.high %v898_v24, %v902_v25  ;;  %v6611_v25 = vcombine.high %v962_v14, %v966_v18 }
 0x1dc   :  { %791 = vmatpush1.bf16.msra.mxu0 %v7488_v28  ;;  %v906_v28 = vld [vmem:[#allocation11 + $0x2c8] sm:$0xff] }
 0x1dd   :  { %792 = vmatprep.subr.bf16.mxu0 %v7493_v29  ;;  %v910_v29 = vld [vmem:[#allocation11 + $0x2e8] sm:$0xff] }
 0x1de   :  { %v6555_v31 = vcombine.high %v906_v28, %v910_v29  ;;  %v6554_v35 = vcombine.low %v906_v28, %v910_v29  ;;  %v970_v28 = vld [vmem:[#allocation11 + $0x4c8] sm:$0xff] }
 0x1df   :  { %v974_v29 = vld [vmem:[#allocation11 + $0x4e8] sm:$0xff] }
 0x1e0   :  { %793 = vmatpush1.bf16.msra.mxu0 %v7491_v32  ;;  %v914_v32 = vld [vmem:[#allocation11 + $0x308] sm:$0xff]  ;;  %v6619_v16 = vcombine.high %v970_v28, %v974_v29 }
 0x1e1   :  { %2481 = vmatprep.subr.bf16.mxu0 %v6467_v33  ;;  %v918_v33 = vld [vmem:[#allocation11 + $0x328] sm:$0xff] }
 0x1e2   :  { %v6563_v36 = vcombine.high %v914_v32, %v918_v33  ;;  %v6562_v39 = vcombine.low %v914_v32, %v918_v33  ;;  %v6618_v33 = vcombine.low %v970_v28, %v974_v29 }
 0x1e3   :  { %795 = vmatmul.mubr.bf16.vlgmr.msra.gmra.mrb[8].mxu0 %v8586_v62  ;;  %v878_v62 = vld [vmem:[#allocation11 + $0x1e8] sm:$0xff] }
 0x1e4   :  { %2482 = vmatpush1.bf16.msra.mxu0 %v6466_v37  ;;  %v6523_v4 = vcombine.high %v874_v61, %v878_v62  ;;  %v6522_v10 = vcombine.low %v874_v61, %v878_v62  ;;  %v922_v37 = vld [vmem:[#allocation11 + $0x348] sm:$0xff] }
 0x1e5   :  { %2483 = vmatprep.subr.bf16.mxu0 %v6475_v38  ;;  %v926_v38 = vld [vmem:[#allocation11 + $0x368] sm:$0xff] }
 0x1e6   :  { %v6571_v41 = vcombine.high %v922_v37, %v926_v38  ;;  %v6570_v45 = vcombine.low %v922_v37, %v926_v38  ;;  %v985_v37 = vld [vmem:[#allocation11 + $0x540] sm:$0xff] }
 0x1e7   :  { %v989_v38 = vld [vmem:[#allocation11 + $0x560] sm:$0xff] }
 0x1e8   :  { %2484 = vmatpush1.bf16.msra.mxu0 %v6474_v43  ;;  %v930_v43 = vld [vmem:[#allocation11 + $0x388] sm:$0xff] }
 0x1e9   :  { %2485 = vmatprep.subr.bf16.mxu0 %v6483_v44  ;;  %v934_v44 = vld [vmem:[#allocation11 + $0x3a8] sm:$0xff] }
 0x1ea   :  { %v6579_v46 = vcombine.high %v930_v43, %v934_v44  ;;  %v6578_v49 = vcombine.low %v930_v43, %v934_v44 }
 0x1ec   :  { %2486 = vmatpush1.bf16.msra.mxu0 %v6482_v47  ;;  %v938_v47 = vld [vmem:[#allocation11 + $0x3c8] sm:$0xff] }
 0x1ed   :  { %2487 = vmatprep.subr.bf16.mxu0 %v6491_v48  ;;  %v942_v48 = vld [vmem:[#allocation11 + $0x3e8] sm:$0xff] }
 0x1ee   :  { %v6587_v50 = vcombine.high %v938_v47, %v942_v48 }
 0x1f0   :  { %2488 = vmatpush1.bf16.msra.mxu0 %v6490_v51  ;;  %v6586_v51 = vcombine.low %v938_v47, %v942_v48  ;;  %v993_v47 = vld [vmem:[#allocation11 + $0x580] sm:$0xff] }
 0x1f1   :  { %2489 = vmatprep.subr.bf16.mxu0 %v6499_v52  ;;  %v6595_v52 = vcombine.high %v8594_v17, %v8598_v19  ;;  %v977_v17 = vld [vmem:[#allocation11 + $0x500] sm:$0xff] }
 0x1f2   :  { %v981_v19 = vld [vmem:[#allocation11 + $0x520] sm:$0xff] }
 0x1f3   :  { %v6624_v43 = vcombine.low %v977_v17, %v981_v19  ;;  %v997_v48 = vld [vmem:[#allocation11 + $0x5a0] sm:$0xff] }
 0x1f4   :  { %2490 = vmatpush1.bf16.msra.mxu0 %v6498_v55  ;;  %v386_v55 = vrot.slane %v8606_v53, %v8582_v42 }
 0x1f5   :  { %2491 = vmatprep.subr.bf16.mxu0 %v6507_v56 }
 0x1f8   :  { %2492 = vmatpush1.bf16.msra.mxu0 %v6506_v59 }
 0x1f9   :  { %2493 = vmatprep.subr.bf16.mxu0 %v6515_v60 }
 0x1fc   :  { %2494 = vmatpush1.bf16.msra.mxu0 %v6514_v2  ;;  %v953_v2 = vld [vmem:[#allocation11 + $0x440] sm:$0xff] }
 0x1fd   :  { %2495 = vmatprep.subr.bf16.mxu0 %v6523_v4 }
 0x200   :  { %2496 = vmatpush1.bf16.msra.mxu0 %v6522_v10  ;;  %v6601_v10 = vcombine.high %v953_v2, %v957_v5 }
 0x201   :  { %2497 = vmatprep.subr.bf16.mxu0 %v6531_v12  ;;  %v961_v12 = vld [vmem:[#allocation11 + $0x480] sm:$0xff] }
 0x202   :  { %v6609_v24 = vcombine.high %v961_v12, %v965_v13 }
 0x204   :  { %2498 = vmatpush1.bf16.msra.mxu0 %v6530_v20  ;;  %v6600_v20 = vcombine.low %v953_v2, %v957_v5  ;;  %v1010_v2 = vld [vmem:[#allocation11 + $0x608] sm:$0xff] }
 0x205   :  { %2499 = vmatprep.subr.bf16.mxu0 %v6539_v23  ;;  %v6602_v23 = vcombine.low %v954_v6, %v958_v7 }
 0x208   :  { %2500 = vmatpush1.bf16.msra.mxu0 %v6538_v26  ;;  %v969_v26 = vld [vmem:[#allocation11 + $0x4c0] sm:$0xff] }
 0x209   :  { %2501 = vmatprep.subr.bf16.mxu0 %v6547_v27  ;;  %v973_v27 = vld [vmem:[#allocation11 + $0x4e0] sm:$0xff] }
 0x20a   :  { %v6617_v15 = vcombine.high %v969_v26, %v973_v27  ;;  %v6616_v32 = vcombine.low %v969_v26, %v973_v27  ;;  %v1026_v26 = vld [vmem:[#allocation11 + $0x688] sm:$0xff] }
 0x20b   :  { %v1030_v27 = vld [vmem:[#allocation11 + $0x6a8] sm:$0xff] }
 0x20c   :  { %2502 = vmatpush1.bf16.msra.mxu0 %v6546_v30  ;;  %v6608_v30 = vcombine.low %v961_v12, %v965_v13  ;;  %v1018_v12 = vld [vmem:[#allocation11 + $0x648] sm:$0xff] }
 0x20d   :  { %2503 = vmatprep.subr.bf16.mxu0 %v6555_v31  ;;  %v6610_v31 = vcombine.low %v962_v14, %v966_v18  ;;  %v1022_v13 = vld [vmem:[#allocation11 + $0x668] sm:$0xff] }
 0x20e   :  { %v6666_v29 = vcombine.low %v1018_v12, %v1022_v13 }
 0x210   :  { %2504 = vmatpush1.bf16.msra.mxu0 %v6554_v35  ;;  %v6625_v35 = vcombine.high %v977_v17, %v981_v19  ;;  %v1034_v17 = vld [vmem:[#allocation11 + $0x6c8] sm:$0xff] }
 0x211   :  { %2505 = vmatprep.subr.bf16.mxu0 %v6563_v36  ;;  %v1038_v19 = vld [vmem:[#allocation11 + $0x6e8] sm:$0xff] }
 0x214   :  { %2506 = vmatpush1.bf16.msra.mxu0 %v6562_v39  ;;  %v986_v39 = vld [vmem:[#allocation11 + $0x548] sm:$0xff] }
 0x215   :  { %2507 = vmatprep.subr.bf16.mxu0 %v6571_v41  ;;  %v990_v41 = vld [vmem:[#allocation11 + $0x568] sm:$0xff] }
 0x218   :  { %2508 = vmatpush1.bf16.msra.mxu0 %v6570_v45  ;;  %v6633_v45 = vcombine.high %v985_v37, %v989_v38 }
 0x219   :  { %2509 = vmatprep.subr.bf16.mxu0 %v6579_v46  ;;  %v6635_v46 = vcombine.high %v986_v39, %v990_v41 }
 0x21c   :  { %2510 = vmatpush1.bf16.msra.mxu0 %v6578_v49  ;;  %v994_v49 = vld [vmem:[#allocation11 + $0x588] sm:$0xff] }
 0x21d   :  { %2511 = vmatprep.subr.bf16.mxu0 %v6587_v50  ;;  %v998_v50 = vld [vmem:[#allocation11 + $0x5a8] sm:$0xff] }
 0x220   :  { %2512 = vmatpush1.bf16.msra.mxu0 %v6586_v51  ;;  %v6632_v51 = vcombine.low %v985_v37, %v989_v38  ;;  %v1042_v37 = vld [vmem:[#allocation11 + $0x708] sm:$0xff] }
 0x221   :  { %2524 = vmatprep.subr.bf16.mxu0 %v6595_v52  ;;  %v6634_v52 = vcombine.low %v986_v39, %v990_v41  ;;  %v1046_v38 = vld [vmem:[#allocation11 + $0x728] sm:$0xff]  ;;  %v6682_v41 = vcombine.low %v1034_v17, %v1038_v19 }
 0x276   :  { %v753_v56 = vpop.f32.mrb[4].mxu0 }
 0x277   :  { %v754_v57 = vadd.f32 %v753_v56, %v382_v54  ;;  %v755_v58 = vpop.f32.mrb[5].mxu0  ;;  %v1001_v56 = vld [vmem:[#allocation11 + $0x5c0] sm:$0xff] }
 0x278   :  { %v756_v59 = vadd.f32 %v755_v58, %v386_v55  ;;  %v757_v60 = vpop.f32.mrb[6].mxu0  ;;  %v1002_v58 = vld [vmem:[#allocation11 + $0x5c8] sm:$0xff] }
 0x279   :  { %v758_v61 = vadd.f32 %v757_v60, %v382_v54  ;;  %v759_v62 = vpop.f32.mrb[7].mxu0  ;;  %v805_v0 = vmax.f32 %v754_v57, 0.0  ;;  %v6641_v54 = vcombine.high %v993_v47, %v997_v48  ;;  %v1005_v57 = vld [vmem:[#allocation11 + $0x5e0] sm:$0xff]  ;;  %v6640_v60 = vcombine.low %v993_v47, %v997_v48  ;;  %v1050_v47 = vld [vmem:[#allocation11 + $0x748] sm:$0xff] }
 0x27a   :  { %v760_v63 = vadd.f32 %v759_v62, %v386_v55  ;;  %v806_v3 = vmax.f32 %v756_v59, 0.0  ;;  %v6643_v55 = vcombine.high %v994_v49, %v998_v50  ;;  %v1006_v59 = vld [vmem:[#allocation11 + $0x5e8] sm:$0xff]  ;;  %v6649_v62 = vcombine.high %v1001_v56, %v1005_v57 }
 0x27b   :  { %v809_v1 = vmax.f32 %v758_v61, 0.0  ;;  %v6642_v61 = vcombine.low %v994_v49, %v998_v50  ;;  %v6650_v5 = vcombine.low %v1002_v58, %v1006_v59  ;;  %v1054_v48 = vld [vmem:[#allocation11 + $0x768] sm:$0xff]  ;;  %v6690_v50 = vcombine.low %v1042_v37, %v1046_v38 }
 0x27c   :  { %v810_v4 = vmax.f32 %v760_v63, 0.0  ;;  %v6651_v63 = vcombine.high %v1002_v58, %v1006_v59  ;;  %v1058_v58 = vld [vmem:[#allocation11 + $0x788] sm:$0xff] }
 0x27d   :  { %v8612_v8 = vpack.c.bf16 %v809_v1, %v805_v0  ;;  %v1009_v0 = vld [vmem:[#allocation11 + $0x600] sm:$0xff]  ;;  %v1062_v59 = vld [vmem:[#allocation11 + $0x7a8] sm:$0xff] }
 0x27e   :  { %v8614_v9 = vpack.c.bf16 %v810_v4, %v806_v3  ;;  %v1013_v1 = vld [vmem:[#allocation11 + $0x620] sm:$0xff]  ;;  %v1014_v3 = vld [vmem:[#allocation11 + $0x628] sm:$0xff]  ;;  %v6648_v4 = vcombine.low %v1001_v56, %v1005_v57  ;;  %v8630_v56 = vsub.s32 3, %v8576_v34 }
 0x27f   :  { %v6657_v6 = vcombine.high %v1009_v0, %v1013_v1  ;;  %v6659_v7 = vcombine.high %v1010_v2, %v1014_v3  ;;  %v6656_v14 = vcombine.low %v1009_v0, %v1013_v1  ;;  %v6658_v18 = vcombine.low %v1010_v2, %v1014_v3  ;;  %v1061_v57 = vld [vmem:[#allocation11 + $0x7a0] sm:$0xff] }
 0x280   :  { %2427 = vmatprep.mubr.bf16.mxu1 %v8614_v9  ;;  %2513 = vmatprep.mubr.bf16.mxu0 %v8614_v9  ;;  %v6707_v0 = vcombine.high %v1058_v58, %v1062_v59  ;;  %v1065_v1 = vld [vmem:[#allocation11 + $0x7c0] sm:$0xff]  ;;  %v394_v2 = vrot.slane %v8606_v53, %v8630_v56 }
 0x281   :  { %2428 = vmatmul.mubr.bf16.vlgmr.msra.gmra.mrb[0].mxu1 %v8612_v8  ;;  %2514 = vmatmul.mubr.bf16.vlgmr.msra.gmra.mrb[12].mxu0 %v8612_v8  ;;  %v1069_v3 = vld [vmem:[#allocation11 + $0x7e0] sm:$0xff] }
 0x282   :  { %2439 = vmatpush1.bf16.msra.mxu1 %v6592_v21  ;;  %2525 = vmatpush1.bf16.msra.mxu0 %v6594_v22  ;;  %v978_v21 = vld [vmem:[#allocation11 + $0x508] sm:$0xff] }
 0x283   :  { %2440 = vmatprep.subr.bf16.mxu1 %v6601_v10  ;;  %2526 = vmatprep.subr.bf16.mxu0 %v6603_v11  ;;  %v982_v22 = vld [vmem:[#allocation11 + $0x528] sm:$0xff]  ;;  %v1017_v10 = vld [vmem:[#allocation11 + $0x640] sm:$0xff] }
 0x284   :  { %v6627_v36 = vcombine.high %v978_v21, %v982_v22  ;;  %v6626_v44 = vcombine.low %v978_v21, %v982_v22  ;;  %v1021_v11 = vld [vmem:[#allocation11 + $0x660] sm:$0xff]  ;;  %v6674_v22 = vcombine.low %v1026_v26, %v1030_v27 }
 0x285   :  { %v6664_v28 = vcombine.low %v1017_v10, %v1021_v11 }
 0x286   :  { %2441 = vmatpush1.bf16.msra.mxu1 %v6600_v20  ;;  %2527 = vmatpush1.bf16.msra.mxu0 %v6602_v23  ;;  %v6665_v20 = vcombine.high %v1017_v10, %v1021_v11  ;;  %v6667_v23 = vcombine.high %v1018_v12, %v1022_v13  ;;  %v6706_v10 = vcombine.low %v1058_v58, %v1062_v59  ;;  %v848_v58 = vld [vmem:[#allocation11 + $0xf8] sm:$0xff] }
 0x287   :  { %2442 = vmatprep.subr.bf16.mxu1 %v6609_v24  ;;  %2528 = vmatprep.subr.bf16.mxu0 %v6611_v25  ;;  %v1025_v24 = vld [vmem:[#allocation11 + $0x680] sm:$0xff]  ;;  %v6713_v13 = vcombine.high %v1065_v1, %v1069_v3 }
 0x288   :  { %v1029_v25 = vld [vmem:[#allocation11 + $0x6a0] sm:$0xff] }
 0x289   :  { %v6672_v21 = vcombine.low %v1025_v24, %v1029_v25 }
 0x28a   :  { %2443 = vmatpush1.bf16.msra.mxu1 %v6608_v30  ;;  %2529 = vmatpush1.bf16.msra.mxu0 %v6610_v31  ;;  %v6673_v30 = vcombine.high %v1025_v24, %v1029_v25  ;;  %v6675_v31 = vcombine.high %v1026_v26, %v1030_v27  ;;  %v823_v24 = vld [vmem:[#allocation11 + $0x30] sm:$0xff]  ;;  %v820_v25 = vld [vmem:[#allocation11 + $0x18] sm:$0xff] }
 0x28b   :  { %2444 = vmatprep.subr.bf16.mxu1 %v6617_v15  ;;  %2530 = vmatprep.subr.bf16.mxu0 %v6619_v16  ;;  %v1033_v15 = vld [vmem:[#allocation11 + $0x6c0] sm:$0xff] }
 0x28c   :  { %v1037_v16 = vld [vmem:[#allocation11 + $0x6e0] sm:$0xff] }
 0x28d   :  { %v6680_v39 = vcombine.low %v1033_v15, %v1037_v16 }
 0x28e   :  { %2445 = vmatpush1.bf16.msra.mxu1 %v6616_v32  ;;  %2531 = vmatpush1.bf16.msra.mxu0 %v6618_v33  ;;  %v6681_v32 = vcombine.high %v1033_v15, %v1037_v16  ;;  %v6683_v33 = vcombine.high %v1034_v17, %v1038_v19 }
 0x28f   :  { %2446 = vmatprep.subr.bf16.mxu1 %v6625_v35  ;;  %2532 = vmatprep.subr.bf16.mxu0 %v6627_v36  ;;  %v1041_v35 = vld [vmem:[#allocation11 + $0x700] sm:$0xff] }
 0x290   :  { %v1045_v36 = vld [vmem:[#allocation11 + $0x720] sm:$0xff] }
 0x291   :  { %v6688_v49 = vcombine.low %v1041_v35, %v1045_v36 }
 0x292   :  { %2447 = vmatpush1.bf16.msra.mxu1 %v6624_v43  ;;  %2533 = vmatpush1.bf16.msra.mxu0 %v6626_v44  ;;  %v6689_v43 = vcombine.high %v1041_v35, %v1045_v36  ;;  %v6691_v44 = vcombine.high %v1042_v37, %v1046_v38  ;;  %v828_v35 = vld [vmem:[#allocation11 + $0x58] sm:$0xff] }
 0x293   :  { %2448 = vmatprep.subr.bf16.mxu1 %v6633_v45  ;;  %2534 = vmatprep.subr.bf16.mxu0 %v6635_v46  ;;  %v1049_v45 = vld [vmem:[#allocation11 + $0x740] sm:$0xff]  ;;  %v832_v36 = vld [vmem:[#allocation11 + $0x78] sm:$0xff] }
 0x294   :  { %v1053_v46 = vld [vmem:[#allocation11 + $0x760] sm:$0xff] }
 0x296   :  { %2449 = vmatpush1.bf16.msra.mxu1 %v6632_v51  ;;  %2535 = vmatpush1.bf16.msra.mxu0 %v6634_v52  ;;  %v6697_v51 = vcombine.high %v1049_v45, %v1053_v46  ;;  %v6699_v52 = vcombine.high %v1050_v47, %v1054_v48 }
 0x297   :  { %2450 = vmatprep.subr.bf16.mxu1 %v6641_v54  ;;  %2536 = vmatprep.subr.bf16.mxu0 %v6643_v55  ;;  %v8627_v54 = vsub.s32 2, %v8576_v34  ;;  %v1057_v55 = vld [vmem:[#allocation11 + $0x780] sm:$0xff] }
 0x29a   :  { %2451 = vmatpush1.bf16.msra.mxu1 %v6640_v60  ;;  %2537 = vmatpush1.bf16.msra.mxu0 %v6642_v61  ;;  %v6696_v60 = vcombine.low %v1049_v45, %v1053_v46  ;;  %v6698_v61 = vcombine.low %v1050_v47, %v1054_v48  ;;  %v839_v45 = vld [vmem:[#allocation11 + $0xb0] sm:$0xff]  ;;  %v836_v46 = vld [vmem:[#allocation11 + $0x98] sm:$0xff] }
 0x29b   :  { %2452 = vmatprep.subr.bf16.mxu1 %v6649_v62  ;;  %2538 = vmatprep.subr.bf16.mxu0 %v6651_v63  ;;  %v390_v62 = vrot.slane %v8606_v53, %v8627_v54  ;;  %v6705_v63 = vcombine.high %v1057_v55, %v1061_v57  ;;  %v824_v53 = vld [vmem:[#allocation11 + $0x38] sm:$0xff] }
 0x29c   :  { %v6471_v17 = vcombine.high %v820_v25, %v824_v53  ;;  %v840_v47 = vld [vmem:[#allocation11 + $0xb8] sm:$0xff] }
 0x29e   :  { %2453 = vmatpush1.bf16.msra.mxu1 %v6648_v4  ;;  %2539 = vmatpush1.bf16.msra.mxu0 %v6650_v5  ;;  %v1066_v4 = vld [vmem:[#allocation11 + $0x7c8] sm:$0xff] }
 0x29f   :  { %2454 = vmatprep.subr.bf16.mxu1 %v6657_v6  ;;  %2540 = vmatprep.subr.bf16.mxu0 %v6659_v7  ;;  %v1070_v5 = vld [vmem:[#allocation11 + $0x7e8] sm:$0xff]  ;;  %v6704_v7 = vcombine.low %v1057_v55, %v1061_v57  ;;  %v847_v55 = vld [vmem:[#allocation11 + $0xf0] sm:$0xff]  ;;  %v844_v57 = vld [vmem:[#allocation11 + $0xd8] sm:$0xff] }
 0x2a2   :  { %2455 = vmatpush1.bf16.msra.mxu1 %v6656_v14  ;;  %2541 = vmatpush1.bf16.msra.mxu0 %v6658_v18  ;;  %v6715_v14 = vcombine.high %v1066_v4, %v1070_v5  ;;  %v819_v18 = vld [vmem:[#allocation11 + $0x10] sm:$0xff] }
 0x2a3   :  { %2456 = vmatprep.subr.bf16.mxu1 %v6665_v20  ;;  %2542 = vmatprep.subr.bf16.mxu0 %v6667_v23  ;;  %v6469_v16 = vcombine.high %v819_v18, %v823_v24  ;;  %v6468_v38 = vcombine.low %v819_v18, %v823_v24  ;;  %v868_v24 = vld [vmem:[#allocation11 + $0x198] sm:$0xff] }
 0x2a6   :  { %2457 = vmatpush1.bf16.msra.mxu1 %v6664_v28  ;;  %2543 = vmatpush1.bf16.msra.mxu0 %v6666_v29  ;;  %v6712_v29 = vcombine.low %v1065_v1, %v1069_v3  ;;  %v856_v1 = vld [vmem:[#allocation11 + $0x138] sm:$0xff]  ;;  %v6494_v3 = vcombine.low %v844_v57, %v848_v58 }
 0x2a7   :  { %2458 = vmatprep.subr.bf16.mxu1 %v6673_v30  ;;  %2544 = vmatprep.subr.bf16.mxu0 %v6675_v31  ;;  %v6714_v30 = vcombine.low %v1066_v4, %v1070_v5 }
 0x2aa   :  { %2459 = vmatpush1.bf16.msra.mxu1 %v6672_v21  ;;  %2545 = vmatpush1.bf16.msra.mxu0 %v6674_v22  ;;  %v827_v22 = vld [vmem:[#allocation11 + $0x50] sm:$0xff] }
 0x2ab   :  { %2460 = vmatprep.subr.bf16.mxu1 %v6681_v32  ;;  %2546 = vmatprep.subr.bf16.mxu0 %v6683_v33  ;;  %v831_v33 = vld [vmem:[#allocation11 + $0x70] sm:$0xff] }
 0x2ac   :  { %v6476_v48 = vcombine.low %v827_v22, %v831_v33 }
 0x2ae   :  { %2461 = vmatpush1.bf16.msra.mxu1 %v6680_v39  ;;  %2547 = vmatpush1.bf16.msra.mxu0 %v6682_v41  ;;  %v6470_v39 = vcombine.low %v820_v25, %v824_v53  ;;  %v6477_v41 = vcombine.high %v827_v22, %v831_v33  ;;  %v872_v25 = vld [vmem:[#allocation11 + $0x1b8] sm:$0xff]  ;;  %v883_v22 = vld [vmem:[#allocation11 + $0x210] sm:$0xff] }
 0x2af   :  { %2462 = vmatprep.subr.bf16.mxu1 %v6689_v43  ;;  %2548 = vmatprep.subr.bf16.mxu0 %v6691_v44  ;;  %v6479_v43 = vcombine.high %v828_v35, %v832_v36  ;;  %v835_v44 = vld [vmem:[#allocation11 + $0x90] sm:$0xff] }
 0x2b0   :  { %v6484_v59 = vcombine.low %v835_v44, %v839_v45  ;;  %v887_v33 = vld [vmem:[#allocation11 + $0x230] sm:$0xff] }
 0x2b2   :  { %2463 = vmatpush1.bf16.msra.mxu1 %v6688_v49  ;;  %2549 = vmatpush1.bf16.msra.mxu0 %v6690_v50  ;;  %v6478_v49 = vcombine.low %v828_v35, %v832_v36  ;;  %v6485_v50 = vcombine.high %v835_v44, %v839_v45  ;;  %v884_v35 = vld [vmem:[#allocation11 + $0x218] sm:$0xff]  ;;  %v891_v44 = vld [vmem:[#allocation11 + $0x250] sm:$0xff] }
 0x2b3   :  { %2464 = vmatprep.subr.bf16.mxu1 %v6697_v51  ;;  %2550 = vmatprep.subr.bf16.mxu0 %v6699_v52  ;;  %v6487_v51 = vcombine.high %v836_v46, %v840_v47  ;;  %v843_v52 = vld [vmem:[#allocation11 + $0xd0] sm:$0xff]  ;;  %v888_v36 = vld [vmem:[#allocation11 + $0x238] sm:$0xff] }
 0x2b4   :  { %v895_v45 = vld [vmem:[#allocation11 + $0x270] sm:$0xff] }
 0x2b6   :  { %v796_v6 = vpop.f32.mrb[8].mxu0  ;;  %2465 = vmatpush1.bf16.msra.mxu1 %v6696_v60  ;;  %2551 = vmatpush1.bf16.msra.mxu0 %v6698_v61  ;;  %v6486_v60 = vcombine.low %v836_v46, %v840_v47  ;;  %v6493_v61 = vcombine.high %v843_v52, %v847_v55  ;;  %v892_v46 = vld [vmem:[#allocation11 + $0x258] sm:$0xff] }
 0x2b7   :  { %v797_v11 = vadd.f32 %v796_v6, %v390_v62  ;;  %v798_v12 = vpop.f32.mrb[9].mxu0  ;;  %2466 = vmatprep.subr.bf16.mxu1 %v6705_v63  ;;  %2552 = vmatprep.subr.bf16.mxu0 %v6707_v0  ;;  %v851_v63 = vld [vmem:[#allocation11 + $0x110] sm:$0xff]  ;;  %v896_v47 = vld [vmem:[#allocation11 + $0x278] sm:$0xff] }
 0x2b8   :  { %v799_v20 = vadd.f32 %v798_v12, %v394_v2  ;;  %v800_v23 = vpop.f32.mrb[10].mxu0  ;;  %v855_v0 = vld [vmem:[#allocation11 + $0x130] sm:$0xff] }
 0x2b9   :  { %v801_v26 = vadd.f32 %v800_v23, %v390_v62  ;;  %v802_v27 = vpop.f32.mrb[11].mxu0  ;;  %v807_v31 = vmax.f32 %v797_v11, 0.0  ;;  %v6495_v62 = vcombine.high %v844_v57, %v848_v58  ;;  %v6501_v4 = vcombine.high %v851_v63, %v855_v0  ;;  %v859_v6 = vld [vmem:[#allocation11 + $0x150] sm:$0xff]  ;;  %v864_v11 = vld [vmem:[#allocation11 + $0x178] sm:$0xff] }
 0x2ba   :  { %v803_v28 = vadd.f32 %v802_v27, %v394_v2  ;;  %2467 = vmatpush1.bf16.msra.mxu1 %v6704_v7  ;;  %2553 = vmatpush1.bf16.msra.mxu0 %v6706_v10  ;;  %v808_v19 = vmax.f32 %v799_v20, 0.0  ;;  %v6492_v2 = vcombine.low %v843_v52, %v847_v55  ;;  %v863_v7 = vld [vmem:[#allocation11 + $0x170] sm:$0xff]  ;;  %v860_v10 = vld [vmem:[#allocation11 + $0x158] sm:$0xff]  ;;  %v6500_v12 = vcombine.low %v851_v63, %v855_v0 }
 0x2bb   :  { %v811_v15 = vmax.f32 %v801_v26, 0.0  ;;  %2468 = vmatprep.subr.bf16.mxu1 %v6713_v13  ;;  %2554 = vmatprep.subr.bf16.mxu0 %v6715_v14  ;;  %v6509_v14 = vcombine.high %v859_v6, %v863_v7  ;;  %v6511_v18 = vcombine.high %v860_v10, %v864_v11  ;;  %v867_v20 = vld [vmem:[#allocation11 + $0x190] sm:$0xff]  ;;  %v6508_v53 = vcombine.low %v859_v6, %v863_v7  ;;  %v900_v57 = vld [vmem:[#allocation11 + $0x298] sm:$0xff] }
 0x2bc   :  { %v812_v21 = vmax.f32 %v803_v28, 0.0  ;;  %v871_v23 = vld [vmem:[#allocation11 + $0x1b0] sm:$0xff]  ;;  %v6510_v26 = vcombine.low %v860_v10, %v864_v11  ;;  %v6519_v28 = vcombine.high %v868_v24, %v872_v25  ;;  %v904_v58 = vld [vmem:[#allocation11 + $0x2b8] sm:$0xff] }
 0x2bd   :  { %v8636_v32 = vpack.c.bf16 %v811_v15, %v807_v31  ;;  %v6517_v27 = vcombine.high %v867_v20, %v871_v23  ;;  %v876_v31 = vld [vmem:[#allocation11 + $0x1d8] sm:$0xff]  ;;  %v899_v52 = vld [vmem:[#allocation11 + $0x290] sm:$0xff] }
 0x2be   :  { %v8638_v37 = vpack.c.bf16 %v812_v21, %v808_v19  ;;  %2469 = vmatpush1.bf16.msra.mxu1 %v6712_v29  ;;  %2555 = vmatpush1.bf16.msra.mxu0 %v6714_v30  ;;  %v875_v29 = vld [vmem:[#allocation11 + $0x1d0] sm:$0xff]  ;;  %v880_v15 = vld [vmem:[#allocation11 + $0x1f8] sm:$0xff] }
 0x2bf   :  { %2567 = vmatprep.subr.bf16.mxu1 %v6469_v16  ;;  %2653 = vmatprep.subr.bf16.mxu0 %v6471_v17  ;;  %v879_v30 = vld [vmem:[#allocation11 + $0x1f0] sm:$0xff]  ;;  %v6516_v16 = vcombine.low %v867_v20, %v871_v23  ;;  %v6518_v17 = vcombine.low %v868_v24, %v872_v25  ;;  %v6527_v21 = vcombine.high %v876_v31, %v880_v15  ;;  %v916_v10 = vld [vmem:[#allocation11 + $0x318] sm:$0xff] }
 0x2c0   :  { %2470 = vmatprep.mubr.bf16.mxu1 %v8638_v37  ;;  %2556 = vmatprep.mubr.bf16.mxu0 %v8638_v37  ;;  %v6525_v19 = vcombine.high %v875_v29, %v879_v30  ;;  %v903_v55 = vld [vmem:[#allocation11 + $0x2b0] sm:$0xff]  ;;  %v920_v11 = vld [vmem:[#allocation11 + $0x338] sm:$0xff] }
 0x2c1   :  { %2471 = vmatmul.mubr.bf16.vlgmr.msra.gmra.mrb[0].mxu1 %v8636_v32  ;;  %2557 = vmatmul.mubr.bf16.vlgmr.msra.gmra.mrb[12].mxu0 %v8636_v32  ;;  %v907_v63 = vld [vmem:[#allocation11 + $0x2d0] sm:$0xff]  ;;  %v924_v24 = vld [vmem:[#allocation11 + $0x358] sm:$0xff] }
 0x2c2   :  { %2568 = vmatpush1.bf16.msra.mxu1 %v6468_v38  ;;  %2599 = vmatprep.mubr.bf16.mxu1 %v8614_v9  ;;  %v6524_v38 = vcombine.low %v875_v29, %v879_v30  ;;  %v911_v0 = vld [vmem:[#allocation11 + $0x2f0] sm:$0xff]  ;;  %v928_v25 = vld [vmem:[#allocation11 + $0x378] sm:$0xff] }
 0x2c3   :  { %2654 = vmatpush1.bf16.msra.mxu0 %v6470_v39  ;;  %2685 = vmatprep.mubr.bf16.mxu0 %v8614_v9  ;;  %v852_v9 = vld [vmem:[#allocation11 + $0x118] sm:$0xff]  ;;  %v6526_v39 = vcombine.low %v876_v31, %v880_v15  ;;  %v915_v6 = vld [vmem:[#allocation11 + $0x310] sm:$0xff] }
 0x2c4   :  { %2569 = vmatprep.subr.bf16.mxu1 %v6477_v41  ;;  %2655 = vmatprep.subr.bf16.mxu0 %v6479_v43  ;;  %v6503_v5 = vcombine.high %v852_v9, %v856_v1  ;;  %v6502_v13 = vcombine.low %v852_v9, %v856_v1  ;;  %v6533_v41 = vcombine.high %v883_v22, %v887_v33  ;;  %v908_v9 = vld [vmem:[#allocation11 + $0x2d8] sm:$0xff]  ;;  %v919_v7 = vld [vmem:[#allocation11 + $0x330] sm:$0xff] }
 0x2c5   :  { %v6535_v43 = vcombine.high %v884_v35, %v888_v36  ;;  %v912_v1 = vld [vmem:[#allocation11 + $0x2f8] sm:$0xff]  ;;  %v923_v20 = vld [vmem:[#allocation11 + $0x350] sm:$0xff] }
 0x2c6   :  { %2570 = vmatpush1.bf16.msra.mxu1 %v6476_v48  ;;  %v6532_v48 = vcombine.low %v883_v22, %v887_v33  ;;  %v927_v23 = vld [vmem:[#allocation11 + $0x370] sm:$0xff]  ;;  %v932_v31 = vld [vmem:[#allocation11 + $0x398] sm:$0xff] }
 0x2c7   :  { %2656 = vmatpush1.bf16.msra.mxu0 %v6478_v49  ;;  %2571 = vmatprep.subr.bf16.mxu1 %v6485_v50  ;;  %v6534_v49 = vcombine.low %v884_v35, %v888_v36  ;;  %v6541_v50 = vcombine.high %v891_v44, %v895_v45  ;;  %v931_v29 = vld [vmem:[#allocation11 + $0x390] sm:$0xff]  ;;  %v936_v15 = vld [vmem:[#allocation11 + $0x3b8] sm:$0xff] }
 0x2c8   :  { %2657 = vmatprep.subr.bf16.mxu0 %v6487_v51  ;;  %v6543_v51 = vcombine.high %v892_v46, %v896_v47  ;;  %v935_v30 = vld [vmem:[#allocation11 + $0x3b0] sm:$0xff]  ;;  %v940_v35 = vld [vmem:[#allocation11 + $0x3d8] sm:$0xff] }
 0x2c9   :  { %v939_v22 = vld [vmem:[#allocation11 + $0x3d0] sm:$0xff]  ;;  %v944_v36 = vld [vmem:[#allocation11 + $0x3f8] sm:$0xff] }
 0x2ca   :  { %2572 = vmatpush1.bf16.msra.mxu1 %v6484_v59  ;;  %v6540_v59 = vcombine.low %v891_v44, %v895_v45  ;;  %v943_v33 = vld [vmem:[#allocation11 + $0x3f0] sm:$0xff] }
 0x2cb   :  { %2658 = vmatpush1.bf16.msra.mxu0 %v6486_v60  ;;  %2573 = vmatprep.subr.bf16.mxu1 %v6493_v61  ;;  %v6542_v60 = vcombine.low %v892_v46, %v896_v47  ;;  %v6549_v61 = vcombine.high %v899_v52, %v903_v55  ;;  %v947_v44 = vld [vmem:[#allocation11 + $0x410] sm:$0xff]  ;;  %v948_v46 = vld [vmem:[#allocation11 + $0x418] sm:$0xff] }
 0x2cc   :  { %2659 = vmatprep.subr.bf16.mxu0 %v6495_v62  ;;  %v6551_v62 = vcombine.high %v900_v57, %v904_v58  ;;  %v951_v45 = vld [vmem:[#allocation11 + $0x430] sm:$0xff]  ;;  %v952_v47 = vld [vmem:[#allocation11 + $0x438] sm:$0xff] }
 0x2ce   :  { %2574 = vmatpush1.bf16.msra.mxu1 %v6492_v2  ;;  %v6548_v2 = vcombine.low %v899_v52, %v903_v55  ;;  %v955_v52 = vld [vmem:[#allocation11 + $0x450] sm:$0xff] }
 0x2cf   :  { %2660 = vmatpush1.bf16.msra.mxu0 %v6494_v3  ;;  %2575 = vmatprep.subr.bf16.mxu1 %v6501_v4  ;;  %v6550_v3 = vcombine.low %v900_v57, %v904_v58  ;;  %v6557_v4 = vcombine.high %v907_v63, %v911_v0  ;;  %v959_v55 = vld [vmem:[#allocation11 + $0x470] sm:$0xff]  ;;  %v6596_v57 = vcombine.low %v947_v44, %v951_v45  ;;  %v956_v58 = vld [vmem:[#allocation11 + $0x458] sm:$0xff] }
 0x2d0   :  { %2661 = vmatprep.subr.bf16.mxu0 %v6503_v5  ;;  %v6559_v5 = vcombine.high %v908_v9, %v912_v1 }
 0x2d2   :  { %2576 = vmatpush1.bf16.msra.mxu1 %v6500_v12  ;;  %v6556_v12 = vcombine.low %v907_v63, %v911_v0  ;;  %v967_v63 = vld [vmem:[#allocation11 + $0x4b0] sm:$0xff] }
 0x2d3   :  { %2662 = vmatpush1.bf16.msra.mxu0 %v6502_v13  ;;  %2577 = vmatprep.subr.bf16.mxu1 %v6509_v14  ;;  %v6558_v13 = vcombine.low %v908_v9, %v912_v1  ;;  %v6565_v14 = vcombine.high %v915_v6, %v919_v7  ;;  %v964_v9 = vld [vmem:[#allocation11 + $0x498] sm:$0xff] }
 0x2d4   :  { %2663 = vmatprep.subr.bf16.mxu0 %v6511_v18  ;;  %v6567_v18 = vcombine.high %v916_v10, %v920_v11  ;;  %v968_v1 = vld [vmem:[#allocation11 + $0x4b8] sm:$0xff] }
 0x2d6   :  { %2578 = vmatpush1.bf16.msra.mxu1 %v6508_v53  ;;  %v6564_v53 = vcombine.low %v915_v6, %v919_v7  ;;  %v971_v6 = vld [vmem:[#allocation11 + $0x4d0] sm:$0xff] }
 0x2d7   :  { %2664 = vmatpush1.bf16.msra.mxu0 %v6510_v26  ;;  %2579 = vmatprep.subr.bf16.mxu1 %v6517_v27  ;;  %v6566_v26 = vcombine.low %v916_v10, %v920_v11  ;;  %v6573_v27 = vcombine.high %v923_v20, %v927_v23  ;;  %v975_v7 = vld [vmem:[#allocation11 + $0x4f0] sm:$0xff]  ;;  %v972_v10 = vld [vmem:[#allocation11 + $0x4d8] sm:$0xff] }
 0x2d8   :  { %2665 = vmatprep.subr.bf16.mxu0 %v6519_v28  ;;  %v6575_v28 = vcombine.high %v924_v24, %v928_v25  ;;  %v976_v11 = vld [vmem:[#allocation11 + $0x4f8] sm:$0xff] }
 0x2da   :  { %2580 = vmatpush1.bf16.msra.mxu1 %v6516_v16  ;;  %v6572_v16 = vcombine.low %v923_v20, %v927_v23  ;;  %v983_v20 = vld [vmem:[#allocation11 + $0x530] sm:$0xff]  ;;  %v980_v23 = vld [vmem:[#allocation11 + $0x518] sm:$0xff] }
 0x2db   :  { %2666 = vmatpush1.bf16.msra.mxu0 %v6518_v17  ;;  %2581 = vmatprep.subr.bf16.mxu1 %v6525_v19  ;;  %v6574_v17 = vcombine.low %v924_v24, %v928_v25  ;;  %v6581_v19 = vcombine.high %v931_v29, %v935_v30  ;;  %v984_v24 = vld [vmem:[#allocation11 + $0x538] sm:$0xff]  ;;  %v6622_v25 = vcombine.low %v972_v10, %v976_v11 }
 0x2dc   :  { %2667 = vmatprep.subr.bf16.mxu0 %v6527_v21  ;;  %v6583_v21 = vcombine.high %v932_v31, %v936_v15 }
 0x2de   :  { %2582 = vmatpush1.bf16.msra.mxu1 %v6524_v38  ;;  %v6580_v38 = vcombine.low %v931_v29, %v935_v30  ;;  %v988_v29 = vld [vmem:[#allocation11 + $0x558] sm:$0xff] }
 0x2df   :  { %2668 = vmatpush1.bf16.msra.mxu0 %v6526_v39  ;;  %2583 = vmatprep.subr.bf16.mxu1 %v6533_v41  ;;  %v6582_v39 = vcombine.low %v932_v31, %v936_v15  ;;  %v6589_v41 = vcombine.high %v939_v22, %v943_v33  ;;  %v992_v30 = vld [vmem:[#allocation11 + $0x578] sm:$0xff]  ;;  %v6630_v15 = vcombine.low %v980_v23, %v984_v24 }
 0x2e0   :  { %2669 = vmatprep.subr.bf16.mxu0 %v6535_v43  ;;  %v6591_v43 = vcombine.high %v940_v35, %v944_v36 }
 0x2e2   :  { %2584 = vmatpush1.bf16.msra.mxu1 %v6532_v48  ;;  %v6588_v48 = vcombine.low %v939_v22, %v943_v33  ;;  %v996_v22 = vld [vmem:[#allocation11 + $0x598] sm:$0xff] }
 0x2e3   :  { %2670 = vmatpush1.bf16.msra.mxu0 %v6534_v49  ;;  %2585 = vmatprep.subr.bf16.mxu1 %v6541_v50  ;;  %v6590_v49 = vcombine.low %v940_v35, %v944_v36  ;;  %v6597_v50 = vcombine.high %v947_v44, %v951_v45  ;;  %v1000_v33 = vld [vmem:[#allocation11 + $0x5b8] sm:$0xff]  ;;  %v6638_v36 = vcombine.low %v988_v29, %v992_v30 }
 0x2e4   :  { %2671 = vmatprep.subr.bf16.mxu0 %v6543_v51  ;;  %v6599_v51 = vcombine.high %v948_v46, %v952_v47  ;;  %v1004_v44 = vld [vmem:[#allocation11 + $0x5d8] sm:$0xff] }
 0x2e5   :  { %v1008_v45 = vld [vmem:[#allocation11 + $0x5f8] sm:$0xff] }
 0x2e6   :  { %2586 = vmatpush1.bf16.msra.mxu1 %v6540_v59  ;;  %v960_v59 = vld [vmem:[#allocation11 + $0x478] sm:$0xff] }
 0x2e7   :  { %2672 = vmatpush1.bf16.msra.mxu0 %v6542_v60  ;;  %2587 = vmatprep.subr.bf16.mxu1 %v6549_v61  ;;  %v6598_v60 = vcombine.low %v948_v46, %v952_v47  ;;  %v6605_v61 = vcombine.high %v955_v52, %v959_v55  ;;  %v6607_v0 = vcombine.high %v956_v58, %v960_v59 }
 0x2e8   :  { %2673 = vmatprep.subr.bf16.mxu0 %v6551_v62  ;;  %v963_v62 = vld [vmem:[#allocation11 + $0x490] sm:$0xff]  ;;  %v6646_v47 = vcombine.low %v996_v22, %v1000_v33 }
 0x2ea   :  { %2588 = vmatpush1.bf16.msra.mxu1 %v6548_v2  ;;  %v6604_v2 = vcombine.low %v955_v52, %v959_v55  ;;  %v1012_v52 = vld [vmem:[#allocation11 + $0x618] sm:$0xff] }
 0x2eb   :  { %2674 = vmatpush1.bf16.msra.mxu0 %v6550_v3  ;;  %2589 = vmatprep.subr.bf16.mxu1 %v6557_v4  ;;  %v6606_v3 = vcombine.low %v956_v58, %v960_v59  ;;  %v6613_v4 = vcombine.high %v963_v62, %v967_v63  ;;  %v1016_v55 = vld [vmem:[#allocation11 + $0x638] sm:$0xff]  ;;  %v6654_v58 = vcombine.low %v1004_v44, %v1008_v45 }
 0x2ec   :  { %2675 = vmatprep.subr.bf16.mxu0 %v6559_v5  ;;  %v6615_v5 = vcombine.high %v964_v9, %v968_v1 }
 0x2ee   :  { %2590 = vmatpush1.bf16.msra.mxu1 %v6556_v12  ;;  %v6612_v12 = vcombine.low %v963_v62, %v967_v63  ;;  %v1023_v62 = vld [vmem:[#allocation11 + $0x670] sm:$0xff]  ;;  %v1020_v63 = vld [vmem:[#allocation11 + $0x658] sm:$0xff] }
 0x2ef   :  { %2676 = vmatpush1.bf16.msra.mxu0 %v6558_v13  ;;  %2591 = vmatprep.subr.bf16.mxu1 %v6565_v14  ;;  %v6621_v13 = vcombine.high %v971_v6, %v975_v7  ;;  %v6623_v14 = vcombine.high %v972_v10, %v976_v11 }
 0x2f0   :  { %2677 = vmatprep.subr.bf16.mxu0 %v6567_v18  ;;  %v979_v18 = vld [vmem:[#allocation11 + $0x510] sm:$0xff] }
 0x2f1   :  { %v6628_v31 = vcombine.low %v979_v18, %v983_v20 }
 0x2f2   :  { %2592 = vmatpush1.bf16.msra.mxu1 %v6564_v53  ;;  %v6629_v53 = vcombine.high %v979_v18, %v983_v20  ;;  %v1036_v18 = vld [vmem:[#allocation11 + $0x6d8] sm:$0xff] }
 0x2f3   :  { %2678 = vmatpush1.bf16.msra.mxu0 %v6566_v26  ;;  %2593 = vmatprep.subr.bf16.mxu1 %v6573_v27  ;;  %v6631_v26 = vcombine.high %v980_v23, %v984_v24  ;;  %v987_v27 = vld [vmem:[#allocation11 + $0x550] sm:$0xff]  ;;  %v1040_v20 = vld [vmem:[#allocation11 + $0x6f8] sm:$0xff] }
 0x2f4   :  { %2679 = vmatprep.subr.bf16.mxu0 %v6575_v28  ;;  %v991_v28 = vld [vmem:[#allocation11 + $0x570] sm:$0xff] }
 0x2f5   :  { %v6636_v35 = vcombine.low %v987_v27, %v991_v28 }
 0x2f6   :  { %2594 = vmatpush1.bf16.msra.mxu1 %v6572_v16  ;;  %v6637_v16 = vcombine.high %v987_v27, %v991_v28  ;;  %v1044_v27 = vld [vmem:[#allocation11 + $0x718] sm:$0xff] }
 0x2f7   :  { %2680 = vmatpush1.bf16.msra.mxu0 %v6574_v17  ;;  %2595 = vmatprep.subr.bf16.mxu1 %v6581_v19  ;;  %v6639_v17 = vcombine.high %v988_v29, %v992_v30  ;;  %v995_v19 = vld [vmem:[#allocation11 + $0x590] sm:$0xff]  ;;  %v1048_v28 = vld [vmem:[#allocation11 + $0x738] sm:$0xff]  ;;  %v6686_v30 = vcombine.low %v1036_v18, %v1040_v20 }
 0x2f8   :  { %2681 = vmatprep.subr.bf16.mxu0 %v6583_v21  ;;  %v999_v21 = vld [vmem:[#allocation11 + $0x5b0] sm:$0xff] }
 0x2f9   :  { %v6644_v46 = vcombine.low %v995_v19, %v999_v21 }
 0x2fa   :  { %2596 = vmatpush1.bf16.msra.mxu1 %v6580_v38  ;;  %v6645_v38 = vcombine.high %v995_v19, %v999_v21  ;;  %v1052_v19 = vld [vmem:[#allocation11 + $0x758] sm:$0xff] }
 0x2fb   :  { %2682 = vmatpush1.bf16.msra.mxu0 %v6582_v39  ;;  %2597 = vmatprep.subr.bf16.mxu1 %v6589_v41  ;;  %v6647_v39 = vcombine.high %v996_v22, %v1000_v33  ;;  %v1003_v41 = vld [vmem:[#allocation11 + $0x5d0] sm:$0xff]  ;;  %v1056_v21 = vld [vmem:[#allocation11 + $0x778] sm:$0xff]  ;;  %v6694_v33 = vcombine.low %v1044_v27, %v1048_v28 }
 0x2fc   :  { %2683 = vmatprep.subr.bf16.mxu0 %v6591_v43  ;;  %v1007_v43 = vld [vmem:[#allocation11 + $0x5f0] sm:$0xff] }
 0x2fe   :  { %2598 = vmatpush1.bf16.msra.mxu1 %v6588_v48  ;;  %v6653_v48 = vcombine.high %v1003_v41, %v1007_v43 }
 0x2ff   :  { %2684 = vmatpush1.bf16.msra.mxu0 %v6590_v49  ;;  %2610 = vmatprep.subr.bf16.mxu1 %v6597_v50  ;;  %v6655_v49 = vcombine.high %v1004_v44, %v1008_v45  ;;  %v1011_v50 = vld [vmem:[#allocation11 + $0x610] sm:$0xff]  ;;  %v6702_v45 = vcombine.low %v1052_v19, %v1056_v21 }
 0x300   :  { %2696 = vmatprep.subr.bf16.mxu0 %v6599_v51  ;;  %v1015_v51 = vld [vmem:[#allocation11 + $0x630] sm:$0xff] }
 0x301   :  { %2600 = vmatmul.mubr.bf16.vlgmr.msra.gmra.mrb[4].mxu1 %v8612_v8  ;;  %v6661_v59 = vcombine.high %v1011_v50, %v1015_v51 }
 0x302   :  { %2686 = vmatmul.mubr.bf16.vlgmr.msra.gmra.mrb[16].mxu0 %v8612_v8  ;;  %2611 = vmatpush1.bf16.msra.mxu1 %v6596_v57  ;;  %v6614_v8 = vcombine.low %v964_v9, %v968_v1  ;;  %v6652_v57 = vcombine.low %v1003_v41, %v1007_v43  ;;  %v6660_v9 = vcombine.low %v1011_v50, %v1015_v51  ;;  %v1060_v41 = vld [vmem:[#allocation11 + $0x798] sm:$0xff] }
 0x303   :  { %2642 = vmatprep.mubr.bf16.mxu1 %v8638_v37  ;;  %2697 = vmatpush1.bf16.msra.mxu0 %v6598_v60  ;;  %v6663_v60 = vcombine.high %v1012_v52, %v1016_v55  ;;  %v6662_v1 = vcombine.low %v1012_v52, %v1016_v55  ;;  %v1064_v43 = vld [vmem:[#allocation11 + $0x7b8] sm:$0xff] }
 0x304   :  { %2728 = vmatprep.mubr.bf16.mxu0 %v8638_v37  ;;  %2612 = vmatprep.subr.bf16.mxu1 %v6605_v61  ;;  %v6620_v37 = vcombine.low %v971_v6, %v975_v7  ;;  %v1019_v61 = vld [vmem:[#allocation11 + $0x650] sm:$0xff]  ;;  %v1028_v6 = vld [vmem:[#allocation11 + $0x698] sm:$0xff]  ;;  %v6710_v55 = vcombine.low %v1060_v41, %v1064_v43 }
 0x305   :  { %2698 = vmatprep.subr.bf16.mxu0 %v6607_v0  ;;  %v1024_v0 = vld [vmem:[#allocation11 + $0x678] sm:$0xff]  ;;  %v6668_v10 = vcombine.low %v1019_v61, %v1023_v62 }
 0x306   :  { %2613 = vmatpush1.bf16.msra.mxu1 %v6604_v2  ;;  %v6669_v2 = vcombine.high %v1019_v61, %v1023_v62  ;;  %v1032_v7 = vld [vmem:[#allocation11 + $0x6b8] sm:$0xff]  ;;  %v6670_v11 = vcombine.low %v1020_v63, %v1024_v0  ;;  %v7496_v61 = vld [vmem:[#allocation14 + $0x4] ss:$28 sps:$4 sm:$0xff]   ;;  %v7499_v62 = vld [vmem:[#allocation14 + $0xc] ss:$28 sps:$4 sm:$0xff]  }
 0x307   :  { %2699 = vmatpush1.bf16.msra.mxu0 %v6606_v3  ;;  %2614 = vmatprep.subr.bf16.mxu1 %v6613_v4  ;;  %v6671_v3 = vcombine.high %v1020_v63, %v1024_v0  ;;  %v1027_v4 = vld [vmem:[#allocation11 + $0x690] sm:$0xff]  ;;  %v6678_v24 = vcombine.low %v1028_v6, %v1032_v7  ;;  %v1068_v50 = vld [vmem:[#allocation11 + $0x7d8] sm:$0xff]  ;;  %v7494_v63 = vld [vmem:[#allocation14] ss:$28 sps:$4 sm:$0xff]  }
 0x308   :  { %2700 = vmatprep.subr.bf16.mxu0 %v6615_v5  ;;  %v1031_v5 = vld [vmem:[#allocation11 + $0x6b0] sm:$0xff]  ;;  %v1072_v51 = vld [vmem:[#allocation11 + $0x7f8] sm:$0xff] }
 0x309   :  { %v6676_v23 = vcombine.low %v1027_v4, %v1031_v5  ;;  %v7497_v0 = vld [vmem:[#allocation14 + $0x8] ss:$28 sps:$4 sm:$0xff]  }
 0x30a   :  { %2615 = vmatpush1.bf16.msra.mxu1 %v6612_v12  ;;  %v6677_v12 = vcombine.high %v1027_v4, %v1031_v5  ;;  %v7508_v4 = vld [vmem:[#allocation14 + $0x74] ss:$28 sps:$4 sm:$0xff]   ;;  %v7511_v5 = vld [vmem:[#allocation14 + $0x7c] ss:$28 sps:$4 sm:$0xff]  }
 0x30b   :  { %2701 = vmatpush1.bf16.msra.mxu0 %v6614_v8  ;;  %2616 = vmatprep.subr.bf16.mxu1 %v6621_v13  ;;  %v6679_v8 = vcombine.high %v1028_v6, %v1032_v7  ;;  %v1035_v13 = vld [vmem:[#allocation11 + $0x6d0] sm:$0xff]  ;;  %v7509_v7 = vld [vmem:[#allocation14 + $0x78] ss:$28 sps:$4 sm:$0xff]  }
 0x30c   :  { %2702 = vmatprep.subr.bf16.mxu0 %v6623_v14  ;;  %v1039_v14 = vld [vmem:[#allocation11 + $0x6f0] sm:$0xff] }
 0x30d   :  { %v6684_v29 = vcombine.low %v1035_v13, %v1039_v14  ;;  %v7506_v6 = vld [vmem:[#allocation14 + $0x70] ss:$28 sps:$4 sm:$0xff]  }
 0x30e   :  { %2617 = vmatpush1.bf16.msra.mxu1 %v6620_v37  ;;  %v6685_v37 = vcombine.high %v1035_v13, %v1039_v14  ;;  %v7523_v13 = vld [vmem:[#allocation14 + $0xec] ss:$28 sps:$4 sm:$0xff]   ;;  %v7518_v14 = vld [vmem:[#allocation14 + $0xe0] ss:$28 sps:$4 sm:$0xff]  }
 0x30f   :  { %2703 = vmatpush1.bf16.msra.mxu0 %v6622_v25  ;;  %2618 = vmatprep.subr.bf16.mxu1 %v6629_v53  ;;  %v6687_v25 = vcombine.high %v1036_v18, %v1040_v20  ;;  %v1043_v53 = vld [vmem:[#allocation11 + $0x710] sm:$0xff]  ;;  %v7526_v20 = vld [vmem:[#allocation14 + $0x11c] ss:$28 sps:$4 sm:$0xff]  }
 0x310   :  { %2704 = vmatprep.subr.bf16.mxu0 %v6631_v26  ;;  %v1047_v26 = vld [vmem:[#allocation11 + $0x730] sm:$0xff] }
 0x311   :  { %v6692_v22 = vcombine.low %v1043_v53, %v1047_v26  ;;  %v7521_v18 = vld [vmem:[#allocation14 + $0xe8] ss:$28 sps:$4 sm:$0xff]  }
 0x312   :  { %2619 = vmatpush1.bf16.msra.mxu1 %v6628_v31  ;;  %v6693_v31 = vcombine.high %v1043_v53, %v1047_v26  ;;  %v7535_v53 = vld [vmem:[#allocation14 + $0x15c] ss:$28 sps:$4 sm:$0xff]   ;;  %v7530_v26 = vld [vmem:[#allocation14 + $0x150] ss:$28 sps:$4 sm:$0xff]  }
 0x313   :  { %2705 = vmatpush1.bf16.msra.mxu0 %v6630_v15  ;;  %2620 = vmatprep.subr.bf16.mxu1 %v6637_v16  ;;  %v6695_v15 = vcombine.high %v1044_v27, %v1048_v28  ;;  %v1051_v16 = vld [vmem:[#allocation11 + $0x750] sm:$0xff]  ;;  %v7533_v27 = vld [vmem:[#allocation14 + $0x158] ss:$28 sps:$4 sm:$0xff]  }
 0x314   :  { %2706 = vmatprep.subr.bf16.mxu0 %v6639_v17  ;;  %v1055_v17 = vld [vmem:[#allocation11 + $0x770] sm:$0xff] }
 0x315   :  { %v6700_v44 = vcombine.low %v1051_v16, %v1055_v17  ;;  %v7538_v28 = vld [vmem:[#allocation14 + $0x18c] ss:$28 sps:$4 sm:$0xff]  }
 0x316   :  { %2621 = vmatpush1.bf16.msra.mxu1 %v6636_v35  ;;  %v6701_v35 = vcombine.high %v1051_v16, %v1055_v17  ;;  %v7547_v16 = vld [vmem:[#allocation14 + $0x1cc] ss:$28 sps:$4 sm:$0xff]   ;;  %v7542_v17 = vld [vmem:[#allocation14 + $0x1c0] ss:$28 sps:$4 sm:$0xff]  }
 0x317   :  { %2707 = vmatpush1.bf16.msra.mxu0 %v6638_v36  ;;  %2622 = vmatprep.subr.bf16.mxu1 %v6645_v38  ;;  %v6703_v36 = vcombine.high %v1052_v19, %v1056_v21  ;;  %v1059_v38 = vld [vmem:[#allocation11 + $0x790] sm:$0xff]  ;;  %v7550_v21 = vld [vmem:[#allocation14 + $0x1fc] ss:$28 sps:$4 sm:$0xff]  }
 0x318   :  { %2708 = vmatprep.subr.bf16.mxu0 %v6647_v39  ;;  %v1063_v39 = vld [vmem:[#allocation11 + $0x7b0] sm:$0xff] }
 0x319   :  { %v6708_v52 = vcombine.low %v1059_v38, %v1063_v39  ;;  %v7545_v19 = vld [vmem:[#allocation14 + $0x1c8] ss:$28 sps:$4 sm:$0xff]  }
 0x31a   :  { %2623 = vmatpush1.bf16.msra.mxu1 %v6644_v46  ;;  %v6709_v46 = vcombine.high %v1059_v38, %v1063_v39  ;;  %v7559_v38 = vld [vmem:[#allocation14 + $0x23c] ss:$28 sps:$4 sm:$0xff]   ;;  %v7554_v39 = vld [vmem:[#allocation14 + $0x230] ss:$28 sps:$4 sm:$0xff]  }
 0x31b   :  { %2709 = vmatpush1.bf16.msra.mxu0 %v6646_v47  ;;  %2624 = vmatprep.subr.bf16.mxu1 %v6653_v48  ;;  %v6711_v47 = vcombine.high %v1060_v41, %v1064_v43  ;;  %v1067_v48 = vld [vmem:[#allocation11 + $0x7d0] sm:$0xff]  ;;  %v7557_v41 = vld [vmem:[#allocation14 + $0x238] ss:$28 sps:$4 sm:$0xff]  }
 0x31c   :  { %2710 = vmatprep.subr.bf16.mxu0 %v6655_v49  ;;  %v1071_v49 = vld [vmem:[#allocation11 + $0x7f0] sm:$0xff] }
 0x31d   :  { %v7562_v43 = vld [vmem:[#allocation14 + $0x26c] ss:$28 sps:$4 sm:$0xff]  }
 0x31e   :  { %2625 = vmatpush1.bf16.msra.mxu1 %v6652_v57  ;;  %v6717_v57 = vcombine.high %v1067_v48, %v1071_v49 }
 0x31f   :  { %2711 = vmatpush1.bf16.msra.mxu0 %v6654_v58  ;;  %2626 = vmatprep.subr.bf16.mxu1 %v6661_v59  ;;  %v6719_v58 = vcombine.high %v1068_v50, %v1072_v51  ;;  %v6716_v59 = vcombine.low %v1067_v48, %v1071_v49  ;;  %v7571_v48 = vld [vmem:[#allocation14 + $0x2ac] ss:$28 sps:$4 sm:$0xff]   ;;  %v7566_v49 = vld [vmem:[#allocation14 + $0x2a0] ss:$28 sps:$4 sm:$0xff]  }
 0x320   :  { %2712 = vmatprep.subr.bf16.mxu0 %v6663_v60  ;;  %v6718_v60 = vcombine.low %v1068_v50, %v1072_v51  ;;  %v7569_v50 = vld [vmem:[#allocation14 + $0x2a8] ss:$28 sps:$4 sm:$0xff]   ;;  %v7574_v51 = vld [vmem:[#allocation14 + $0x2dc] ss:$28 sps:$4 sm:$0xff]  }
 0x322   :  { %2627 = vmatpush1.bf16.msra.mxu1 %v6660_v9  ;;  %v7502_v9 = vld [vmem:[#allocation14 + $0x3c] ss:$28 sps:$4 sm:$0xff]  }
 0x323   :  { %2713 = vmatpush1.bf16.msra.mxu0 %v6662_v1  ;;  %2628 = vmatprep.subr.bf16.mxu1 %v6669_v2  ;;  %v7505_v1 = vld [vmem:[#allocation14 + $0x44] ss:$28 sps:$4 sm:$0xff]   ;;  %v7500_v2 = vld [vmem:[#allocation14 + $0x38] ss:$28 sps:$4 sm:$0xff]  }
 0x324   :  { %2714 = vmatprep.subr.bf16.mxu0 %v6671_v3  ;;  %v7503_v3 = vld [vmem:[#allocation14 + $0x40] ss:$28 sps:$4 sm:$0xff]  }
 0x326   :  { %2629 = vmatpush1.bf16.msra.mxu1 %v6668_v10  ;;  %v7514_v10 = vld [vmem:[#allocation14 + $0xac] ss:$28 sps:$4 sm:$0xff]  }
 0x327   :  { %2715 = vmatpush1.bf16.msra.mxu0 %v6670_v11  ;;  %2630 = vmatprep.subr.bf16.mxu1 %v6677_v12  ;;  %v7517_v11 = vld [vmem:[#allocation14 + $0xb4] ss:$28 sps:$4 sm:$0xff]   ;;  %v7512_v12 = vld [vmem:[#allocation14 + $0xa8] ss:$28 sps:$4 sm:$0xff]  }
 0x328   :  { %2716 = vmatprep.subr.bf16.mxu0 %v6679_v8  ;;  %v7520_v8 = vld [vmem:[#allocation14 + $0xe4] ss:$28 sps:$4 sm:$0xff]  }
 0x32a   :  { %2631 = vmatpush1.bf16.msra.mxu1 %v6676_v23  ;;  %v7529_v23 = vld [vmem:[#allocation14 + $0x124] ss:$28 sps:$4 sm:$0xff]  }
 0x32b   :  { %2717 = vmatpush1.bf16.msra.mxu0 %v6678_v24  ;;  %2632 = vmatprep.subr.bf16.mxu1 %v6685_v37  ;;  %v7524_v24 = vld [vmem:[#allocation14 + $0x118] ss:$28 sps:$4 sm:$0xff]   ;;  %v7527_v37 = vld [vmem:[#allocation14 + $0x120] ss:$28 sps:$4 sm:$0xff]  }
 0x32c   :  { %2718 = vmatprep.subr.bf16.mxu0 %v6687_v25  ;;  %v7532_v25 = vld [vmem:[#allocation14 + $0x154] ss:$28 sps:$4 sm:$0xff]  }
 0x32e   :  { %2633 = vmatpush1.bf16.msra.mxu1 %v6684_v29  ;;  %v7541_v29 = vld [vmem:[#allocation14 + $0x194] ss:$28 sps:$4 sm:$0xff]  }
 0x32f   :  { %2719 = vmatpush1.bf16.msra.mxu0 %v6686_v30  ;;  %2634 = vmatprep.subr.bf16.mxu1 %v6693_v31  ;;  %v7536_v30 = vld [vmem:[#allocation14 + $0x188] ss:$28 sps:$4 sm:$0xff]   ;;  %v7539_v31 = vld [vmem:[#allocation14 + $0x190] ss:$28 sps:$4 sm:$0xff]  }
 0x330   :  { %2720 = vmatprep.subr.bf16.mxu0 %v6695_v15  ;;  %v7544_v15 = vld [vmem:[#allocation14 + $0x1c4] ss:$28 sps:$4 sm:$0xff]  }
 0x332   :  { %2635 = vmatpush1.bf16.msra.mxu1 %v6692_v22  ;;  %v7553_v22 = vld [vmem:[#allocation14 + $0x204] ss:$28 sps:$4 sm:$0xff]  }
 0x333   :  { %2721 = vmatpush1.bf16.msra.mxu0 %v6694_v33  ;;  %2636 = vmatprep.subr.bf16.mxu1 %v6701_v35  ;;  %v7548_v33 = vld [vmem:[#allocation14 + $0x1f8] ss:$28 sps:$4 sm:$0xff]   ;;  %v7551_v35 = vld [vmem:[#allocation14 + $0x200] ss:$28 sps:$4 sm:$0xff]  }
 0x334   :  { %2722 = vmatprep.subr.bf16.mxu0 %v6703_v36  ;;  %v7556_v36 = vld [vmem:[#allocation14 + $0x234] ss:$28 sps:$4 sm:$0xff]  }
 0x336   :  { %2637 = vmatpush1.bf16.msra.mxu1 %v6700_v44  ;;  %v7565_v44 = vld [vmem:[#allocation14 + $0x274] ss:$28 sps:$4 sm:$0xff]  }
 0x337   :  { %2723 = vmatpush1.bf16.msra.mxu0 %v6702_v45  ;;  %2638 = vmatprep.subr.bf16.mxu1 %v6709_v46  ;;  %v7560_v45 = vld [vmem:[#allocation14 + $0x268] ss:$28 sps:$4 sm:$0xff]   ;;  %v7563_v46 = vld [vmem:[#allocation14 + $0x270] ss:$28 sps:$4 sm:$0xff]  }
 0x338   :  { %2724 = vmatprep.subr.bf16.mxu0 %v6711_v47  ;;  %v7568_v47 = vld [vmem:[#allocation14 + $0x2a4] ss:$28 sps:$4 sm:$0xff]  }
 0x33a   :  { %2639 = vmatpush1.bf16.msra.mxu1 %v6708_v52  ;;  %v7577_v52 = vld [vmem:[#allocation14 + $0x2e4] ss:$28 sps:$4 sm:$0xff]  }
 0x33b   :  { %2725 = vmatpush1.bf16.msra.mxu0 %v6710_v55  ;;  %2640 = vmatprep.subr.bf16.mxu1 %v6717_v57  ;;  %v7572_v55 = vld [vmem:[#allocation14 + $0x2d8] ss:$28 sps:$4 sm:$0xff]   ;;  %v7575_v57 = vld [vmem:[#allocation14 + $0x2e0] ss:$28 sps:$4 sm:$0xff]  }
 0x33c   :  { %2726 = vmatprep.subr.bf16.mxu0 %v6719_v58  ;;  %v7580_v58 = vld [vmem:[#allocation14 + $0x314] ss:$28 sps:$4 sm:$0xff]  }
 0x33e   :  { %2641 = vmatpush1.bf16.msra.mxu1 %v6716_v59  ;;  %v7583_v59 = vld [vmem:[#allocation14 + $0x31c] ss:$28 sps:$4 sm:$0xff]  }
 0x33f   :  { %2727 = vmatpush1.bf16.msra.mxu0 %v6718_v60  ;;  %5616 = vmatprep.subr.bf16.mxu1 %v7496_v61  ;;  %v7578_v60 = vld [vmem:[#allocation14 + $0x310] ss:$28 sps:$4 sm:$0xff]   ;;  %v7581_v61 = vld [vmem:[#allocation14 + $0x318] ss:$28 sps:$4 sm:$0xff]  }
 0x340   :  { %5788 = vmatprep.subr.bf16.mxu0 %v7499_v62  ;;  %v7586_v62 = vld [vmem:[#allocation14 + $0x34c] ss:$28 sps:$4 sm:$0xff]  }
 0x341   :  { %2643 = vmatmul.mubr.bf16.vlgmr.msra.gmra.mrb[4].mxu1 %v8636_v32 }
 0x342   :  { %2729 = vmatmul.mubr.bf16.vlgmr.msra.gmra.mrb[16].mxu0 %v8636_v32  ;;  %5617 = vmatpush1.bf16.msra.mxu1 %v7494_v63  ;;  %v7515_v32 = vld [vmem:[#allocation14 + $0xb0] ss:$28 sps:$4 sm:$0xff]  }
 0x343   :  { %5789 = vmatpush1.bf16.msra.mxu0 %v7497_v0  ;;  %5618 = vmatprep.subr.bf16.mxu1 %v7502_v9  ;;  %v7589_v63 = vld [vmem:[#allocation14 + $0x354] ss:$28 sps:$4 sm:$0xff]   ;;  %v7584_v0 = vld [vmem:[#allocation14 + $0x348] ss:$28 sps:$4 sm:$0xff]  }
 0x344   :  { %5790 = vmatprep.subr.bf16.mxu0 %v7505_v1  ;;  %v7587_v9 = vld [vmem:[#allocation14 + $0x350] ss:$28 sps:$4 sm:$0xff]   ;;  %v7592_v1 = vld [vmem:[#allocation14 + $0x384] ss:$28 sps:$4 sm:$0xff]  }
 0x346   :  { %5619 = vmatpush1.bf16.msra.mxu1 %v7500_v2  ;;  %v7595_v2 = vld [vmem:[#allocation14 + $0x38c] ss:$28 sps:$4 sm:$0xff]  }
 0x347   :  { %5791 = vmatpush1.bf16.msra.mxu0 %v7503_v3  ;;  %5620 = vmatprep.subr.bf16.mxu1 %v7508_v4  ;;  %v8652_v3 = vld [vmem:[#allocation13] sm:$0xff] }
 0x348   :  { %5792 = vmatprep.subr.bf16.mxu0 %v7511_v5  ;;  %v1078_v4 = vrot.slane %v8652_v3, %v8579_v40  ;;  %v1086_v5 = vrot.slane %v8652_v3, %v8627_v54 }
 0x34a   :  { %5621 = vmatpush1.bf16.msra.mxu1 %v7506_v6  ;;  %v1082_v6 = vrot.slane %v8652_v3, %v8582_v42 }
 0x34b   :  { %5793 = vmatpush1.bf16.msra.mxu0 %v7509_v7  ;;  %5622 = vmatprep.subr.bf16.mxu1 %v7514_v10  ;;  %v1090_v7 = vrot.slane %v8652_v3, %v8630_v56 }
 0x34c   :  { %5794 = vmatprep.subr.bf16.mxu0 %v7517_v11 }
 0x34e   :  { %5623 = vmatpush1.bf16.msra.mxu1 %v7512_v12 }
 0x34f   :  { %5795 = vmatpush1.bf16.msra.mxu0 %v7515_v32  ;;  %5624 = vmatprep.subr.bf16.mxu1 %v7520_v8 }
 0x350   :  { %5796 = vmatprep.subr.bf16.mxu0 %v7523_v13 }
 0x352   :  { %5625 = vmatpush1.bf16.msra.mxu1 %v7518_v14 }
 0x353   :  { %5797 = vmatpush1.bf16.msra.mxu0 %v7521_v18  ;;  %5626 = vmatprep.subr.bf16.mxu1 %v7526_v20 }
 0x354   :  { %5798 = vmatprep.subr.bf16.mxu0 %v7529_v23 }
 0x356   :  { %5627 = vmatpush1.bf16.msra.mxu1 %v7524_v24 }
 0x357   :  { %5799 = vmatpush1.bf16.msra.mxu0 %v7527_v37  ;;  %5628 = vmatprep.subr.bf16.mxu1 %v7532_v25 }
 0x358   :  { %5800 = vmatprep.subr.bf16.mxu0 %v7535_v53 }
 0x35a   :  { %5629 = vmatpush1.bf16.msra.mxu1 %v7530_v26 }
 0x35b   :  { %5801 = vmatpush1.bf16.msra.mxu0 %v7533_v27  ;;  %5630 = vmatprep.subr.bf16.mxu1 %v7538_v28 }
 0x35c   :  { %5802 = vmatprep.subr.bf16.mxu0 %v7541_v29 }
 0x35e   :  { %5631 = vmatpush1.bf16.msra.mxu1 %v7536_v30 }
 0x35f   :  { %5803 = vmatpush1.bf16.msra.mxu0 %v7539_v31  ;;  %5632 = vmatprep.subr.bf16.mxu1 %v7544_v15 }
 0x360   :  { %5804 = vmatprep.subr.bf16.mxu0 %v7547_v16 }
 0x362   :  { %5633 = vmatpush1.bf16.msra.mxu1 %v7542_v17 }
 0x363   :  { %5805 = vmatpush1.bf16.msra.mxu0 %v7545_v19  ;;  %5634 = vmatprep.subr.bf16.mxu1 %v7550_v21 }
 0x364   :  { %5806 = vmatprep.subr.bf16.mxu0 %v7553_v22 }
 0x366   :  { %5635 = vmatpush1.bf16.msra.mxu1 %v7548_v33 }
 0x367   :  { %5807 = vmatpush1.bf16.msra.mxu0 %v7551_v35  ;;  %5636 = vmatprep.subr.bf16.mxu1 %v7556_v36  ;;  %v7590_v36 = vld [vmem:[#allocation14 + $0x380] ss:$28 sps:$4 sm:$0xff]  }
 0x368   :  { %5808 = vmatprep.subr.bf16.mxu0 %v7559_v38  ;;  %v7593_v38 = vld [vmem:[#allocation14 + $0x388] ss:$28 sps:$4 sm:$0xff]  }
 0x36a   :  { %5637 = vmatpush1.bf16.msra.mxu1 %v7554_v39  ;;  %v7598_v39 = vld [vmem:[#allocation14 + $0x3bc] ss:$28 sps:$4 sm:$0xff]  }
 0x36b   :  { %5809 = vmatpush1.bf16.msra.mxu0 %v7557_v41  ;;  %5638 = vmatprep.subr.bf16.mxu1 %v7562_v43  ;;  %v7601_v41 = vld [vmem:[#allocation14 + $0x3c4] ss:$28 sps:$4 sm:$0xff]   ;;  %v7596_v43 = vld [vmem:[#allocation14 + $0x3b8] ss:$28 sps:$4 sm:$0xff]  }
 0x36c   :  { %5810 = vmatprep.subr.bf16.mxu0 %v7565_v44  ;;  %v7599_v44 = vld [vmem:[#allocation14 + $0x3c0] ss:$28 sps:$4 sm:$0xff]  }
 0x36e   :  { %5639 = vmatpush1.bf16.msra.mxu1 %v7560_v45  ;;  %v7604_v45 = vld [vmem:[#allocation14 + $0x3f4] ss:$28 sps:$4 sm:$0xff]  }
 0x36f   :  { %5811 = vmatpush1.bf16.msra.mxu0 %v7563_v46  ;;  %5640 = vmatprep.subr.bf16.mxu1 %v7568_v47  ;;  %v7607_v46 = vld [vmem:[#allocation14 + $0x3fc] ss:$28 sps:$4 sm:$0xff]   ;;  %v7602_v47 = vld [vmem:[#allocation14 + $0x3f0] ss:$28 sps:$4 sm:$0xff]  }
 0x370   :  { %5812 = vmatprep.subr.bf16.mxu0 %v7571_v48  ;;  %v7605_v48 = vld [vmem:[#allocation14 + $0x3f8] ss:$28 sps:$4 sm:$0xff]  }
 0x372   :  { %5641 = vmatpush1.bf16.msra.mxu1 %v7566_v49  ;;  %v7610_v49 = vld [vmem:[#allocation14 + $0x42c] ss:$28 sps:$4 sm:$0xff]  }
 0x373   :  { %5813 = vmatpush1.bf16.msra.mxu0 %v7569_v50  ;;  %5642 = vmatprep.subr.bf16.mxu1 %v7574_v51  ;;  %v7613_v50 = vld [vmem:[#allocation14 + $0x434] ss:$28 sps:$4 sm:$0xff]   ;;  %v7608_v51 = vld [vmem:[#allocation14 + $0x428] ss:$28 sps:$4 sm:$0xff]  }
 0x374   :  { %5814 = vmatprep.subr.bf16.mxu0 %v7577_v52  ;;  %v7611_v52 = vld [vmem:[#allocation14 + $0x430] ss:$28 sps:$4 sm:$0xff]  }
 0x376   :  { %5643 = vmatpush1.bf16.msra.mxu1 %v7572_v55  ;;  %v7616_v55 = vld [vmem:[#allocation14 + $0x464] ss:$28 sps:$4 sm:$0xff]  }
 0x377   :  { %5815 = vmatpush1.bf16.msra.mxu0 %v7575_v57  ;;  %5644 = vmatprep.subr.bf16.mxu1 %v7580_v58  ;;  %v7619_v57 = vld [vmem:[#allocation14 + $0x46c] ss:$28 sps:$4 sm:$0xff]   ;;  %v7614_v58 = vld [vmem:[#allocation14 + $0x460] ss:$28 sps:$4 sm:$0xff]  }
 0x378   :  { %5816 = vmatprep.subr.bf16.mxu0 %v7583_v59  ;;  %v7617_v59 = vld [vmem:[#allocation14 + $0x468] ss:$28 sps:$4 sm:$0xff]  }
 0x37a   :  { %5645 = vmatpush1.bf16.msra.mxu1 %v7578_v60  ;;  %v7622_v60 = vld [vmem:[#allocation14 + $0x49c] ss:$28 sps:$4 sm:$0xff]  }
 0x37b   :  { %5817 = vmatpush1.bf16.msra.mxu0 %v7581_v61  ;;  %5646 = vmatprep.subr.bf16.mxu1 %v7586_v62  ;;  %v7625_v61 = vld [vmem:[#allocation14 + $0x4a4] ss:$28 sps:$4 sm:$0xff]   ;;  %v7620_v62 = vld [vmem:[#allocation14 + $0x498] ss:$28 sps:$4 sm:$0xff]  }
 0x37c   :  { %5818 = vmatprep.subr.bf16.mxu0 %v7589_v63  ;;  %v7623_v63 = vld [vmem:[#allocation14 + $0x4a0] ss:$28 sps:$4 sm:$0xff]  }
 0x37e   :  { %5647 = vmatpush1.bf16.msra.mxu1 %v7584_v0  ;;  %v7628_v0 = vld [vmem:[#allocation14 + $0x4d4] ss:$28 sps:$4 sm:$0xff]  }
 0x37f   :  { %5819 = vmatpush1.bf16.msra.mxu0 %v7587_v9  ;;  %5659 = vmatprep.subr.bf16.mxu1 %v7592_v1  ;;  %v7631_v9 = vld [vmem:[#allocation14 + $0x4dc] ss:$28 sps:$4 sm:$0xff]   ;;  %v7626_v1 = vld [vmem:[#allocation14 + $0x4d0] ss:$28 sps:$4 sm:$0xff]  }
 0x380   :  { %5831 = vmatprep.subr.bf16.mxu0 %v7595_v2  ;;  %v7629_v2 = vld [vmem:[#allocation14 + $0x4d8] ss:$28 sps:$4 sm:$0xff]  }
 0x394   :  { %v2472_v10 = vpop.f32.mrb[0].mxu1  ;;  %v2558_v11 = vpop.f32.mrb[12].mxu0 }
 0x395   :  { %v7272_v12 = vadd.f32 %v2472_v10, %v1078_v4  ;;  %v7276_v32 = vadd.f32 %v2558_v11, %v1086_v5  ;;  %v2474_v8 = vpop.f32.mrb[1].mxu1  ;;  %v2560_v13 = vpop.f32.mrb[13].mxu0  ;;  %v7640_v10 = vld [vmem:[#allocation14 + $0x544] ss:$28 sps:$4 sm:$0xff]   ;;  %v7643_v11 = vld [vmem:[#allocation14 + $0x54c] ss:$28 sps:$4 sm:$0xff]  }
 0x396   :  { %v7273_v14 = vadd.f32 %v2474_v8, %v1082_v6  ;;  %v7277_v18 = vadd.f32 %v2560_v13, %v1090_v7  ;;  %v2476_v20 = vpop.f32.mrb[2].mxu1  ;;  %v2562_v23 = vpop.f32.mrb[14].mxu0  ;;  %v7646_v8 = vld [vmem:[#allocation14 + $0x57c] ss:$28 sps:$4 sm:$0xff]   ;;  %v7649_v13 = vld [vmem:[#allocation14 + $0x584] ss:$28 sps:$4 sm:$0xff]  }
 0x397   :  { %v7274_v24 = vadd.f32 %v2476_v20, %v1078_v4  ;;  %v7278_v37 = vadd.f32 %v2562_v23, %v1086_v5  ;;  %v2478_v25 = vpop.f32.mrb[3].mxu1  ;;  %v2564_v53 = vpop.f32.mrb[15].mxu0  ;;  %v2739_v28 = vmax.f32 %v7272_v12, 0.0  ;;  %v2741_v29 = vmax.f32 %v7276_v32, 0.0  ;;  %v7634_v4 = vld [vmem:[#allocation14 + $0x50c] ss:$28 sps:$4 sm:$0xff]  }
 0x398   :  { %v7275_v26 = vadd.f32 %v2478_v25, %v1082_v6  ;;  %v7279_v27 = vadd.f32 %v2564_v53, %v1090_v7  ;;  %v2740_v15 = vmax.f32 %v7273_v14, 0.0  ;;  %v2742_v16 = vmax.f32 %v7277_v18, 0.0  ;;  %v7637_v5 = vld [vmem:[#allocation14 + $0x514] ss:$28 sps:$4 sm:$0xff]   ;;  %v7632_v6 = vld [vmem:[#allocation14 + $0x508] ss:$28 sps:$4 sm:$0xff]  }
 0x399   :  { %v2747_v30 = vmax.f32 %v7274_v24, 0.0  ;;  %v2749_v31 = vmax.f32 %v7278_v37, 0.0  ;;  %v7635_v7 = vld [vmem:[#allocation14 + $0x510] ss:$28 sps:$4 sm:$0xff]   ;;  %v7638_v12 = vld [vmem:[#allocation14 + $0x540] ss:$28 sps:$4 sm:$0xff]  }
 0x39a   :  { %v2748_v17 = vmax.f32 %v7275_v26, 0.0  ;;  %v2750_v19 = vmax.f32 %v7279_v27, 0.0  ;;  %v7641_v32 = vld [vmem:[#allocation14 + $0x548] ss:$28 sps:$4 sm:$0xff]   ;;  %v7644_v14 = vld [vmem:[#allocation14 + $0x578] ss:$28 sps:$4 sm:$0xff]  }
 0x39b   :  { %v8662_v21 = vpack.c.bf16 %v2747_v30, %v2739_v28  ;;  %v8664_v22 = vpack.c.bf16 %v2749_v31, %v2741_v29  ;;  %v7647_v18 = vld [vmem:[#allocation14 + $0x580] ss:$28 sps:$4 sm:$0xff]   ;;  %v7652_v20 = vld [vmem:[#allocation14 + $0x5b4] ss:$28 sps:$4 sm:$0xff]   ;;  %v7658_v25 = vld [vmem:[#allocation14 + $0x5ec] ss:$28 sps:$4 sm:$0xff]  }
 0x39c   :  { %v8666_v33 = vpack.c.bf16 %v2748_v17, %v2740_v15  ;;  %v8668_v35 = vpack.c.bf16 %v2750_v19, %v2742_v16  ;;  %v7655_v23 = vld [vmem:[#allocation14 + $0x5bc] ss:$28 sps:$4 sm:$0xff]   ;;  %v7650_v24 = vld [vmem:[#allocation14 + $0x5b0] ss:$28 sps:$4 sm:$0xff]   ;;  %v7656_v26 = vld [vmem:[#allocation14 + $0x5e8] ss:$28 sps:$4 sm:$0xff]  }
 0x39d   :  { %v7653_v37 = vld [vmem:[#allocation14 + $0x5b8] ss:$28 sps:$4 sm:$0xff]   ;;  %v7659_v27 = vld [vmem:[#allocation14 + $0x5f0] ss:$28 sps:$4 sm:$0xff]   ;;  %v7664_v28 = vld [vmem:[#allocation14 + $0x624] ss:$28 sps:$4 sm:$0xff]  }
 0x39e   :  { %5648 = vmatprep.mubr.bf16.mxu1 %v8666_v33  ;;  %5820 = vmatprep.mubr.bf16.mxu0 %v8666_v33  ;;  %v7661_v53 = vld [vmem:[#allocation14 + $0x5f4] ss:$28 sps:$4 sm:$0xff]   ;;  %v7667_v29 = vld [vmem:[#allocation14 + $0x62c] ss:$28 sps:$4 sm:$0xff]   ;;  %v7662_v30 = vld [vmem:[#allocation14 + $0x620] ss:$28 sps:$4 sm:$0xff]  }
 0x39f   :  { %5649 = vmatmul.mubr.bf16.vlgmr.msra.gmra.mrb[8].mxu1 %v8662_v21  ;;  %5821 = vmatmul.mubr.bf16.vlgmr.msra.gmra.mrb[20].mxu0 %v8662_v21  ;;  %v7665_v31 = vld [vmem:[#allocation14 + $0x628] ss:$28 sps:$4 sm:$0xff]   ;;  %v7670_v15 = vld [vmem:[#allocation14 + $0x65c] ss:$28 sps:$4 sm:$0xff]  }
 0x3a0   :  { %5660 = vmatpush1.bf16.msra.mxu1 %v7590_v36  ;;  %5832 = vmatpush1.bf16.msra.mxu0 %v7593_v38  ;;  %v7673_v16 = vld [vmem:[#allocation14 + $0x664] ss:$28 sps:$4 sm:$0xff]   ;;  %v7668_v17 = vld [vmem:[#allocation14 + $0x658] ss:$28 sps:$4 sm:$0xff]  }
 0x3a1   :  { %5691 = vmatprep.mubr.bf16.mxu1 %v8668_v35  ;;  %5863 = vmatprep.mubr.bf16.mxu0 %v8668_v35  ;;  %v7671_v19 = vld [vmem:[#allocation14 + $0x660] ss:$28 sps:$4 sm:$0xff]   ;;  %v7676_v36 = vld [vmem:[#allocation14 + $0x694] ss:$28 sps:$4 sm:$0xff]  }
 0x3a2   :  { %5661 = vmatprep.subr.bf16.mxu1 %v7598_v39  ;;  %5833 = vmatprep.subr.bf16.mxu0 %v7601_v41  ;;  %v7679_v38 = vld [vmem:[#allocation14 + $0x69c] ss:$28 sps:$4 sm:$0xff]   ;;  %v7674_v39 = vld [vmem:[#allocation14 + $0x690] ss:$28 sps:$4 sm:$0xff]  }
 0x3a3   :  { %v7677_v41 = vld [vmem:[#allocation14 + $0x698] ss:$28 sps:$4 sm:$0xff]  }
 0x3a4   :  { %5662 = vmatpush1.bf16.msra.mxu1 %v7596_v43  ;;  %5834 = vmatpush1.bf16.msra.mxu0 %v7599_v44  ;;  %v7682_v43 = vld [vmem:[#allocation14 + $0x6cc] ss:$28 sps:$4 sm:$0xff]   ;;  %v7685_v44 = vld [vmem:[#allocation14 + $0x6d4] ss:$28 sps:$4 sm:$0xff]  }
 0x3a5   :  { %5663 = vmatprep.subr.bf16.mxu1 %v7604_v45  ;;  %5835 = vmatprep.subr.bf16.mxu0 %v7607_v46  ;;  %v7680_v45 = vld [vmem:[#allocation14 + $0x6c8] ss:$28 sps:$4 sm:$0xff]   ;;  %v7683_v46 = vld [vmem:[#allocation14 + $0x6d0] ss:$28 sps:$4 sm:$0xff]  }
 0x3a8   :  { %5664 = vmatpush1.bf16.msra.mxu1 %v7602_v47  ;;  %5836 = vmatpush1.bf16.msra.mxu0 %v7605_v48  ;;  %v7688_v47 = vld [vmem:[#allocation14 + $0x704] ss:$28 sps:$4 sm:$0xff]   ;;  %v7691_v48 = vld [vmem:[#allocation14 + $0x70c] ss:$28 sps:$4 sm:$0xff]  }
 0x3a9   :  { %5665 = vmatprep.subr.bf16.mxu1 %v7610_v49  ;;  %5837 = vmatprep.subr.bf16.mxu0 %v7613_v50  ;;  %v7686_v49 = vld [vmem:[#allocation14 + $0x700] ss:$28 sps:$4 sm:$0xff]   ;;  %v7689_v50 = vld [vmem:[#allocation14 + $0x708] ss:$28 sps:$4 sm:$0xff]  }
 0x3ac   :  { %5666 = vmatpush1.bf16.msra.mxu1 %v7608_v51  ;;  %5838 = vmatpush1.bf16.msra.mxu0 %v7611_v52  ;;  %v7694_v51 = vld [vmem:[#allocation14 + $0x73c] ss:$28 sps:$4 sm:$0xff]   ;;  %v7697_v52 = vld [vmem:[#allocation14 + $0x744] ss:$28 sps:$4 sm:$0xff]  }
 0x3ad   :  { %5667 = vmatprep.subr.bf16.mxu1 %v7616_v55  ;;  %5839 = vmatprep.subr.bf16.mxu0 %v7619_v57  ;;  %v7692_v55 = vld [vmem:[#allocation14 + $0x738] ss:$28 sps:$4 sm:$0xff]   ;;  %v7695_v57 = vld [vmem:[#allocation14 + $0x740] ss:$28 sps:$4 sm:$0xff]  }
 0x3b0   :  { %5668 = vmatpush1.bf16.msra.mxu1 %v7614_v58  ;;  %5840 = vmatpush1.bf16.msra.mxu0 %v7617_v59  ;;  %v7700_v58 = vld [vmem:[#allocation14 + $0x774] ss:$28 sps:$4 sm:$0xff]   ;;  %v7703_v59 = vld [vmem:[#allocation14 + $0x77c] ss:$28 sps:$4 sm:$0xff]  }
 0x3b1   :  { %5669 = vmatprep.subr.bf16.mxu1 %v7622_v60  ;;  %5841 = vmatprep.subr.bf16.mxu0 %v7625_v61  ;;  %v7698_v60 = vld [vmem:[#allocation14 + $0x770] ss:$28 sps:$4 sm:$0xff]   ;;  %v7701_v61 = vld [vmem:[#allocation14 + $0x778] ss:$28 sps:$4 sm:$0xff]  }
 0x3b4   :  { %5670 = vmatpush1.bf16.msra.mxu1 %v7620_v62  ;;  %5842 = vmatpush1.bf16.msra.mxu0 %v7623_v63  ;;  %v7706_v62 = vld [vmem:[#allocation14 + $0x7ac] ss:$28 sps:$4 sm:$0xff]   ;;  %v7709_v63 = vld [vmem:[#allocation14 + $0x7b4] ss:$28 sps:$4 sm:$0xff]  }
 0x3b5   :  { %5671 = vmatprep.subr.bf16.mxu1 %v7628_v0  ;;  %5843 = vmatprep.subr.bf16.mxu0 %v7631_v9  ;;  %v7704_v0 = vld [vmem:[#allocation14 + $0x7a8] ss:$28 sps:$4 sm:$0xff]   ;;  %v7707_v9 = vld [vmem:[#allocation14 + $0x7b0] ss:$28 sps:$4 sm:$0xff]  }
 0x3b8   :  { %5672 = vmatpush1.bf16.msra.mxu1 %v7626_v1  ;;  %5844 = vmatpush1.bf16.msra.mxu0 %v7629_v2  ;;  %v7712_v1 = vld [vmem:[#allocation14 + $0x7e4] ss:$28 sps:$4 sm:$0xff]   ;;  %v7715_v2 = vld [vmem:[#allocation14 + $0x7ec] ss:$28 sps:$4 sm:$0xff]  }
 0x3b9   :  { %5673 = vmatprep.subr.bf16.mxu1 %v7634_v4  ;;  %5845 = vmatprep.subr.bf16.mxu0 %v7637_v5  ;;  %v7710_v4 = vld [vmem:[#allocation14 + $0x7e0] ss:$28 sps:$4 sm:$0xff]   ;;  %v7713_v5 = vld [vmem:[#allocation14 + $0x7e8] ss:$28 sps:$4 sm:$0xff]  }
 0x3bc   :  { %5674 = vmatpush1.bf16.msra.mxu1 %v7632_v6  ;;  %5846 = vmatpush1.bf16.msra.mxu0 %v7635_v7  ;;  %v7718_v6 = vld [vmem:[#allocation14 + $0x81c] ss:$28 sps:$4 sm:$0xff]   ;;  %v7721_v7 = vld [vmem:[#allocation14 + $0x824] ss:$28 sps:$4 sm:$0xff]  }
 0x3bd   :  { %5675 = vmatprep.subr.bf16.mxu1 %v7640_v10  ;;  %5847 = vmatprep.subr.bf16.mxu0 %v7643_v11  ;;  %v7716_v10 = vld [vmem:[#allocation14 + $0x818] ss:$28 sps:$4 sm:$0xff]   ;;  %v7719_v11 = vld [vmem:[#allocation14 + $0x820] ss:$28 sps:$4 sm:$0xff]  }
 0x3c0   :  { %5676 = vmatpush1.bf16.msra.mxu1 %v7638_v12  ;;  %5848 = vmatpush1.bf16.msra.mxu0 %v7641_v32  ;;  %v7724_v12 = vld [vmem:[#allocation14 + $0x854] ss:$28 sps:$4 sm:$0xff]   ;;  %v7727_v32 = vld [vmem:[#allocation14 + $0x85c] ss:$28 sps:$4 sm:$0xff]  }
 0x3c1   :  { %5677 = vmatprep.subr.bf16.mxu1 %v7646_v8  ;;  %5849 = vmatprep.subr.bf16.mxu0 %v7649_v13  ;;  %v7722_v8 = vld [vmem:[#allocation14 + $0x850] ss:$28 sps:$4 sm:$0xff]   ;;  %v7725_v13 = vld [vmem:[#allocation14 + $0x858] ss:$28 sps:$4 sm:$0xff]  }
 0x3c4   :  { %5678 = vmatpush1.bf16.msra.mxu1 %v7644_v14  ;;  %5850 = vmatpush1.bf16.msra.mxu0 %v7647_v18  ;;  %v7730_v14 = vld [vmem:[#allocation14 + $0x88c] ss:$28 sps:$4 sm:$0xff]   ;;  %v7733_v18 = vld [vmem:[#allocation14 + $0x894] ss:$28 sps:$4 sm:$0xff]  }
 0x3c5   :  { %5679 = vmatprep.subr.bf16.mxu1 %v7652_v20  ;;  %5851 = vmatprep.subr.bf16.mxu0 %v7655_v23  ;;  %v7728_v20 = vld [vmem:[#allocation14 + $0x888] ss:$28 sps:$4 sm:$0xff]   ;;  %v7731_v23 = vld [vmem:[#allocation14 + $0x890] ss:$28 sps:$4 sm:$0xff]  }
 0x3c8   :  { %5680 = vmatpush1.bf16.msra.mxu1 %v7650_v24  ;;  %5852 = vmatpush1.bf16.msra.mxu0 %v7653_v37  ;;  %v7736_v24 = vld [vmem:[#allocation14 + $0x8c4] ss:$28 sps:$4 sm:$0xff]   ;;  %v7739_v37 = vld [vmem:[#allocation14 + $0x8cc] ss:$28 sps:$4 sm:$0xff]  }
 0x3c9   :  { %5681 = vmatprep.subr.bf16.mxu1 %v7658_v25  ;;  %5853 = vmatprep.subr.bf16.mxu0 %v7661_v53  ;;  %v7734_v25 = vld [vmem:[#allocation14 + $0x8c0] ss:$28 sps:$4 sm:$0xff]   ;;  %v7737_v53 = vld [vmem:[#allocation14 + $0x8c8] ss:$28 sps:$4 sm:$0xff]  }
 0x3cc   :  { %5682 = vmatpush1.bf16.msra.mxu1 %v7656_v26  ;;  %5854 = vmatpush1.bf16.msra.mxu0 %v7659_v27  ;;  %v7742_v26 = vld [vmem:[#allocation14 + $0x8fc] ss:$28 sps:$4 sm:$0xff]   ;;  %v7745_v27 = vld [vmem:[#allocation14 + $0x904] ss:$28 sps:$4 sm:$0xff]  }
 0x3cd   :  { %5683 = vmatprep.subr.bf16.mxu1 %v7664_v28  ;;  %5855 = vmatprep.subr.bf16.mxu0 %v7667_v29  ;;  %v7740_v28 = vld [vmem:[#allocation14 + $0x8f8] ss:$28 sps:$4 sm:$0xff]   ;;  %v7743_v29 = vld [vmem:[#allocation14 + $0x900] ss:$28 sps:$4 sm:$0xff]  }
 0x3d0   :  { %5684 = vmatpush1.bf16.msra.mxu1 %v7662_v30  ;;  %5856 = vmatpush1.bf16.msra.mxu0 %v7665_v31  ;;  %v7748_v30 = vld [vmem:[#allocation14 + $0x934] ss:$28 sps:$4 sm:$0xff]   ;;  %v7751_v31 = vld [vmem:[#allocation14 + $0x93c] ss:$28 sps:$4 sm:$0xff]  }
 0x3d1   :  { %5685 = vmatprep.subr.bf16.mxu1 %v7670_v15  ;;  %5857 = vmatprep.subr.bf16.mxu0 %v7673_v16  ;;  %v7746_v15 = vld [vmem:[#allocation14 + $0x930] ss:$28 sps:$4 sm:$0xff]   ;;  %v7749_v16 = vld [vmem:[#allocation14 + $0x938] ss:$28 sps:$4 sm:$0xff]  }
 0x3d4   :  { %5686 = vmatpush1.bf16.msra.mxu1 %v7668_v17  ;;  %5858 = vmatpush1.bf16.msra.mxu0 %v7671_v19  ;;  %v7754_v17 = vld [vmem:[#allocation14 + $0x96c] ss:$28 sps:$4 sm:$0xff]   ;;  %v7757_v19 = vld [vmem:[#allocation14 + $0x974] ss:$28 sps:$4 sm:$0xff]  }
 0x3d5   :  { %5687 = vmatprep.subr.bf16.mxu1 %v7676_v36  ;;  %5859 = vmatprep.subr.bf16.mxu0 %v7679_v38  ;;  %v7752_v36 = vld [vmem:[#allocation14 + $0x968] ss:$28 sps:$4 sm:$0xff]   ;;  %v7755_v38 = vld [vmem:[#allocation14 + $0x970] ss:$28 sps:$4 sm:$0xff]  }
 0x3d8   :  { %5688 = vmatpush1.bf16.msra.mxu1 %v7674_v39  ;;  %5860 = vmatpush1.bf16.msra.mxu0 %v7677_v41  ;;  %v7760_v39 = vld [vmem:[#allocation14 + $0x9a4] ss:$28 sps:$4 sm:$0xff]   ;;  %v7763_v41 = vld [vmem:[#allocation14 + $0x9ac] ss:$28 sps:$4 sm:$0xff]  }
 0x3d9   :  { %5689 = vmatprep.subr.bf16.mxu1 %v7682_v43  ;;  %5861 = vmatprep.subr.bf16.mxu0 %v7685_v44  ;;  %v7758_v43 = vld [vmem:[#allocation14 + $0x9a0] ss:$28 sps:$4 sm:$0xff]   ;;  %v7761_v44 = vld [vmem:[#allocation14 + $0x9a8] ss:$28 sps:$4 sm:$0xff]  }
 0x3dc   :  { %5690 = vmatpush1.bf16.msra.mxu1 %v7680_v45  ;;  %5862 = vmatpush1.bf16.msra.mxu0 %v7683_v46  ;;  %v7766_v45 = vld [vmem:[#allocation14 + $0x9dc] ss:$28 sps:$4 sm:$0xff]   ;;  %v7769_v46 = vld [vmem:[#allocation14 + $0x9e4] ss:$28 sps:$4 sm:$0xff]  }
 0x3dd   :  { %5702 = vmatprep.subr.bf16.mxu1 %v7688_v47  ;;  %5874 = vmatprep.subr.bf16.mxu0 %v7691_v48  ;;  %v1093_v47 = vsub.s32 4, %v8576_v34  ;;  %v1101_v48 = vsub.s32 6, %v8576_v34 }
 0x3df   :  { %5692 = vmatmul.mubr.bf16.vlgmr.msra.gmra.mrb[8].mxu1 %v8664_v22  ;;  %5864 = vmatmul.mubr.bf16.vlgmr.msra.gmra.mrb[20].mxu0 %v8664_v22 }
 0x3e0   :  { %5703 = vmatpush1.bf16.msra.mxu1 %v7686_v49  ;;  %5875 = vmatpush1.bf16.msra.mxu0 %v7689_v50  ;;  %v1097_v49 = vsub.s32 5, %v8576_v34  ;;  %v1105_v50 = vsub.s32 7, %v8576_v34 }
 0x3e1   :  { %5704 = vmatprep.subr.bf16.mxu1 %v7694_v51  ;;  %5876 = vmatprep.subr.bf16.mxu0 %v7697_v52  ;;  %v7764_v51 = vld [vmem:[#allocation14 + $0x9d8] ss:$28 sps:$4 sm:$0xff]   ;;  %v7767_v52 = vld [vmem:[#allocation14 + $0x9e0] ss:$28 sps:$4 sm:$0xff]  }
 0x3e4   :  { %5705 = vmatpush1.bf16.msra.mxu1 %v7692_v55  ;;  %5877 = vmatpush1.bf16.msra.mxu0 %v7695_v57  ;;  %v1094_v55 = vrot.slane %v8652_v3, %v1093_v47  ;;  %v7772_v57 = vld [vmem:[#allocation14 + $0xa14] ss:$28 sps:$4 sm:$0xff]  }
 0x3e5   :  { %5706 = vmatprep.subr.bf16.mxu1 %v7700_v58  ;;  %5878 = vmatprep.subr.bf16.mxu0 %v7703_v59  ;;  %v7775_v58 = vld [vmem:[#allocation14 + $0xa1c] ss:$28 sps:$4 sm:$0xff]   ;;  %v1102_v59 = vrot.slane %v8652_v3, %v1101_v48 }
 0x3e8   :  { %5707 = vmatpush1.bf16.msra.mxu1 %v7698_v60  ;;  %5879 = vmatpush1.bf16.msra.mxu0 %v7701_v61  ;;  %v1098_v60 = vrot.slane %v8652_v3, %v1097_v49  ;;  %v1106_v61 = vrot.slane %v8652_v3, %v1105_v50  ;;  %v7799_v50 = vld [vmem:[#allocation14 + $0xafc] ss:$28 sps:$4 sm:$0xff]  }
 0x3e9   :  { %5708 = vmatprep.subr.bf16.mxu1 %v7706_v62  ;;  %5880 = vmatprep.subr.bf16.mxu0 %v7709_v63  ;;  %v7770_v63 = vld [vmem:[#allocation14 + $0xa10] ss:$28 sps:$4 sm:$0xff]  }
 0x3ec   :  { %5709 = vmatpush1.bf16.msra.mxu1 %v7704_v0  ;;  %5881 = vmatpush1.bf16.msra.mxu0 %v7707_v9  ;;  %v7773_v0 = vld [vmem:[#allocation14 + $0xa18] ss:$28 sps:$4 sm:$0xff]  }
 0x3ed   :  { %5710 = vmatprep.subr.bf16.mxu1 %v7712_v1  ;;  %5882 = vmatprep.subr.bf16.mxu0 %v7715_v2 }
 0x3f0   :  { %5711 = vmatpush1.bf16.msra.mxu1 %v7710_v4  ;;  %5883 = vmatpush1.bf16.msra.mxu0 %v7713_v5  ;;  %v7778_v4 = vld [vmem:[#allocation14 + $0xa4c] ss:$28 sps:$4 sm:$0xff]   ;;  %v7781_v5 = vld [vmem:[#allocation14 + $0xa54] ss:$28 sps:$4 sm:$0xff]  }
 0x3f1   :  { %5712 = vmatprep.subr.bf16.mxu1 %v7718_v6  ;;  %5884 = vmatprep.subr.bf16.mxu0 %v7721_v7 }
 0x3f4   :  { %5713 = vmatpush1.bf16.msra.mxu1 %v7716_v10  ;;  %5885 = vmatpush1.bf16.msra.mxu0 %v7719_v11 }
 0x3f5   :  { %5714 = vmatprep.subr.bf16.mxu1 %v7724_v12  ;;  %5886 = vmatprep.subr.bf16.mxu0 %v7727_v32 }
 0x3f8   :  { %5715 = vmatpush1.bf16.msra.mxu1 %v7722_v8  ;;  %5887 = vmatpush1.bf16.msra.mxu0 %v7725_v13 }
 0x3f9   :  { %5716 = vmatprep.subr.bf16.mxu1 %v7730_v14  ;;  %5888 = vmatprep.subr.bf16.mxu0 %v7733_v18 }
 0x3fc   :  { %5717 = vmatpush1.bf16.msra.mxu1 %v7728_v20  ;;  %5889 = vmatpush1.bf16.msra.mxu0 %v7731_v23  ;;  %v7776_v20 = vld [vmem:[#allocation14 + $0xa48] ss:$28 sps:$4 sm:$0xff]   ;;  %v7779_v23 = vld [vmem:[#allocation14 + $0xa50] ss:$28 sps:$4 sm:$0xff]  }
 0x3fd   :  { %5718 = vmatprep.subr.bf16.mxu1 %v7736_v24  ;;  %5890 = vmatprep.subr.bf16.mxu0 %v7739_v37 }
 0x400   :  { %5719 = vmatpush1.bf16.msra.mxu1 %v7734_v25  ;;  %5891 = vmatpush1.bf16.msra.mxu0 %v7737_v53  ;;  %v7784_v53 = vld [vmem:[#allocation14 + $0xa84] ss:$28 sps:$4 sm:$0xff]  }
 0x401   :  { %5720 = vmatprep.subr.bf16.mxu1 %v7742_v26  ;;  %5892 = vmatprep.subr.bf16.mxu0 %v7745_v27  ;;  %v7787_v26 = vld [vmem:[#allocation14 + $0xa8c] ss:$28 sps:$4 sm:$0xff]  }
 0x404   :  { %5721 = vmatpush1.bf16.msra.mxu1 %v7740_v28  ;;  %5893 = vmatpush1.bf16.msra.mxu0 %v7743_v29 }
 0x405   :  { %5722 = vmatprep.subr.bf16.mxu1 %v7748_v30  ;;  %5894 = vmatprep.subr.bf16.mxu0 %v7751_v31 }
 0x408   :  { %5723 = vmatpush1.bf16.msra.mxu1 %v7746_v15  ;;  %5895 = vmatpush1.bf16.msra.mxu0 %v7749_v16 }
 0x409   :  { %5724 = vmatprep.subr.bf16.mxu1 %v7754_v17  ;;  %5896 = vmatprep.subr.bf16.mxu0 %v7757_v19 }
 0x40c   :  { %5725 = vmatpush1.bf16.msra.mxu1 %v7752_v36  ;;  %5897 = vmatpush1.bf16.msra.mxu0 %v7755_v38  ;;  %v7782_v36 = vld [vmem:[#allocation14 + $0xa80] ss:$28 sps:$4 sm:$0xff]   ;;  %v7785_v38 = vld [vmem:[#allocation14 + $0xa88] ss:$28 sps:$4 sm:$0xff]  }
 0x40d   :  { %5726 = vmatprep.subr.bf16.mxu1 %v7760_v39  ;;  %5898 = vmatprep.subr.bf16.mxu0 %v7763_v41  ;;  %v7790_v41 = vld [vmem:[#allocation14 + $0xabc] ss:$28 sps:$4 sm:$0xff]  }
 0x410   :  { %5727 = vmatpush1.bf16.msra.mxu1 %v7758_v43  ;;  %5899 = vmatpush1.bf16.msra.mxu0 %v7761_v44  ;;  %v7793_v43 = vld [vmem:[#allocation14 + $0xac4] ss:$28 sps:$4 sm:$0xff]   ;;  %v7788_v44 = vld [vmem:[#allocation14 + $0xab8] ss:$28 sps:$4 sm:$0xff]  }
 0x411   :  { %5728 = vmatprep.subr.bf16.mxu1 %v7766_v45  ;;  %5900 = vmatprep.subr.bf16.mxu0 %v7769_v46  ;;  %v7791_v45 = vld [vmem:[#allocation14 + $0xac0] ss:$28 sps:$4 sm:$0xff]   ;;  %v7796_v46 = vld [vmem:[#allocation14 + $0xaf4] ss:$28 sps:$4 sm:$0xff]  }
 0x414   :  { %5729 = vmatpush1.bf16.msra.mxu1 %v7764_v51  ;;  %5901 = vmatpush1.bf16.msra.mxu0 %v7767_v52  ;;  %v2644_v62 = vpop.f32.mrb[4].mxu1  ;;  %v7794_v51 = vld [vmem:[#allocation14 + $0xaf0] ss:$28 sps:$4 sm:$0xff]   ;;  %v7797_v52 = vld [vmem:[#allocation14 + $0xaf8] ss:$28 sps:$4 sm:$0xff]  }
 0x415   :  { %v7280_v9 = vadd.f32 %v2644_v62, %v1094_v55  ;;  %v2730_v1 = vpop.f32.mrb[16].mxu0  ;;  %v2646_v2 = vpop.f32.mrb[5].mxu1  ;;  %5730 = vmatprep.subr.bf16.mxu1 %v7772_v57  ;;  %5902 = vmatprep.subr.bf16.mxu0 %v7775_v58  ;;  %v7805_v57 = vld [vmem:[#allocation14 + $0xb34] ss:$28 sps:$4 sm:$0xff]   ;;  %v7800_v58 = vld [vmem:[#allocation14 + $0xb28] ss:$28 sps:$4 sm:$0xff]  }
 0x416   :  { %v7284_v6 = vadd.f32 %v2730_v1, %v1102_v59  ;;  %v7281_v7 = vadd.f32 %v2646_v2, %v1098_v60  ;;  %v2732_v10 = vpop.f32.mrb[17].mxu0  ;;  %v2648_v11 = vpop.f32.mrb[6].mxu1  ;;  %v7806_v62 = vld [vmem:[#allocation14 + $0xb60] ss:$28 sps:$4 sm:$0xff]   ;;  %v7812_v1 = vld [vmem:[#allocation14 + $0xb98] ss:$28 sps:$4 sm:$0xff]  }
 0x417   :  { %v7285_v12 = vadd.f32 %v2732_v10, %v1106_v61  ;;  %v7282_v32 = vadd.f32 %v2648_v11, %v1094_v55  ;;  %v2734_v8 = vpop.f32.mrb[18].mxu0  ;;  %v2650_v3 = vpop.f32.mrb[7].mxu1  ;;  %v2743_v24 = vmax.f32 %v7280_v9, 0.0  ;;  %v7802_v55 = vld [vmem:[#allocation14 + $0xb2c] ss:$28 sps:$4 sm:$0xff]  }
 0x418   :  { %v7286_v13 = vadd.f32 %v2734_v8, %v1102_v59  ;;  %v7283_v14 = vadd.f32 %v2650_v3, %v1098_v60  ;;  %v2736_v18 = vpop.f32.mrb[19].mxu0  ;;  %5731 = vmatpush1.bf16.msra.mxu1 %v7770_v63  ;;  %5903 = vmatpush1.bf16.msra.mxu0 %v7773_v0  ;;  %v2745_v27 = vmax.f32 %v7284_v6, 0.0  ;;  %v2744_v28 = vmax.f32 %v7281_v7, 0.0  ;;  %v7803_v59 = vld [vmem:[#allocation14 + $0xb30] ss:$28 sps:$4 sm:$0xff]  }
 0x419   :  { %v2751_v37 = vmax.f32 %v7282_v32, 0.0  ;;  %v7287_v25 = vadd.f32 %v2736_v18, %v1106_v61  ;;  %5732 = vmatprep.subr.bf16.mxu1 %v7778_v4  ;;  %5904 = vmatprep.subr.bf16.mxu0 %v7781_v5  ;;  %v2746_v31 = vmax.f32 %v7285_v12, 0.0  ;;  %v7808_v60 = vld [vmem:[#allocation14 + $0xb64] ss:$28 sps:$4 sm:$0xff]   ;;  %v7811_v61 = vld [vmem:[#allocation14 + $0xb6c] ss:$28 sps:$4 sm:$0xff]  }
 0x41a   :  { %v2753_v29 = vmax.f32 %v7286_v13, 0.0  ;;  %v2752_v30 = vmax.f32 %v7283_v14, 0.0  ;;  %v7809_v63 = vld [vmem:[#allocation14 + $0xb68] ss:$28 sps:$4 sm:$0xff]   ;;  %v7814_v0 = vld [vmem:[#allocation14 + $0xb9c] ss:$28 sps:$4 sm:$0xff]  }
 0x41b   :  { %v8692_v15 = vpack.c.bf16 %v2751_v37, %v2743_v24  ;;  %v2754_v16 = vmax.f32 %v7287_v25, 0.0  ;;  %v7817_v9 = vld [vmem:[#allocation14 + $0xba4] ss:$28 sps:$4 sm:$0xff]   ;;  %v7820_v4 = vld [vmem:[#allocation14 + $0xbd4] ss:$28 sps:$4 sm:$0xff]  }
 0x41c   :  { %v8694_v17 = vpack.c.bf16 %v2753_v29, %v2745_v27  ;;  %v8696_v19 = vpack.c.bf16 %v2752_v30, %v2744_v28  ;;  %5733 = vmatpush1.bf16.msra.mxu1 %v7776_v20  ;;  %5905 = vmatpush1.bf16.msra.mxu0 %v7779_v23  ;;  %v7815_v2 = vld [vmem:[#allocation14 + $0xba0] ss:$28 sps:$4 sm:$0xff]   ;;  %v7818_v6 = vld [vmem:[#allocation14 + $0xbd0] ss:$28 sps:$4 sm:$0xff]   ;;  %v7821_v7 = vld [vmem:[#allocation14 + $0xbd8] ss:$28 sps:$4 sm:$0xff]  }
 0x41d   :  { %v8698_v39 = vpack.c.bf16 %v2754_v16, %v2746_v31  ;;  %5745 = vmatprep.subr.bf16.mxu1 %v7784_v53  ;;  %5917 = vmatprep.subr.bf16.mxu0 %v7787_v26  ;;  %v7823_v5 = vld [vmem:[#allocation14 + $0xbdc] ss:$28 sps:$4 sm:$0xff]   ;;  %v7826_v10 = vld [vmem:[#allocation14 + $0xc0c] ss:$28 sps:$4 sm:$0xff]   ;;  %v7829_v11 = vld [vmem:[#allocation14 + $0xc14] ss:$28 sps:$4 sm:$0xff]  }
 0x41e   :  { %5734 = vmatprep.mubr.bf16.mxu1 %v8696_v19  ;;  %5906 = vmatprep.mubr.bf16.mxu0 %v8696_v19  ;;  %v7824_v12 = vld [vmem:[#allocation14 + $0xc08] ss:$28 sps:$4 sm:$0xff]   ;;  %v7827_v32 = vld [vmem:[#allocation14 + $0xc10] ss:$28 sps:$4 sm:$0xff]   ;;  %v7830_v13 = vld [vmem:[#allocation14 + $0xc40] ss:$28 sps:$4 sm:$0xff]  }
 0x41f   :  { %5735 = vmatmul.mubr.bf16.vlgmr.msra.gmra.mrb[8].mxu1 %v8692_v15  ;;  %5907 = vmatmul.mubr.bf16.vlgmr.msra.gmra.mrb[20].mxu0 %v8692_v15  ;;  %v7832_v8 = vld [vmem:[#allocation14 + $0xc44] ss:$28 sps:$4 sm:$0xff]   ;;  %v7835_v3 = vld [vmem:[#allocation14 + $0xc4c] ss:$28 sps:$4 sm:$0xff]   ;;  %v7838_v18 = vld [vmem:[#allocation14 + $0xc7c] ss:$28 sps:$4 sm:$0xff]  }
 0x420   :  { %5746 = vmatpush1.bf16.msra.mxu1 %v7782_v36  ;;  %5918 = vmatpush1.bf16.msra.mxu0 %v7785_v38  ;;  %v7833_v14 = vld [vmem:[#allocation14 + $0xc48] ss:$28 sps:$4 sm:$0xff]   ;;  %v7836_v23 = vld [vmem:[#allocation14 + $0xc78] ss:$28 sps:$4 sm:$0xff]   ;;  %v7839_v24 = vld [vmem:[#allocation14 + $0xc80] ss:$28 sps:$4 sm:$0xff]  }
 0x421   :  { %5777 = vmatprep.mubr.bf16.mxu1 %v8698_v39  ;;  %5949 = vmatprep.mubr.bf16.mxu0 %v8698_v39  ;;  %v7841_v20 = vld [vmem:[#allocation14 + $0xc84] ss:$28 sps:$4 sm:$0xff]   ;;  %v7844_v37 = vld [vmem:[#allocation14 + $0xcb4] ss:$28 sps:$4 sm:$0xff]   ;;  %v7847_v25 = vld [vmem:[#allocation14 + $0xcbc] ss:$28 sps:$4 sm:$0xff]  }
 0x422   :  { %5747 = vmatprep.subr.bf16.mxu1 %v7790_v41  ;;  %5919 = vmatprep.subr.bf16.mxu0 %v7793_v43  ;;  %v7842_v53 = vld [vmem:[#allocation14 + $0xcb0] ss:$28 sps:$4 sm:$0xff]   ;;  %v7845_v26 = vld [vmem:[#allocation14 + $0xcb8] ss:$28 sps:$4 sm:$0xff]   ;;  %v7848_v29 = vld [vmem:[#allocation14 + $0xce8] ss:$28 sps:$4 sm:$0xff]  }
 0x423   :  { %v7850_v27 = vld [vmem:[#allocation14 + $0xcec] ss:$28 sps:$4 sm:$0xff]   ;;  %v7853_v28 = vld [vmem:[#allocation14 + $0xcf4] ss:$28 sps:$4 sm:$0xff]   ;;  %v7856_v31 = vld [vmem:[#allocation14 + $0xd24] ss:$28 sps:$4 sm:$0xff]  }
 0x424   :  { %5748 = vmatpush1.bf16.msra.mxu1 %v7788_v44  ;;  %5920 = vmatpush1.bf16.msra.mxu0 %v7791_v45  ;;  %v7851_v30 = vld [vmem:[#allocation14 + $0xcf0] ss:$28 sps:$4 sm:$0xff]   ;;  %v7854_v36 = vld [vmem:[#allocation14 + $0xd20] ss:$28 sps:$4 sm:$0xff]   ;;  %v7857_v38 = vld [vmem:[#allocation14 + $0xd28] ss:$28 sps:$4 sm:$0xff]  }
 0x425   :  { %5749 = vmatprep.subr.bf16.mxu1 %v7796_v46  ;;  %5921 = vmatprep.subr.bf16.mxu0 %v7799_v50  ;;  %v7859_v16 = vld [vmem:[#allocation14 + $0xd2c] ss:$28 sps:$4 sm:$0xff]   ;;  %v7862_v41 = vld [vmem:[#allocation14 + $0xd5c] ss:$28 sps:$4 sm:$0xff]   ;;  %v7865_v43 = vld [vmem:[#allocation14 + $0xd64] ss:$28 sps:$4 sm:$0xff]  }
 0x426   :  { %v7860_v44 = vld [vmem:[#allocation14 + $0xd58] ss:$28 sps:$4 sm:$0xff]   ;;  %v7863_v45 = vld [vmem:[#allocation14 + $0xd60] ss:$28 sps:$4 sm:$0xff]  }
 0x427   :  { %v7868_v46 = vld [vmem:[#allocation14 + $0xd94] ss:$28 sps:$4 sm:$0xff]   ;;  %v7871_v50 = vld [vmem:[#allocation14 + $0xd9c] ss:$28 sps:$4 sm:$0xff]  }
 0x428   :  { %5750 = vmatpush1.bf16.msra.mxu1 %v7794_v51  ;;  %5922 = vmatpush1.bf16.msra.mxu0 %v7797_v52  ;;  %v7866_v51 = vld [vmem:[#allocation14 + $0xd90] ss:$28 sps:$4 sm:$0xff]   ;;  %v7869_v52 = vld [vmem:[#allocation14 + $0xd98] ss:$28 sps:$4 sm:$0xff]  }
 0x429   :  { %5751 = vmatprep.subr.bf16.mxu1 %v7802_v55  ;;  %5923 = vmatprep.subr.bf16.mxu0 %v7805_v57  ;;  %v7874_v55 = vld [vmem:[#allocation14 + $0xdcc] ss:$28 sps:$4 sm:$0xff]   ;;  %v7877_v57 = vld [vmem:[#allocation14 + $0xdd4] ss:$28 sps:$4 sm:$0xff]  }
 0x42c   :  { %5752 = vmatpush1.bf16.msra.mxu1 %v7800_v58  ;;  %5924 = vmatpush1.bf16.msra.mxu0 %v7803_v59  ;;  %v7872_v58 = vld [vmem:[#allocation14 + $0xdc8] ss:$28 sps:$4 sm:$0xff]   ;;  %v7875_v59 = vld [vmem:[#allocation14 + $0xdd0] ss:$28 sps:$4 sm:$0xff]  }
 0x42d   :  { %5753 = vmatprep.subr.bf16.mxu1 %v7808_v60  ;;  %5925 = vmatprep.subr.bf16.mxu0 %v7811_v61  ;;  %v7880_v60 = vld [vmem:[#allocation14 + $0x14] ss:$28 sps:$4 sm:$0xff]  }
 0x42e   :  { %v7881_v61 = vld [vmem:[#allocation14 + $0x1d8] ss:$28 sps:$4 sm:$0xff]  }
 0x430   :  { %5754 = vmatpush1.bf16.msra.mxu1 %v7806_v62  ;;  %5926 = vmatpush1.bf16.msra.mxu0 %v7809_v63  ;;  %v7878_v62 = vld [vmem:[#allocation14 + $0x10] ss:$28 sps:$4 sm:$0xff]   ;;  %v7882_v63 = vld [vmem:[#allocation14 + $0x18] ss:$28 sps:$4 sm:$0xff]  }
 0x431   :  { %5755 = vmatprep.subr.bf16.mxu1 %v7814_v0  ;;  %5927 = vmatprep.subr.bf16.mxu0 %v7817_v9  ;;  %v7885_v0 = vld [vmem:[#allocation14 + $0x4c] ss:$28 sps:$4 sm:$0xff]  }
 0x432   :  { %v7886_v9 = vld [vmem:[#allocation14 + $0x210] ss:$28 sps:$4 sm:$0xff]  }
 0x434   :  { %5756 = vmatpush1.bf16.msra.mxu1 %v7812_v1  ;;  %5928 = vmatpush1.bf16.msra.mxu0 %v7815_v2  ;;  %v7883_v1 = vld [vmem:[#allocation14 + $0x48] ss:$28 sps:$4 sm:$0xff]   ;;  %v7887_v2 = vld [vmem:[#allocation14 + $0x50] ss:$28 sps:$4 sm:$0xff]  }
 0x435   :  { %5757 = vmatprep.subr.bf16.mxu1 %v7820_v4  ;;  %5929 = vmatprep.subr.bf16.mxu0 %v7823_v5  ;;  %v7890_v4 = vld [vmem:[#allocation14 + $0x84] ss:$28 sps:$4 sm:$0xff]  }
 0x436   :  { %v7891_v5 = vld [vmem:[#allocation14 + $0x248] ss:$28 sps:$4 sm:$0xff]  }
 0x438   :  { %5758 = vmatpush1.bf16.msra.mxu1 %v7818_v6  ;;  %5930 = vmatpush1.bf16.msra.mxu0 %v7821_v7  ;;  %v7888_v6 = vld [vmem:[#allocation14 + $0x80] ss:$28 sps:$4 sm:$0xff]   ;;  %v7892_v7 = vld [vmem:[#allocation14 + $0x88] ss:$28 sps:$4 sm:$0xff]  }
 0x439   :  { %5759 = vmatprep.subr.bf16.mxu1 %v7826_v10  ;;  %5931 = vmatprep.subr.bf16.mxu0 %v7829_v11  ;;  %v7895_v10 = vld [vmem:[#allocation14 + $0xbc] ss:$28 sps:$4 sm:$0xff]  }
 0x43a   :  { %v7896_v11 = vld [vmem:[#allocation14 + $0x280] ss:$28 sps:$4 sm:$0xff]  }
 0x43c   :  { %5760 = vmatpush1.bf16.msra.mxu1 %v7824_v12  ;;  %5932 = vmatpush1.bf16.msra.mxu0 %v7827_v32  ;;  %v7893_v12 = vld [vmem:[#allocation14 + $0xb8] ss:$28 sps:$4 sm:$0xff]   ;;  %v7897_v32 = vld [vmem:[#allocation14 + $0xc0] ss:$28 sps:$4 sm:$0xff]  }
 0x43d   :  { %5761 = vmatprep.subr.bf16.mxu1 %v7832_v8  ;;  %5933 = vmatprep.subr.bf16.mxu0 %v7835_v3  ;;  %v7900_v8 = vld [vmem:[#allocation14 + $0xf4] ss:$28 sps:$4 sm:$0xff]  }
 0x43e   :  { %v7898_v3 = vld [vmem:[#allocation14 + $0xf0] ss:$28 sps:$4 sm:$0xff]  }
 0x440   :  { %5762 = vmatpush1.bf16.msra.mxu1 %v7830_v13  ;;  %5934 = vmatpush1.bf16.msra.mxu0 %v7833_v14  ;;  %v7902_v13 = vld [vmem:[#allocation14 + $0xf8] ss:$28 sps:$4 sm:$0xff]   ;;  %v7905_v14 = vld [vmem:[#allocation14 + $0x12c] ss:$28 sps:$4 sm:$0xff]  }
 0x441   :  { %5763 = vmatprep.subr.bf16.mxu1 %v7838_v18  ;;  %5935 = vmatprep.subr.bf16.mxu0 %v7841_v20  ;;  %v7906_v18 = vld [vmem:[#allocation14 + $0x2f0] ss:$28 sps:$4 sm:$0xff]   ;;  %v7903_v20 = vld [vmem:[#allocation14 + $0x128] ss:$28 sps:$4 sm:$0xff]  }
 0x444   :  { %5764 = vmatpush1.bf16.msra.mxu1 %v7836_v23  ;;  %5936 = vmatpush1.bf16.msra.mxu0 %v7839_v24  ;;  %v7907_v23 = vld [vmem:[#allocation14 + $0x130] ss:$28 sps:$4 sm:$0xff]   ;;  %v7910_v24 = vld [vmem:[#allocation14 + $0x164] ss:$28 sps:$4 sm:$0xff]  }
 0x445   :  { %5765 = vmatprep.subr.bf16.mxu1 %v7844_v37  ;;  %5937 = vmatprep.subr.bf16.mxu0 %v7847_v25  ;;  %v7911_v37 = vld [vmem:[#allocation14 + $0x328] ss:$28 sps:$4 sm:$0xff]   ;;  %v7908_v25 = vld [vmem:[#allocation14 + $0x160] ss:$28 sps:$4 sm:$0xff]  }
 0x448   :  { %5766 = vmatpush1.bf16.msra.mxu1 %v7842_v53  ;;  %5938 = vmatpush1.bf16.msra.mxu0 %v7845_v26  ;;  %v7912_v53 = vld [vmem:[#allocation14 + $0x168] ss:$28 sps:$4 sm:$0xff]   ;;  %v7915_v26 = vld [vmem:[#allocation14 + $0x19c] ss:$28 sps:$4 sm:$0xff]  }
 0x449   :  { %5767 = vmatprep.subr.bf16.mxu1 %v7850_v27  ;;  %5939 = vmatprep.subr.bf16.mxu0 %v7853_v28  ;;  %v7916_v27 = vld [vmem:[#allocation14 + $0x360] ss:$28 sps:$4 sm:$0xff]   ;;  %v7913_v28 = vld [vmem:[#allocation14 + $0x198] ss:$28 sps:$4 sm:$0xff]  }
 0x44c   :  { %5768 = vmatpush1.bf16.msra.mxu1 %v7848_v29  ;;  %5940 = vmatpush1.bf16.msra.mxu0 %v7851_v30  ;;  %v7917_v29 = vld [vmem:[#allocation14 + $0x1a0] ss:$28 sps:$4 sm:$0xff]   ;;  %v7920_v30 = vld [vmem:[#allocation14 + $0x1d4] ss:$28 sps:$4 sm:$0xff]  }
 0x44d   :  { %5769 = vmatprep.subr.bf16.mxu1 %v7856_v31  ;;  %5941 = vmatprep.subr.bf16.mxu0 %v7859_v16  ;;  %v7921_v31 = vld [vmem:[#allocation14 + $0x558] ss:$28 sps:$4 sm:$0xff]   ;;  %v7918_v16 = vld [vmem:[#allocation14 + $0x1d0] ss:$28 sps:$4 sm:$0xff]  }
 0x450   :  { %5770 = vmatpush1.bf16.msra.mxu1 %v7854_v36  ;;  %5942 = vmatpush1.bf16.msra.mxu0 %v7857_v38  ;;  %v7922_v36 = vld [vmem:[#allocation14 + $0x398] ss:$28 sps:$4 sm:$0xff]   ;;  %v7925_v38 = vld [vmem:[#allocation14 + $0x20c] ss:$28 sps:$4 sm:$0xff]  }
 0x451   :  { %5771 = vmatprep.subr.bf16.mxu1 %v7862_v41  ;;  %5943 = vmatprep.subr.bf16.mxu0 %v7865_v43  ;;  %v7926_v41 = vld [vmem:[#allocation14 + $0x590] ss:$28 sps:$4 sm:$0xff]   ;;  %v7923_v43 = vld [vmem:[#allocation14 + $0x208] ss:$28 sps:$4 sm:$0xff]  }
 0x454   :  { %5772 = vmatpush1.bf16.msra.mxu1 %v7860_v44  ;;  %5944 = vmatpush1.bf16.msra.mxu0 %v7863_v45  ;;  %v7927_v44 = vld [vmem:[#allocation14 + $0x3d0] ss:$28 sps:$4 sm:$0xff]   ;;  %v7930_v45 = vld [vmem:[#allocation14 + $0x244] ss:$28 sps:$4 sm:$0xff]  }
 0x455   :  { %5773 = vmatprep.subr.bf16.mxu1 %v7868_v46  ;;  %5945 = vmatprep.subr.bf16.mxu0 %v7871_v50  ;;  %v7931_v46 = vld [vmem:[#allocation14 + $0x5c8] ss:$28 sps:$4 sm:$0xff]   ;;  %v7928_v50 = vld [vmem:[#allocation14 + $0x240] ss:$28 sps:$4 sm:$0xff]  }
 0x458   :  { %5774 = vmatpush1.bf16.msra.mxu1 %v7866_v51  ;;  %5946 = vmatpush1.bf16.msra.mxu0 %v7869_v52  ;;  %v7932_v51 = vld [vmem:[#allocation14 + $0x408] ss:$28 sps:$4 sm:$0xff]   ;;  %v7935_v52 = vld [vmem:[#allocation14 + $0x27c] ss:$28 sps:$4 sm:$0xff]  }
 0x459   :  { %5775 = vmatprep.subr.bf16.mxu1 %v7874_v55  ;;  %5947 = vmatprep.subr.bf16.mxu0 %v7877_v57  ;;  %v7936_v55 = vld [vmem:[#allocation14 + $0x600] ss:$28 sps:$4 sm:$0xff]   ;;  %v7933_v57 = vld [vmem:[#allocation14 + $0x278] ss:$28 sps:$4 sm:$0xff]  }
 0x45c   :  { %5776 = vmatpush1.bf16.msra.mxu1 %v7872_v58  ;;  %5948 = vmatpush1.bf16.msra.mxu0 %v7875_v59  ;;  %v7937_v58 = vld [vmem:[#allocation14 + $0x440] ss:$28 sps:$4 sm:$0xff]   ;;  %v7940_v59 = vld [vmem:[#allocation14 + $0x2b4] ss:$28 sps:$4 sm:$0xff]  }
 0x45d   :  { %5960 = vmatprep.subr.bf16.mxu1 %v7880_v60  ;;  %7184 = vmatprep.subr.bf16.mxu0 %v7881_v61  ;;  %v7941_v60 = vld [vmem:[#allocation14 + $0x638] ss:$28 sps:$4 sm:$0xff]   ;;  %v7938_v61 = vld [vmem:[#allocation14 + $0x2b0] ss:$28 sps:$4 sm:$0xff]  }
 0x45f   :  { %5778 = vmatmul.mubr.bf16.vlgmr.msra.gmra.mrb[8].mxu1 %v8694_v17  ;;  %5950 = vmatmul.mubr.bf16.vlgmr.msra.gmra.mrb[20].mxu0 %v8694_v17 }
 0x460   :  { %5961 = vmatpush1.bf16.msra.mxu1 %v7878_v62  ;;  %5992 = vmatprep.mubr.bf16.mxu1 %v8666_v33  ;;  %v7942_v62 = vld [vmem:[#allocation14 + $0x478] ss:$28 sps:$4 sm:$0xff]  }
 0x461   :  { %7185 = vmatpush3.bf16.msra.mxu0 %v7882_v63  ;;  %6164 = vmatprep.mubr.bf16.mxu0 %v8666_v33  ;;  %v7901_v33 = vld [vmem:[#allocation14 + $0x2b8] ss:$28 sps:$4 sm:$0xff]   ;;  %v7945_v63 = vld [vmem:[#allocation14 + $0x2ec] ss:$28 sps:$4 sm:$0xff]  }
 0x462   :  { %5962 = vmatprep.subr.bf16.mxu1 %v7885_v0  ;;  %7186 = vmatprep.subr.bf16.mxu0 %v7886_v9  ;;  %v7946_v0 = vld [vmem:[#allocation14 + $0x670] ss:$28 sps:$4 sm:$0xff]   ;;  %v7943_v9 = vld [vmem:[#allocation14 + $0x2e8] ss:$28 sps:$4 sm:$0xff]  }
 0x464   :  { %5963 = vmatpush1.bf16.msra.mxu1 %v7883_v1  ;;  %v7947_v1 = vld [vmem:[#allocation14 + $0x4b0] ss:$28 sps:$4 sm:$0xff]  }
 0x465   :  { %7187 = vmatpush3.bf16.msra.mxu0 %v7887_v2  ;;  %5964 = vmatprep.subr.bf16.mxu1 %v7890_v4  ;;  %v7950_v2 = vld [vmem:[#allocation14 + $0x324] ss:$28 sps:$4 sm:$0xff]  }
 0x466   :  { %7188 = vmatprep.subr.bf16.mxu0 %v7891_v5  ;;  %v7951_v4 = vld [vmem:[#allocation14 + $0x6a8] ss:$28 sps:$4 sm:$0xff]   ;;  %v7948_v5 = vld [vmem:[#allocation14 + $0x320] ss:$28 sps:$4 sm:$0xff]  }
 0x468   :  { %5965 = vmatpush1.bf16.msra.mxu1 %v7888_v6  ;;  %v7952_v6 = vld [vmem:[#allocation14 + $0x4e8] ss:$28 sps:$4 sm:$0xff]  }
 0x469   :  { %7189 = vmatpush3.bf16.msra.mxu0 %v7892_v7  ;;  %5966 = vmatprep.subr.bf16.mxu1 %v7895_v10  ;;  %v7955_v7 = vld [vmem:[#allocation14 + $0x35c] ss:$28 sps:$4 sm:$0xff]  }
 0x46a   :  { %7190 = vmatprep.subr.bf16.mxu0 %v7896_v11  ;;  %v7956_v10 = vld [vmem:[#allocation14 + $0x6e0] ss:$28 sps:$4 sm:$0xff]   ;;  %v7953_v11 = vld [vmem:[#allocation14 + $0x358] ss:$28 sps:$4 sm:$0xff]  }
 0x46c   :  { %5967 = vmatpush1.bf16.msra.mxu1 %v7893_v12  ;;  %v7957_v12 = vld [vmem:[#allocation14 + $0x520] ss:$28 sps:$4 sm:$0xff]  }
 0x46d   :  { %7191 = vmatpush3.bf16.msra.mxu0 %v7897_v32  ;;  %5968 = vmatprep.subr.bf16.mxu1 %v7900_v8  ;;  %v7960_v32 = vld [vmem:[#allocation14 + $0x394] ss:$28 sps:$4 sm:$0xff]  }
 0x46e   :  { %7192 = vmatprep.subr.bf16.mxu0 %v7901_v33  ;;  %v7961_v8 = vld [vmem:[#allocation14 + $0x8d8] ss:$28 sps:$4 sm:$0xff]   ;;  %v7958_v33 = vld [vmem:[#allocation14 + $0x390] ss:$28 sps:$4 sm:$0xff]  }
 0x470   :  { %5969 = vmatpush1.bf16.msra.mxu1 %v7898_v3  ;;  %v7962_v3 = vld [vmem:[#allocation14 + $0x718] ss:$28 sps:$4 sm:$0xff]  }
 0x471   :  { %7193 = vmatpush3.bf16.msra.mxu0 %v7902_v13  ;;  %5970 = vmatprep.subr.bf16.mxu1 %v7905_v14  ;;  %v7965_v13 = vld [vmem:[#allocation14 + $0x3cc] ss:$28 sps:$4 sm:$0xff]  }
 0x472   :  { %7194 = vmatprep.subr.bf16.mxu0 %v7906_v18  ;;  %v7966_v14 = vld [vmem:[#allocation14 + $0x910] ss:$28 sps:$4 sm:$0xff]   ;;  %v7963_v18 = vld [vmem:[#allocation14 + $0x3c8] ss:$28 sps:$4 sm:$0xff]  }
 0x474   :  { %5971 = vmatpush1.bf16.msra.mxu1 %v7903_v20  ;;  %v7967_v20 = vld [vmem:[#allocation14 + $0x750] ss:$28 sps:$4 sm:$0xff]  }
 0x475   :  { %7195 = vmatpush3.bf16.msra.mxu0 %v7907_v23  ;;  %5972 = vmatprep.subr.bf16.mxu1 %v7910_v24  ;;  %v7970_v23 = vld [vmem:[#allocation14 + $0x404] ss:$28 sps:$4 sm:$0xff]  }
 0x476   :  { %7196 = vmatprep.subr.bf16.mxu0 %v7911_v37  ;;  %v7971_v24 = vld [vmem:[#allocation14 + $0x948] ss:$28 sps:$4 sm:$0xff]   ;;  %v7968_v37 = vld [vmem:[#allocation14 + $0x400] ss:$28 sps:$4 sm:$0xff]  }
 0x478   :  { %5973 = vmatpush1.bf16.msra.mxu1 %v7908_v25  ;;  %v7975_v25 = vld [vmem:[#allocation14 + $0x43c] ss:$28 sps:$4 sm:$0xff]  }
 0x479   :  { %7197 = vmatpush3.bf16.msra.mxu0 %v7912_v53  ;;  %5974 = vmatprep.subr.bf16.mxu1 %v7915_v26  ;;  %v7976_v53 = vld [vmem:[#allocation14 + $0x980] ss:$28 sps:$4 sm:$0xff]   ;;  %v7973_v26 = vld [vmem:[#allocation14 + $0x438] ss:$28 sps:$4 sm:$0xff]  }
 0x47a   :  { %7198 = vmatprep.subr.bf16.mxu0 %v7916_v27  ;;  %v7980_v27 = vld [vmem:[#allocation14 + $0x474] ss:$28 sps:$4 sm:$0xff]  }
 0x47c   :  { %5975 = vmatpush1.bf16.msra.mxu1 %v7913_v28  ;;  %v7981_v28 = vld [vmem:[#allocation14 + $0x9b8] ss:$28 sps:$4 sm:$0xff]  }
 0x47d   :  { %7199 = vmatpush3.bf16.msra.mxu0 %v7917_v29  ;;  %5976 = vmatprep.subr.bf16.mxu1 %v7920_v30  ;;  %v7978_v29 = vld [vmem:[#allocation14 + $0x470] ss:$28 sps:$4 sm:$0xff]   ;;  %v7982_v30 = vld [vmem:[#allocation14 + $0x7f8] ss:$28 sps:$4 sm:$0xff]  }
 0x47e   :  { %7206 = vmatprep.subr.bf16.mxu0 %v7921_v31  ;;  %v7985_v31 = vld [vmem:[#allocation14 + $0x4ac] ss:$28 sps:$4 sm:$0xff]  }
 0x480   :  { %6165 = vmatmul.mubr.bf16.vlgmr.msra.gmra.mrb[24].mxu0 %v8662_v21  ;;  %5977 = vmatpush1.bf16.msra.mxu1 %v7918_v16  ;;  %v7986_v16 = vld [vmem:[#allocation14 + $0x9f0] ss:$28 sps:$4 sm:$0xff]  }
 0x481   :  { %7207 = vmatpush3.bf16.msra.mxu0 %v7922_v36  ;;  %6205 = vmatprep.mubr.bf16.mxu0 %v8668_v35  ;;  %v7983_v36 = vld [vmem:[#allocation14 + $0x4a8] ss:$28 sps:$4 sm:$0xff]  }
 0x482   :  { %5978 = vmatprep.subr.bf16.mxu1 %v7925_v38  ;;  %7208 = vmatprep.subr.bf16.mxu0 %v7926_v41  ;;  %v7987_v38 = vld [vmem:[#allocation14 + $0x830] ss:$28 sps:$4 sm:$0xff]   ;;  %v7990_v41 = vld [vmem:[#allocation14 + $0x4e4] ss:$28 sps:$4 sm:$0xff]  }
 0x484   :  { %5979 = vmatpush1.bf16.msra.mxu1 %v7923_v43  ;;  %v7991_v43 = vld [vmem:[#allocation14 + $0xa28] ss:$28 sps:$4 sm:$0xff]  }
 0x485   :  { %7209 = vmatpush3.bf16.msra.mxu0 %v7927_v44  ;;  %5980 = vmatprep.subr.bf16.mxu1 %v7930_v45  ;;  %v7988_v44 = vld [vmem:[#allocation14 + $0x4e0] ss:$28 sps:$4 sm:$0xff]   ;;  %v7992_v45 = vld [vmem:[#allocation14 + $0x868] ss:$28 sps:$4 sm:$0xff]  }
 0x486   :  { %7210 = vmatprep.subr.bf16.mxu0 %v7931_v46  ;;  %v7995_v46 = vld [vmem:[#allocation14 + $0x51c] ss:$28 sps:$4 sm:$0xff]  }
 0x488   :  { %5981 = vmatpush1.bf16.msra.mxu1 %v7928_v50  ;;  %v7996_v50 = vld [vmem:[#allocation14 + $0xa60] ss:$28 sps:$4 sm:$0xff]  }
 0x489   :  { %7211 = vmatpush3.bf16.msra.mxu0 %v7932_v51  ;;  %5982 = vmatprep.subr.bf16.mxu1 %v7935_v52  ;;  %v7993_v51 = vld [vmem:[#allocation14 + $0x518] ss:$28 sps:$4 sm:$0xff]   ;;  %v7997_v52 = vld [vmem:[#allocation14 + $0x8a0] ss:$28 sps:$4 sm:$0xff]  }
 0x48a   :  { %7212 = vmatprep.subr.bf16.mxu0 %v7936_v55  ;;  %v8000_v55 = vld [vmem:[#allocation14 + $0x554] ss:$28 sps:$4 sm:$0xff]  }
 0x48c   :  { %5983 = vmatpush1.bf16.msra.mxu1 %v7933_v57  ;;  %v8001_v57 = vld [vmem:[#allocation14 + $0xc58] ss:$28 sps:$4 sm:$0xff]  }
 0x48d   :  { %7213 = vmatpush3.bf16.msra.mxu0 %v7937_v58  ;;  %5984 = vmatprep.subr.bf16.mxu1 %v7940_v59  ;;  %v7998_v58 = vld [vmem:[#allocation14 + $0x550] ss:$28 sps:$4 sm:$0xff]   ;;  %v8002_v59 = vld [vmem:[#allocation14 + $0xa98] ss:$28 sps:$4 sm:$0xff]  }
 0x48e   :  { %7214 = vmatprep.subr.bf16.mxu0 %v7941_v60  ;;  %v8005_v60 = vld [vmem:[#allocation14 + $0x58c] ss:$28 sps:$4 sm:$0xff]  }
 0x490   :  { %5985 = vmatpush1.bf16.msra.mxu1 %v7938_v61  ;;  %v8006_v61 = vld [vmem:[#allocation14 + $0xc90] ss:$28 sps:$4 sm:$0xff]  }
 0x491   :  { %7215 = vmatpush3.bf16.msra.mxu0 %v7942_v62  ;;  %5986 = vmatprep.subr.bf16.mxu1 %v7945_v63  ;;  %v8003_v62 = vld [vmem:[#allocation14 + $0x588] ss:$28 sps:$4 sm:$0xff]   ;;  %v8007_v63 = vld [vmem:[#allocation14 + $0xad0] ss:$28 sps:$4 sm:$0xff]  }
 0x492   :  { %7216 = vmatprep.subr.bf16.mxu0 %v7946_v0  ;;  %v8010_v0 = vld [vmem:[#allocation14 + $0x5c4] ss:$28 sps:$4 sm:$0xff]  }
 0x494   :  { %5987 = vmatpush1.bf16.msra.mxu1 %v7943_v9  ;;  %v8011_v9 = vld [vmem:[#allocation14 + $0xcc8] ss:$28 sps:$4 sm:$0xff]  }
 0x495   :  { %7217 = vmatpush3.bf16.msra.mxu0 %v7947_v1  ;;  %5988 = vmatprep.subr.bf16.mxu1 %v7950_v2  ;;  %v8008_v1 = vld [vmem:[#allocation14 + $0x5c0] ss:$28 sps:$4 sm:$0xff]   ;;  %v8012_v2 = vld [vmem:[#allocation14 + $0xb08] ss:$28 sps:$4 sm:$0xff]  }
 0x496   :  { %7218 = vmatprep.subr.bf16.mxu0 %v7951_v4  ;;  %v8015_v4 = vld [vmem:[#allocation14 + $0x5fc] ss:$28 sps:$4 sm:$0xff]  }
 0x498   :  { %5989 = vmatpush1.bf16.msra.mxu1 %v7948_v5  ;;  %v8016_v5 = vld [vmem:[#allocation14 + $0xd00] ss:$28 sps:$4 sm:$0xff]  }
 0x499   :  { %7219 = vmatpush3.bf16.msra.mxu0 %v7952_v6  ;;  %5990 = vmatprep.subr.bf16.mxu1 %v7955_v7  ;;  %v8013_v6 = vld [vmem:[#allocation14 + $0x5f8] ss:$28 sps:$4 sm:$0xff]   ;;  %v8017_v7 = vld [vmem:[#allocation14 + $0xb40] ss:$28 sps:$4 sm:$0xff]  }
 0x49a   :  { %7220 = vmatprep.subr.bf16.mxu0 %v7956_v10  ;;  %v8020_v10 = vld [vmem:[#allocation14 + $0x634] ss:$28 sps:$4 sm:$0xff]  }
 0x49c   :  { %5991 = vmatpush1.bf16.msra.mxu1 %v7953_v11  ;;  %v8021_v11 = vld [vmem:[#allocation14 + $0xd38] ss:$28 sps:$4 sm:$0xff]  }
 0x49d   :  { %7221 = vmatpush3.bf16.msra.mxu0 %v7957_v12  ;;  %6003 = vmatprep.subr.bf16.mxu1 %v7960_v32  ;;  %v8018_v12 = vld [vmem:[#allocation14 + $0x630] ss:$28 sps:$4 sm:$0xff]   ;;  %v8022_v32 = vld [vmem:[#allocation14 + $0xb78] ss:$28 sps:$4 sm:$0xff]  }
 0x49e   :  { %7228 = vmatprep.subr.bf16.mxu0 %v7961_v8  ;;  %v8025_v8 = vld [vmem:[#allocation14 + $0x66c] ss:$28 sps:$4 sm:$0xff]  }
 0x49f   :  { %5993 = vmatmul.mubr.bf16.vlgmr.msra.gmra.mrb[12].mxu1 %v8662_v21  ;;  %v7972_v21 = vld [vmem:[#allocation14 + $0x788] ss:$28 sps:$4 sm:$0xff]  }
 0x4a0   :  { %6206 = vmatmul.mubr.bf16.vlgmr.msra.gmra.mrb[28].mxu0 %v8664_v22  ;;  %6004 = vmatpush1.bf16.msra.mxu1 %v7958_v33  ;;  %v8026_v33 = vld [vmem:[#allocation14 + $0xd70] ss:$28 sps:$4 sm:$0xff]  }
 0x4a1   :  { %6035 = vmatprep.mubr.bf16.mxu1 %v8668_v35  ;;  %7229 = vmatpush3.bf16.msra.mxu0 %v7962_v3  ;;  %v7977_v35 = vld [vmem:[#allocation14 + $0x7c0] ss:$28 sps:$4 sm:$0xff]   ;;  %v8023_v3 = vld [vmem:[#allocation14 + $0x668] ss:$28 sps:$4 sm:$0xff]  }
 0x4a2   :  { %6246 = vmatprep.mubr.bf16.mxu0 %v8696_v19  ;;  %6005 = vmatprep.subr.bf16.mxu1 %v7965_v13  ;;  %v8027_v13 = vld [vmem:[#allocation14 + $0xbb0] ss:$28 sps:$4 sm:$0xff]  }
 0x4a3   :  { %7230 = vmatprep.subr.bf16.mxu0 %v7966_v14  ;;  %v8030_v14 = vld [vmem:[#allocation14 + $0x6a4] ss:$28 sps:$4 sm:$0xff]  }
 0x4a4   :  { %6006 = vmatpush1.bf16.msra.mxu1 %v7963_v18  ;;  %v8031_v18 = vld [vmem:[#allocation14 + $0xda8] ss:$28 sps:$4 sm:$0xff]  }
 0x4a5   :  { %7231 = vmatpush3.bf16.msra.mxu0 %v7967_v20  ;;  %6007 = vmatprep.subr.bf16.mxu1 %v7970_v23  ;;  %v8028_v20 = vld [vmem:[#allocation14 + $0x6a0] ss:$28 sps:$4 sm:$0xff]   ;;  %v8032_v23 = vld [vmem:[#allocation14 + $0xbe8] ss:$28 sps:$4 sm:$0xff]  }
 0x4a6   :  { %7232 = vmatprep.subr.bf16.mxu0 %v7971_v24  ;;  %v8035_v24 = vld [vmem:[#allocation14 + $0x6dc] ss:$28 sps:$4 sm:$0xff]  }
 0x4a8   :  { %6008 = vmatpush1.bf16.msra.mxu1 %v7968_v37  ;;  %v8036_v37 = vld [vmem:[#allocation14 + $0xde0] ss:$28 sps:$4 sm:$0xff]  }
 0x4a9   :  { %7233 = vmatpush3.bf16.msra.mxu0 %v7972_v21  ;;  %6009 = vmatprep.subr.bf16.mxu1 %v7975_v25  ;;  %v8033_v21 = vld [vmem:[#allocation14 + $0x6d8] ss:$28 sps:$4 sm:$0xff]   ;;  %v8037_v25 = vld [vmem:[#allocation14 + $0xc20] ss:$28 sps:$4 sm:$0xff]  }
 0x4aa   :  { %7234 = vmatprep.subr.bf16.mxu0 %v7976_v53  ;;  %v8040_v53 = vld [vmem:[#allocation14 + $0x714] ss:$28 sps:$4 sm:$0xff]  }
 0x4ac   :  { %6010 = vmatpush1.bf16.msra.mxu1 %v7973_v26  ;;  %v8038_v26 = vld [vmem:[#allocation14 + $0x710] ss:$28 sps:$4 sm:$0xff]  }
 0x4ad   :  { %7235 = vmatpush3.bf16.msra.mxu0 %v7977_v35  ;;  %6011 = vmatprep.subr.bf16.mxu1 %v7980_v27  ;;  %v8043_v35 = vld [vmem:[#allocation14 + $0x74c] ss:$28 sps:$4 sm:$0xff]  }
 0x4ae   :  { %7236 = vmatprep.subr.bf16.mxu0 %v7981_v28  ;;  %v8041_v27 = vld [vmem:[#allocation14 + $0x748] ss:$28 sps:$4 sm:$0xff]  }
 0x4af   :  { %v8046_v28 = vld [vmem:[#allocation14 + $0x784] ss:$28 sps:$4 sm:$0xff]  }
 0x4b0   :  { %6012 = vmatpush1.bf16.msra.mxu1 %v7978_v29  ;;  %v8044_v29 = vld [vmem:[#allocation14 + $0x780] ss:$28 sps:$4 sm:$0xff]  }
 0x4b1   :  { %7237 = vmatpush3.bf16.msra.mxu0 %v7982_v30  ;;  %6013 = vmatprep.subr.bf16.mxu1 %v7985_v31  ;;  %v8049_v30 = vld [vmem:[#allocation14 + $0x7bc] ss:$28 sps:$4 sm:$0xff]  }
 0x4b2   :  { %7238 = vmatprep.subr.bf16.mxu0 %v7986_v16  ;;  %v8047_v31 = vld [vmem:[#allocation14 + $0x7b8] ss:$28 sps:$4 sm:$0xff]  }
 0x4b3   :  { %v8052_v16 = vld [vmem:[#allocation14 + $0x7f4] ss:$28 sps:$4 sm:$0xff]  }
 0x4b4   :  { %6014 = vmatpush1.bf16.msra.mxu1 %v7983_v36  ;;  %v8050_v36 = vld [vmem:[#allocation14 + $0x7f0] ss:$28 sps:$4 sm:$0xff]  }
 0x4b5   :  { %7239 = vmatpush3.bf16.msra.mxu0 %v7987_v38  ;;  %6015 = vmatprep.subr.bf16.mxu1 %v7990_v41  ;;  %v8053_v38 = vld [vmem:[#allocation14 + $0x828] ss:$28 sps:$4 sm:$0xff]  }
 0x4b6   :  { %7240 = vmatprep.subr.bf16.mxu0 %v7991_v43  ;;  %v8058_v41 = vld [vmem:[#allocation14 + $0x864] ss:$28 sps:$4 sm:$0xff]   ;;  %v8061_v43 = vld [vmem:[#allocation14 + $0x89c] ss:$28 sps:$4 sm:$0xff]  }
 0x4b8   :  { %6016 = vmatpush1.bf16.msra.mxu1 %v7988_v44  ;;  %v8059_v44 = vld [vmem:[#allocation14 + $0x898] ss:$28 sps:$4 sm:$0xff]  }
 0x4b9   :  { %7241 = vmatpush3.bf16.msra.mxu0 %v7992_v45  ;;  %6017 = vmatprep.subr.bf16.mxu1 %v7995_v46  ;;  %v8064_v45 = vld [vmem:[#allocation14 + $0x8d4] ss:$28 sps:$4 sm:$0xff]  }
 0x4ba   :  { %7242 = vmatprep.subr.bf16.mxu0 %v7996_v50  ;;  %v8062_v46 = vld [vmem:[#allocation14 + $0x8d0] ss:$28 sps:$4 sm:$0xff]  }
 0x4bb   :  { %v8067_v50 = vld [vmem:[#allocation14 + $0x90c] ss:$28 sps:$4 sm:$0xff]  }
 0x4bc   :  { %6018 = vmatpush1.bf16.msra.mxu1 %v7993_v51  ;;  %v8065_v51 = vld [vmem:[#allocation14 + $0x908] ss:$28 sps:$4 sm:$0xff]  }
 0x4bd   :  { %7243 = vmatpush3.bf16.msra.mxu0 %v7997_v52  ;;  %6019 = vmatprep.subr.bf16.mxu1 %v8000_v55  ;;  %v8070_v52 = vld [vmem:[#allocation14 + $0x944] ss:$28 sps:$4 sm:$0xff]  }
 0x4be   :  { %7250 = vmatprep.subr.bf16.mxu0 %v8001_v57  ;;  %v8068_v55 = vld [vmem:[#allocation14 + $0x940] ss:$28 sps:$4 sm:$0xff]  }
 0x4bf   :  { %v8073_v57 = vld [vmem:[#allocation14 + $0x97c] ss:$28 sps:$4 sm:$0xff]  }
 0x4c0   :  { %6247 = vmatmul.mubr.bf16.vlgmr.msra.gmra.mrb[32].mxu0 %v8692_v15  ;;  %6020 = vmatpush1.bf16.msra.mxu1 %v7998_v58  ;;  %v8071_v58 = vld [vmem:[#allocation14 + $0x978] ss:$28 sps:$4 sm:$0xff]  }
 0x4c1   :  { %7251 = vmatpush3.bf16.msra.mxu0 %v8002_v59  ;;  %6287 = vmatprep.mubr.bf16.mxu0 %v8698_v39  ;;  %v8076_v59 = vld [vmem:[#allocation14 + $0x9b4] ss:$28 sps:$4 sm:$0xff]  }
 0x4c2   :  { %6021 = vmatprep.subr.bf16.mxu1 %v8005_v60  ;;  %7252 = vmatprep.subr.bf16.mxu0 %v8006_v61  ;;  %v8074_v60 = vld [vmem:[#allocation14 + $0x9b0] ss:$28 sps:$4 sm:$0xff]  }
 0x4c3   :  { %v8079_v61 = vld [vmem:[#allocation14 + $0x9ec] ss:$28 sps:$4 sm:$0xff]  }
 0x4c4   :  { %6022 = vmatpush1.bf16.msra.mxu1 %v8003_v62  ;;  %v8077_v62 = vld [vmem:[#allocation14 + $0x9e8] ss:$28 sps:$4 sm:$0xff]  }
 0x4c5   :  { %7253 = vmatpush3.bf16.msra.mxu0 %v8007_v63  ;;  %6023 = vmatprep.subr.bf16.mxu1 %v8010_v0  ;;  %v8082_v63 = vld [vmem:[#allocation14 + $0xa24] ss:$28 sps:$4 sm:$0xff]  }
 0x4c6   :  { %7254 = vmatprep.subr.bf16.mxu0 %v8011_v9  ;;  %v8080_v0 = vld [vmem:[#allocation14 + $0xa20] ss:$28 sps:$4 sm:$0xff]  }
 0x4c7   :  { %v8085_v9 = vld [vmem:[#allocation14 + $0xa5c] ss:$28 sps:$4 sm:$0xff]  }
 0x4c8   :  { %6024 = vmatpush1.bf16.msra.mxu1 %v8008_v1  ;;  %v8083_v1 = vld [vmem:[#allocation14 + $0xa58] ss:$28 sps:$4 sm:$0xff]  }
 0x4c9   :  { %7255 = vmatpush3.bf16.msra.mxu0 %v8012_v2  ;;  %6025 = vmatprep.subr.bf16.mxu1 %v8015_v4  ;;  %v8088_v2 = vld [vmem:[#allocation14 + $0xa94] ss:$28 sps:$4 sm:$0xff]  }
 0x4ca   :  { %7256 = vmatprep.subr.bf16.mxu0 %v8016_v5  ;;  %v8086_v4 = vld [vmem:[#allocation14 + $0xa90] ss:$28 sps:$4 sm:$0xff]  }
 0x4cb   :  { %v8091_v5 = vld [vmem:[#allocation14 + $0xacc] ss:$28 sps:$4 sm:$0xff]  }
 0x4cc   :  { %6026 = vmatpush1.bf16.msra.mxu1 %v8013_v6  ;;  %v8089_v6 = vld [vmem:[#allocation14 + $0xac8] ss:$28 sps:$4 sm:$0xff]  }
 0x4cd   :  { %7257 = vmatpush3.bf16.msra.mxu0 %v8017_v7  ;;  %6027 = vmatprep.subr.bf16.mxu1 %v8020_v10  ;;  %v8094_v7 = vld [vmem:[#allocation14 + $0xb04] ss:$28 sps:$4 sm:$0xff]  }
 0x4ce   :  { %7258 = vmatprep.subr.bf16.mxu0 %v8021_v11  ;;  %v8092_v10 = vld [vmem:[#allocation14 + $0xb00] ss:$28 sps:$4 sm:$0xff]  }
 0x4cf   :  { %v8097_v11 = vld [vmem:[#allocation14 + $0xb3c] ss:$28 sps:$4 sm:$0xff]  }
 0x4d0   :  { %6028 = vmatpush1.bf16.msra.mxu1 %v8018_v12  ;;  %v8095_v12 = vld [vmem:[#allocation14 + $0xb38] ss:$28 sps:$4 sm:$0xff]  }
 0x4d1   :  { %7259 = vmatpush3.bf16.msra.mxu0 %v8022_v32  ;;  %6029 = vmatprep.subr.bf16.mxu1 %v8025_v8  ;;  %v8100_v32 = vld [vmem:[#allocation14 + $0xb74] ss:$28 sps:$4 sm:$0xff]  }
 0x4d2   :  { %7260 = vmatprep.subr.bf16.mxu0 %v8026_v33  ;;  %v8098_v8 = vld [vmem:[#allocation14 + $0xb70] ss:$28 sps:$4 sm:$0xff]   ;;  %v8723_v33 = vld [vmem:[#allocation16] sm:$0xff] }
 0x4d4   :  { %6030 = vmatpush1.bf16.msra.mxu1 %v8023_v3  ;;  %v3288_v3 = vrot.slane %v8723_v33, %v8627_v54 }
 0x4d5   :  { %7261 = vmatpush3.bf16.msra.mxu0 %v8027_v13  ;;  %6031 = vmatprep.subr.bf16.mxu1 %v8030_v14  ;;  %v3284_v13 = vrot.slane %v8723_v33, %v8582_v42  ;;  %v3292_v14 = vrot.slane %v8723_v33, %v8630_v56  ;;  %v8109_v56 = vld [vmem:[#allocation14 + $0xc1c] ss:$28 sps:$4 sm:$0xff]  }
 0x4d6   :  { %7262 = vmatprep.subr.bf16.mxu0 %v8031_v18  ;;  %v8101_v18 = vld [vmem:[#allocation14 + $0xba8] ss:$28 sps:$4 sm:$0xff]  }
 0x4d8   :  { %6032 = vmatpush1.bf16.msra.mxu1 %v8028_v20  ;;  %v8106_v20 = vld [vmem:[#allocation14 + $0xbe4] ss:$28 sps:$4 sm:$0xff]  }
 0x4d9   :  { %7263 = vmatpush3.bf16.msra.mxu0 %v8032_v23  ;;  %6033 = vmatprep.subr.bf16.mxu1 %v8035_v24 }
 0x4da   :  { %7264 = vmatprep.subr.bf16.mxu0 %v8036_v37 }
 0x4dc   :  { %6034 = vmatpush1.bf16.msra.mxu1 %v8033_v21 }
 0x4dd   :  { %7265 = vmatpush3.bf16.msra.mxu0 %v8037_v25  ;;  %6046 = vmatprep.subr.bf16.mxu1 %v8040_v53 }
 0x4df   :  { %6036 = vmatmul.mubr.bf16.vlgmr.msra.gmra.mrb[12].mxu1 %v8664_v22  ;;  %v8055_v22 = vld [vmem:[#allocation14 + $0x82c] ss:$28 sps:$4 sm:$0xff]  }
 0x4e0   :  { %6288 = vmatmul.mubr.bf16.vlgmr.msra.gmra.mrb[36].mxu0 %v8694_v17  ;;  %6047 = vmatpush1.bf16.msra.mxu1 %v8038_v26 }
 0x4e1   :  { %6078 = vmatprep.mubr.bf16.mxu1 %v8696_v19  ;;  %6048 = vmatprep.subr.bf16.mxu1 %v8043_v35  ;;  %v8056_v19 = vld [vmem:[#allocation14 + $0x860] ss:$28 sps:$4 sm:$0xff]  }
 0x4e4   :  { %6049 = vmatpush1.bf16.msra.mxu1 %v8041_v27  ;;  %v8104_v27 = vld [vmem:[#allocation14 + $0xbe0] ss:$28 sps:$4 sm:$0xff]  }
 0x4e5   :  { %6050 = vmatprep.subr.bf16.mxu1 %v8046_v28 }
 0x4e8   :  { %6051 = vmatpush1.bf16.msra.mxu1 %v8044_v29 }
 0x4e9   :  { %6052 = vmatprep.subr.bf16.mxu1 %v8049_v30 }
 0x4ec   :  { %6053 = vmatpush1.bf16.msra.mxu1 %v8047_v31 }
 0x4ed   :  { %6054 = vmatprep.subr.bf16.mxu1 %v8052_v16 }
 0x4f0   :  { %6055 = vmatpush1.bf16.msra.mxu1 %v8050_v36  ;;  %v8107_v36 = vld [vmem:[#allocation14 + $0xc18] ss:$28 sps:$4 sm:$0xff]  }
 0x4f1   :  { %6056 = vmatprep.subr.bf16.mxu1 %v8055_v22  ;;  %v8112_v22 = vld [vmem:[#allocation14 + $0xc54] ss:$28 sps:$4 sm:$0xff]  }
 0x4f4   :  { %6057 = vmatpush1.bf16.msra.mxu1 %v8053_v38  ;;  %v8110_v38 = vld [vmem:[#allocation14 + $0xc50] ss:$28 sps:$4 sm:$0xff]  }
 0x4f5   :  { %6058 = vmatprep.subr.bf16.mxu1 %v8058_v41  ;;  %v8115_v41 = vld [vmem:[#allocation14 + $0xc8c] ss:$28 sps:$4 sm:$0xff]  }
 0x4f8   :  { %6059 = vmatpush1.bf16.msra.mxu1 %v8056_v19 }
 0x4f9   :  { %6060 = vmatprep.subr.bf16.mxu1 %v8061_v43 }
 0x4fc   :  { %6061 = vmatpush1.bf16.msra.mxu1 %v8059_v44  ;;  %v8113_v44 = vld [vmem:[#allocation14 + $0xc88] ss:$28 sps:$4 sm:$0xff]  }
 0x4fd   :  { %6062 = vmatprep.subr.bf16.mxu1 %v8064_v45 }
 0x500   :  { %6063 = vmatpush1.bf16.msra.mxu1 %v8062_v46  ;;  %v8118_v46 = vld [vmem:[#allocation14 + $0xcc4] ss:$28 sps:$4 sm:$0xff]  }
 0x501   :  { %6064 = vmatprep.subr.bf16.mxu1 %v8067_v50 }
 0x504   :  { %6065 = vmatpush1.bf16.msra.mxu1 %v8065_v51 }
 0x505   :  { %6066 = vmatprep.subr.bf16.mxu1 %v8070_v52 }
 0x508   :  { %6067 = vmatpush1.bf16.msra.mxu1 %v8068_v55 }
 0x509   :  { %6068 = vmatprep.subr.bf16.mxu1 %v8073_v57 }
 0x50c   :  { %6069 = vmatpush1.bf16.msra.mxu1 %v8071_v58  ;;  %v8116_v58 = vld [vmem:[#allocation14 + $0xcc0] ss:$28 sps:$4 sm:$0xff]  }
 0x50d   :  { %6070 = vmatprep.subr.bf16.mxu1 %v8076_v59 }
 0x510   :  { %6071 = vmatpush1.bf16.msra.mxu1 %v8074_v60  ;;  %v8121_v60 = vld [vmem:[#allocation14 + $0xcfc] ss:$28 sps:$4 sm:$0xff]  }
 0x511   :  { %6072 = vmatprep.subr.bf16.mxu1 %v8079_v61 }
 0x514   :  { %6073 = vmatpush1.bf16.msra.mxu1 %v8077_v62 }
 0x515   :  { %6074 = vmatprep.subr.bf16.mxu1 %v8082_v63 }
 0x518   :  { %6075 = vmatpush1.bf16.msra.mxu1 %v8080_v0  ;;  %v8119_v0 = vld [vmem:[#allocation14 + $0xcf8] ss:$28 sps:$4 sm:$0xff]  }
 0x519   :  { %6076 = vmatprep.subr.bf16.mxu1 %v8085_v9  ;;  %v8124_v9 = vld [vmem:[#allocation14 + $0xd34] ss:$28 sps:$4 sm:$0xff]  }
 0x51c   :  { %6077 = vmatpush1.bf16.msra.mxu1 %v8083_v1  ;;  %v8122_v1 = vld [vmem:[#allocation14 + $0xd30] ss:$28 sps:$4 sm:$0xff]  }
 0x51d   :  { %6089 = vmatprep.subr.bf16.mxu1 %v8088_v2  ;;  %v8127_v2 = vld [vmem:[#allocation14 + $0xd6c] ss:$28 sps:$4 sm:$0xff]  }
 0x51f   :  { %6079 = vmatmul.mubr.bf16.vlgmr.msra.gmra.mrb[12].mxu1 %v8692_v15  ;;  %v8103_v15 = vld [vmem:[#allocation14 + $0xbac] ss:$28 sps:$4 sm:$0xff]  }
 0x520   :  { %6090 = vmatpush1.bf16.msra.mxu1 %v8086_v4  ;;  %6121 = vmatprep.mubr.bf16.mxu1 %v8698_v39  ;;  %v3280_v39 = vrot.slane %v8723_v33, %v8579_v40  ;;  %v8125_v4 = vld [vmem:[#allocation14 + $0xd68] ss:$28 sps:$4 sm:$0xff]  }
 0x521   :  { %6091 = vmatprep.subr.bf16.mxu1 %v8091_v5  ;;  %v8130_v5 = vld [vmem:[#allocation14 + $0xda4] ss:$28 sps:$4 sm:$0xff]  }
 0x524   :  { %6092 = vmatpush1.bf16.msra.mxu1 %v8089_v6 }
 0x525   :  { %6093 = vmatprep.subr.bf16.mxu1 %v8094_v7 }
 0x528   :  { %6094 = vmatpush1.bf16.msra.mxu1 %v8092_v10  ;;  %v8128_v10 = vld [vmem:[#allocation14 + $0xda0] ss:$28 sps:$4 sm:$0xff]  }
 0x529   :  { %6095 = vmatprep.subr.bf16.mxu1 %v8097_v11 }
 0x52c   :  { %6096 = vmatpush1.bf16.msra.mxu1 %v8095_v12 }
 0x52d   :  { %6097 = vmatprep.subr.bf16.mxu1 %v8100_v32  ;;  %v8133_v32 = vld [vmem:[#allocation14 + $0xddc] ss:$28 sps:$4 sm:$0xff]  }
 0x530   :  { %6098 = vmatpush1.bf16.msra.mxu1 %v8098_v8 }
 0x531   :  { %6099 = vmatprep.subr.bf16.mxu1 %v8103_v15 }
 0x532   :  { %v5779_v23 = vpop.f32.mrb[8].mxu1  ;;  %v5951_v24 = vpop.f32.mrb[20].mxu0 }
 0x533   :  { %v7288_v37 = vadd.f32 %v5779_v23, %v3280_v39  ;;  %v7292_v21 = vadd.f32 %v5951_v24, %v3288_v3  ;;  %v5781_v25 = vpop.f32.mrb[9].mxu1  ;;  %v5953_v53 = vpop.f32.mrb[21].mxu0 }
 0x534   :  { %v7289_v40 = vadd.f32 %v5781_v25, %v3284_v13  ;;  %v7293_v26 = vadd.f32 %v5953_v53, %v3292_v14  ;;  %v5783_v35 = vpop.f32.mrb[10].mxu1  ;;  %v5955_v54 = vpop.f32.mrb[22].mxu0  ;;  %6100 = vmatpush1.bf16.msra.mxu1 %v8101_v18 }
 0x535   :  { %8134 = vtanh.f32 %v7288_v37  ;;  %v7290_v42 = vadd.f32 %v5783_v35, %v3280_v39  ;;  %v5785_v28 = vpop.f32.mrb[11].mxu1  ;;  %v5957_v29 = vpop.f32.mrb[23].mxu0  ;;  %6101 = vmatprep.subr.bf16.mxu1 %v8106_v20  ;;  %v7294_v30 = vadd.f32 %v5955_v54, %v3288_v3  ;;  %v8131_v39 = vld [vmem:[#allocation14 + $0xdd8] ss:$28 sps:$4 sm:$0xff]   ;;  %v3304_v3 = vrot.slane %v8723_v33, %v1101_v48 }
 0x536   :  { %8136 = vtanh.f32 %v7292_v21  ;;  %v7291_v31 = vadd.f32 %v5785_v28, %v3284_v13  ;;  %v7295_v16 = vadd.f32 %v5957_v29, %v3292_v14 }
 0x537   :  { %8138 = vtanh.f32 %v7289_v40 }
 0x538   :  { %8140 = vtanh.f32 %v7293_v26  ;;  %6102 = vmatpush1.bf16.msra.mxu1 %v8104_v27 }
 0x539   :  { %8142 = vtanh.f32 %v7290_v42  ;;  %6103 = vmatprep.subr.bf16.mxu1 %v8109_v56 }
 0x53a   :  { %8144 = vtanh.f32 %v7294_v30 }
 0x53b   :  { %8146 = vtanh.f32 %v7291_v31 }
 0x53c   :  { %8148 = vtanh.f32 %v7295_v16  ;;  %6104 = vmatpush1.bf16.msra.mxu1 %v8107_v36 }
 0x53d   :  { %6105 = vmatprep.subr.bf16.mxu1 %v8112_v22 }
 0x53f   :  { %v8135_v19 = vpop.eup %8134 }
 0x540   :  { %v8137_v43 = vpop.eup %8136  ;;  %6106 = vmatpush1.bf16.msra.mxu1 %v8110_v38 }
 0x541   :  { %v8139_v45 = vpop.eup %8138  ;;  %6107 = vmatprep.subr.bf16.mxu1 %v8115_v41 }
 0x542   :  { %v8141_v50 = vpop.eup %8140  ;;  %v7176_v51 = vpack.c.bf16 %v8139_v45, %v8135_v19  ;;  %v3300_v45 = vrot.slane %v8723_v33, %v1097_v49 }
 0x543   :  { %v8143_v52 = vpop.eup %8142  ;;  %v7177_v55 = vpack.c.bf16 %v8141_v50, %v8137_v43 }
 0x544   :  { %v8145_v57 = vpop.eup %8144  ;;  %6354 = vst [vmem:[#allocation17] sm:$0xff] %v7176_v51  ;;  %6108 = vmatpush1.bf16.msra.mxu1 %v8113_v44  ;;  %v3296_v44 = vrot.slane %v8723_v33, %v1093_v47 }
 0x545   :  { %v8147_v59 = vpop.eup %8146  ;;  %6355 = vst [vmem:[#allocation17 + $0x8] sm:$0xff] %v7177_v55  ;;  %6109 = vmatprep.subr.bf16.mxu1 %v8118_v46 }
 0x546   :  { %v8149_v61 = vpop.eup %8148  ;;  %v7180_v62 = vpack.c.bf16 %v8147_v59, %v8143_v52 }
 0x547   :  { %v7181_v63 = vpack.c.bf16 %v8149_v61, %v8145_v57 }
 0x548   :  { %6358 = vst [vmem:[#allocation17 + $0x1c] sm:$0xff] %v7180_v62  ;;  %6110 = vmatpush1.bf16.msra.mxu1 %v8116_v58 }
 0x549   :  { %6359 = vst [vmem:[#allocation17 + $0x24] sm:$0xff] %v7181_v63  ;;  %6111 = vmatprep.subr.bf16.mxu1 %v8121_v60 }
 0x54c   :  { %6112 = vmatpush1.bf16.msra.mxu1 %v8119_v0 }
 0x54d   :  { %6113 = vmatprep.subr.bf16.mxu1 %v8124_v9 }
 0x550   :  { %6114 = vmatpush1.bf16.msra.mxu1 %v8122_v1 }
 0x551   :  { %6115 = vmatprep.subr.bf16.mxu1 %v8127_v2 }
 0x553   :  { %v7200_v6 = vpop.f32.mrb[24].mxu0 }
 0x554   :  { %v7201_v7 = vpop.f32.mrb[25].mxu0  ;;  %6116 = vmatpush1.bf16.msra.mxu1 %v8125_v4 }
 0x555   :  { %v7202_v11 = vadd.f32 %v7201_v7, %v7200_v6  ;;  %v7203_v12 = vpop.f32.mrb[26].mxu0  ;;  %6117 = vmatprep.subr.bf16.mxu1 %v8130_v5 }
 0x556   :  { %v7204_v8 = vpop.f32.mrb[27].mxu0 }
 0x557   :  { %v7205_v15 = vadd.f32 %v7204_v8, %v7203_v12  ;;  %v6167_v18 = vadd.f32 %v7202_v11, %v3304_v3 }
 0x558   :  { %6118 = vmatpush1.bf16.msra.mxu1 %v8128_v10 }
 0x559   :  { %6119 = vmatprep.subr.bf16.mxu1 %v8133_v32  ;;  %v6170_v37 = vadd.f32 %v7205_v15, %v3304_v3 }
 0x55c   :  { %6120 = vmatpush1.bf16.msra.mxu1 %v8131_v39 }
 0x55f   :  { %6122 = vmatmul.mubr.bf16.vlgmr.msra.gmra.mrb[12].mxu1 %v8694_v17 }
 0x573   :  { %v7222_v13 = vpop.f32.mrb[28].mxu0 }
 0x574   :  { %v7223_v14 = vpop.f32.mrb[29].mxu0 }
 0x575   :  { %v7224_v20 = vadd.f32 %v7223_v14, %v7222_v13  ;;  %v7225_v23 = vpop.f32.mrb[30].mxu0 }
 0x576   :  { %v7226_v24 = vpop.f32.mrb[31].mxu0 }
 0x577   :  { %v6208_v21 = vadd.f32 %v7224_v20, %v6167_v18  ;;  %v7227_v25 = vadd.f32 %v7226_v24, %v7225_v23 }
 0x579   :  { %v6211_v53 = vadd.f32 %v7227_v25, %v6170_v37 }
 0x593   :  { %v7244_v40 = vpop.f32.mrb[32].mxu0 }
 0x594   :  { %v7245_v26 = vpop.f32.mrb[33].mxu0 }
 0x595   :  { %v7246_v35 = vadd.f32 %v7245_v26, %v7244_v40  ;;  %v7247_v54 = vpop.f32.mrb[34].mxu0 }
 0x596   :  { %v7248_v27 = vpop.f32.mrb[35].mxu0 }
 0x597   :  { %v6249_v17 = vadd.f32 %v7246_v35, %v6208_v21  ;;  %v7249_v42 = vadd.f32 %v7248_v27, %v7247_v54 }
 0x599   :  { %v6252_v28 = vadd.f32 %v7249_v42, %v6211_v53 }
 0x5b3   :  { %v7266_v29 = vpop.f32.mrb[36].mxu0 }
 0x5b4   :  { %v7267_v48 = vpop.f32.mrb[37].mxu0 }
 0x5b5   :  { %v7268_v56 = vadd.f32 %v7267_v48, %v7266_v29  ;;  %v7269_v30 = vpop.f32.mrb[38].mxu0 }
 0x5b6   :  { %v7270_v31 = vpop.f32.mrb[39].mxu0 }
 0x5b7   :  { %v6290_v16 = vadd.f32 %v7268_v56, %v6249_v17  ;;  %v7271_v36 = vadd.f32 %v7270_v31, %v7269_v30 }
 0x5b9   :  { %8150 = vtanh.f32 %v6290_v16  ;;  %v6293_v22 = vadd.f32 %v7271_v36, %v6252_v28 }
 0x5bb   :  { %8152 = vtanh.f32 %v6293_v22 }
 0x5c3   :  { %v8151_v38 = vpop.eup %8150 }
 0x5c4   :  { %v7179_v41 = vpack.c.bf16 %v8151_v38, %v8151_v38 }
 0x5c5   :  { %v8153_v19 = vpop.eup %8152 }
 0x5c6   :  { %6357 = vst [vmem:[#allocation17 + $0x18] sm:$0xf] %v7179_v41  ;;  %v7183_v43 = vpack.c.bf16 %v8153_v19, %v8153_v19 }
 0x5c8   :  { %6361 = vst [vmem:[#allocation17 + $0x34] sm:$0xf] %v7183_v43 }
 0x632   :  { %v6123_v46 = vpop.f32.mrb[12].mxu1 }
 0x633   :  { %v7296_v50 = vadd.f32 %v6123_v46, %v3296_v44  ;;  %v6125_v51 = vpop.f32.mrb[13].mxu1 }
 0x634   :  { %v7297_v52 = vadd.f32 %v6125_v51, %v3300_v45  ;;  %v6127_v55 = vpop.f32.mrb[14].mxu1 }
 0x635   :  { %8154 = vtanh.f32 %v7296_v50  ;;  %v7298_v57 = vadd.f32 %v6127_v55, %v3296_v44  ;;  %v6129_v58 = vpop.f32.mrb[15].mxu1 }
 0x636   :  { %8156 = vtanh.f32 %v7297_v52  ;;  %v7299_v59 = vadd.f32 %v6129_v58, %v3300_v45 }
 0x637   :  { %8158 = vtanh.f32 %v7298_v57 }
 0x638   :  { %8160 = vtanh.f32 %v7299_v59 }
 0x63f   :  { %v8155_v60 = vpop.eup %8154 }
 0x640   :  { %v8157_v61 = vpop.eup %8156 }
 0x641   :  { %v8159_v47 = vpop.eup %8158  ;;  %v7178_v34 = vpack.c.bf16 %v8157_v61, %v8155_v60 }
 0x642   :  { %v8161_v62 = vpop.eup %8160 }
 0x643   :  { %6356 = vst [vmem:[#allocation17 + $0x10] sm:$0xff] %v7178_v34  ;;  %v7182_v49 = vpack.c.bf16 %v8161_v62, %v8159_v47 }
 0x645   :  { %6360 = vst [vmem:[#allocation17 + $0x2c] sm:$0xff] %v7182_v49 }
 0x646   :  { %8371 = shalt.err (!%p8368_p6)
}
 0x647   :  { %s8372_s12 = scalar_lea.hbm %s8767_s9, 896 }
 0x648   :  { %p8373_p7 = scmp.ne.s32.totalorder %s8767_s9, %s8372_s12  ;;  %p8376_p8 = scmp.lt.u32.totalorder %s8372_s12, %s8767_s9 }
 0x64a   :  { %p8378_p9 = pnand %p8376_p8, %p8373_p7 }
 0x64c   :  { %8381 = shalt.err (!%p8378_p9)
}
 0x64d   :  { %6373 = dma.vmem_to_hbm [thread:$0]  %s6368_s2, 896, %s8767_s9, [#allocation4], %s8404_s5, %s8404_s5, %s8405_s16  }
 0x64e   :  { %8392 = dma.done.wait [#allocation4], 896  }
 0x64f   :  { %8393 = vsyncadd [#allocation4], 4294966400 }
 0x650   :  { %6377 = vsyncpa [#allocation3], 1 }
 0x651   :  { %6378 = vsyncpa [#allocation6], 1 }
 0x652   :  { %6379 = vsyncpa [#allocation9], 1 }
 0x653   :  { %6380 = vsyncpa [#allocation12], 1 }
 0x654   :  { %6381 = vsyncpa [#allocation15], 1 }
 0x655   :  { %6382 = vsyncpa [#allocation4], 1 }

</bundles_post_ra>
